<compile_context>
chip_gen: v6e
topology: v6e:2x2x1
jax: 0.10.0
libtpu: 0.0.40
codegen_flags: <defaults>
</compile_context>

<pallas_src>
import jax
import jax.numpy as jnp
import numpy as np
from jax.experimental import pallas as pl
from jax.experimental.pallas import tpu as pltpu


def backbone_kernel(xp_ref, w_ref, b_ref, o_ref):
    # xp_ref: (Nb, H+2, W+2, Cin)   bf16, zero-padded NHWC input block
    # w_ref : (9*Cin, Cp)           bf16 im2col weight slab (Cout padded -> Cp)
    # b_ref : (1, Cp)               f32 bias (zero-padded)
    # o_ref : (Nb*OH, OW, Cout)     f32 pooled output block (unpadded channels)
    Nb, Hp, Wp, Cin = xp_ref.shape
    H, W = Hp - 2, Wp - 2
    Cp = w_ref.shape[1]
    Cout = o_ref.shape[-1]
    OH, OW = H // 2, W // 2
    M = Nb * H * W

    # im2col: 9 shifted, unit-stride slices of the pre-padded block.
    # (Lane-sparse at tiny Cin — 9*Cin of 128 lanes — acceptable here; for
    #  realistic Cin the patch is naturally lane-dense.)
    cols = [
        xp_ref[:, dy:dy + H, dx:dx + W, :].reshape(M, Cin)
        for dy in range(3) for dx in range(3)
    ]
    patch = jnp.concatenate(cols, axis=1)                  # (M, 9*Cin) bf16

    # One wide MXU matmul for the whole conv; bf16 operands, f32 accumulate.
    conv = jnp.dot(patch, w_ref[...],
                   preferred_element_type=jnp.float32)     # (M, Cp) f32
    conv = jnp.maximum(conv + b_ref[...], 0.0)             # bias + ReLU, once

    # MaxPool 2x2 stride 2.  Rows of `conv` are (n, h, w) row-major.
    #   w-pool: fold the w-parity into the second-minor dim (Cp stays lane-dense).
    cw = conv.reshape(Nb * H * OW, 2, Cp)
    cw = jnp.maximum(cw[:, 0, :], cw[:, 1, :])             # (Nb*H*OW, Cp)
    #   h-pool: tile-exact leading-dim split.
    ch = cw.reshape(Nb * OH, 2, OW, Cp)
    pooled = jnp.maximum(ch[:, 0], ch[:, 1])               # (Nb*OH, OW, Cp)

    # Store only the real Cout lanes (cuts HBM writeback 16x when Cout << 128).
    o_ref[...] = pooled[:, :, :Cout].astype(o_ref.dtype)


def _pick_batch_block(N, H, W, Cp):
    # Keep the per-step live set (input block, f32 conv/pool temporaries,
    # double buffers) comfortably under ~24 MiB so the same blocking fits
    # v7x's 64 MiB VMEM as well as v5e/v6e's 128 MiB.
    budget = 24 * 1024 * 1024
    per_image = H * W * Cp * 12                  # rough bytes per batch element
    nb = max(1, min(N, budget // max(per_image, 1)))
    # Prefer >= 2 grid steps for pipelining / 2-TC "parallel" sharding.
    while nb > 1 and N // nb < 2:
        nb -= 1
    while N % nb:
        nb -= 1
    return nb


def backbone_forward(x_nchw, weight, bias, *, batch_block=None):
    """Conv2d(3x3, s=1, p=1) + ReLU + MaxPool2d(2,2) via one Pallas kernel."""
    N, Cin, H, W = x_nchw.shape
    Cout = weight.shape[0]
    assert H % 2 == 0 and W % 2 == 0, "MaxPool2d(2,2) floor mode assumes even H, W"
    OH, OW = H // 2, W // 2

    # Lane-dense channel padding for the matmul N dimension.  (On v6e/v7x with
    # Cout >= 128 a 256-multiple would fill the full MXU width; 128 keeps this
    # portable and is exact for small Cout.)
    Cp = ((Cout + 127) // 128) * 128
    Nb = _pick_batch_block(N, H, W, Cp) if batch_block is None else batch_block
    assert N % Nb == 0

    # Boundary glue in XLA.  The transpose, bf16 cast and 1-pixel zero halo all
    # fuse into the single relayout pass XLA already needs for NCHW -> NHWC, so
    # the kernel never spends vld/vst slots copying or padding the input.
    # (Keeping the surrounding model NHWC end-to-end would remove this pass and
    #  the final transpose entirely.)
    x_pad = jnp.pad(jnp.transpose(x_nchw, (0, 2, 3, 1)),
                    ((0, 0), (1, 1), (1, 1), (0, 0))).astype(jnp.bfloat16)
    w_k = jnp.transpose(weight, (2, 3, 1, 0)).reshape(9 * Cin, Cout)
    w_k = jnp.pad(w_k, ((0, 0), (0, Cp - Cout))).astype(jnp.bfloat16)
    b_k = jnp.pad(bias, (0, Cp - Cout)).reshape(1, Cp).astype(jnp.float32)

    out = pl.pallas_call(
        backbone_kernel,
        out_shape=jax.ShapeDtypeStruct((N * OH, OW, Cout), jnp.float32),
        grid_spec=pltpu.PrefetchScalarGridSpec(
            num_scalar_prefetch=0,
            grid=(N // Nb,),
            in_specs=[
                pl.BlockSpec((Nb, H + 2, W + 2, Cin), lambda i: (i, 0, 0, 0)),
                # Constant-index weight/bias slabs; small enough that default
                # double-buffering only costs a few KiB of VMEM.
                pl.BlockSpec((9 * Cin, Cp), lambda i: (0, 0)),
                pl.BlockSpec((1, Cp), lambda i: (0, 0)),
            ],
            out_specs=pl.BlockSpec((Nb * OH, OW, Cout), lambda i: (i, 0, 0)),
        ),
        compiler_params=pltpu.CompilerParams(
            dimension_semantics=("parallel",),
            vmem_limit_bytes=64 * 1024 * 1024,
        ),
    )(x_pad, w_k, b_k)

    out = out.reshape(N, OH, OW, Cout)
    return jnp.transpose(out, (0, 3, 1, 2))                # back to NCHW


def backbone_ref(x_nchw, weight, bias):
    """Pure-JAX f32 reference matching torch semantics."""
    conv = jax.lax.conv_general_dilated(
        x_nchw, weight, window_strides=(1, 1), padding=((1, 1), (1, 1)),
        dimension_numbers=("NCHW", "OIHW", "NCHW"),
        precision=jax.lax.Precision.HIGHEST)
    conv = jnp.maximum(conv + bias[None, :, None, None], 0.0)
    return jax.lax.reduce_window(conv, -jnp.inf, jax.lax.max,
                                 (1, 1, 2, 2), (1, 1, 2, 2), "VALID")


if __name__ == "__main__":
    N, Cin, Cout, H, W = 2, 4, 8, 16, 16

    key = jax.random.PRNGKey(0)
    kw, kb, kx = jax.random.split(key, 3)
    # Deterministic synthetic parameters (shapes from nn.Conv2d(Cin, Cout, 3)).
    weight = jax.random.normal(kw, (Cout, Cin, 3, 3), jnp.float32) * 0.1
    bias = jax.random.normal(kb, (Cout,), jnp.float32) * 0.1
    x = jax.random.normal(kx, (N, Cin, H, W), jnp.float32)

    out = jax.block_until_ready(backbone_forward(x, weight, bias))
    ref = backbone_ref(x, weight, bias)

    assert out.shape == (N, Cout, H // 2, W // 2), out.shape
    # Kernel runs the conv in bf16 (f32 accumulation); tolerance sized for
    # bf16 operand quantization against the exact f32 reference.
    assert np.allclose(np.asarray(out), np.asarray(ref), atol=2e-2, rtol=2e-2), (
        float(jnp.max(jnp.abs(out - ref))))
    print("KERNEL_OK")
</pallas_src>

<mosaic_0001>
module attributes {stable_mosaic.version = 11 : i64} {
  func.func @backbone_kernel(%arg0: i32, %arg1: memref<1x18x18x4xbf16, #tpu.memory_space<vmem>>, %arg2: memref<36x128xbf16, #tpu.memory_space<vmem>>, %arg3: memref<1x128xf32, #tpu.memory_space<vmem>>, %arg4: memref<8x8x8xf32, #tpu.memory_space<vmem>>) attributes {dimension_semantics = [#tpu.dimension_semantics<parallel>], iteration_bounds = array<i64: 2>, scalar_prefetch = 0 : i64, scratch_operands = 0 : i64, tpu.core_type = #tpu.core_type<tc>, window_params = [{transform_indices = @transform_0, window_bounds = array<i64: 1, 18, 18, 4>}, {pipeline_mode = #tpu.pipeline_mode<synchronous>, transform_indices = @transform_1, window_bounds = array<i64: 36, 128>}, {pipeline_mode = #tpu.pipeline_mode<synchronous>, transform_indices = @transform_2, window_bounds = array<i64: 1, 128>}, {transform_indices = @transform_3, window_bounds = array<i64: 8, 8, 8>}]} {
    %c0 = arith.constant 0 : index
    %c0_0 = arith.constant 0 : index
    %c0_1 = arith.constant 0 : index
    %c0_2 = arith.constant 0 : index
    %0 = vector.load %arg1[%c0, %c0_0, %c0_1, %c0_2] : memref<1x18x18x4xbf16, #tpu.memory_space<vmem>>, vector<1x16x16x4xbf16>
    %1 = vector.shape_cast %0 : vector<1x16x16x4xbf16> to vector<256x4xbf16>
    %c0_3 = arith.constant 0 : index
    %c0_4 = arith.constant 0 : index
    %c1 = arith.constant 1 : index
    %c0_5 = arith.constant 0 : index
    %2 = vector.load %arg1[%c0_3, %c0_4, %c1, %c0_5] : memref<1x18x18x4xbf16, #tpu.memory_space<vmem>>, vector<1x16x16x4xbf16>
    %3 = vector.shape_cast %2 : vector<1x16x16x4xbf16> to vector<256x4xbf16>
    %c0_6 = arith.constant 0 : index
    %c0_7 = arith.constant 0 : index
    %c2 = arith.constant 2 : index
    %c0_8 = arith.constant 0 : index
    %4 = vector.load %arg1[%c0_6, %c0_7, %c2, %c0_8] : memref<1x18x18x4xbf16, #tpu.memory_space<vmem>>, vector<1x16x16x4xbf16>
    %5 = vector.shape_cast %4 : vector<1x16x16x4xbf16> to vector<256x4xbf16>
    %c0_9 = arith.constant 0 : index
    %c1_10 = arith.constant 1 : index
    %c0_11 = arith.constant 0 : index
    %c0_12 = arith.constant 0 : index
    %6 = vector.load %arg1[%c0_9, %c1_10, %c0_11, %c0_12] : memref<1x18x18x4xbf16, #tpu.memory_space<vmem>>, vector<1x16x16x4xbf16>
    %7 = vector.shape_cast %6 : vector<1x16x16x4xbf16> to vector<256x4xbf16>
    %c0_13 = arith.constant 0 : index
    %c1_14 = arith.constant 1 : index
    %c1_15 = arith.constant 1 : index
    %c0_16 = arith.constant 0 : index
    %8 = vector.load %arg1[%c0_13, %c1_14, %c1_15, %c0_16] : memref<1x18x18x4xbf16, #tpu.memory_space<vmem>>, vector<1x16x16x4xbf16>
    %9 = vector.shape_cast %8 : vector<1x16x16x4xbf16> to vector<256x4xbf16>
    %c0_17 = arith.constant 0 : index
    %c1_18 = arith.constant 1 : index
    %c2_19 = arith.constant 2 : index
    %c0_20 = arith.constant 0 : index
    %10 = vector.load %arg1[%c0_17, %c1_18, %c2_19, %c0_20] : memref<1x18x18x4xbf16, #tpu.memory_space<vmem>>, vector<1x16x16x4xbf16>
    %11 = vector.shape_cast %10 : vector<1x16x16x4xbf16> to vector<256x4xbf16>
    %c0_21 = arith.constant 0 : index
    %c2_22 = arith.constant 2 : index
    %c0_23 = arith.constant 0 : index
    %c0_24 = arith.constant 0 : index
    %12 = vector.load %arg1[%c0_21, %c2_22, %c0_23, %c0_24] : memref<1x18x18x4xbf16, #tpu.memory_space<vmem>>, vector<1x16x16x4xbf16>
    %13 = vector.shape_cast %12 : vector<1x16x16x4xbf16> to vector<256x4xbf16>
    %c0_25 = arith.constant 0 : index
    %c2_26 = arith.constant 2 : index
    %c1_27 = arith.constant 1 : index
    %c0_28 = arith.constant 0 : index
    %14 = vector.load %arg1[%c0_25, %c2_26, %c1_27, %c0_28] : memref<1x18x18x4xbf16, #tpu.memory_space<vmem>>, vector<1x16x16x4xbf16>
    %15 = vector.shape_cast %14 : vector<1x16x16x4xbf16> to vector<256x4xbf16>
    %c0_29 = arith.constant 0 : index
    %c2_30 = arith.constant 2 : index
    %c2_31 = arith.constant 2 : index
    %c0_32 = arith.constant 0 : index
    %16 = vector.load %arg1[%c0_29, %c2_30, %c2_31, %c0_32] : memref<1x18x18x4xbf16, #tpu.memory_space<vmem>>, vector<1x16x16x4xbf16>
    %17 = vector.shape_cast %16 : vector<1x16x16x4xbf16> to vector<256x4xbf16>
    %18 = tpu.concatenate %1, %3, %5, %7, %9, %11, %13, %15, %17 in 1 : vector<256x4xbf16>, vector<256x4xbf16>, vector<256x4xbf16>, vector<256x4xbf16>, vector<256x4xbf16>, vector<256x4xbf16>, vector<256x4xbf16>, vector<256x4xbf16>, vector<256x4xbf16> -> vector<256x36xbf16>
    %c0_33 = arith.constant 0 : index
    %c0_34 = arith.constant 0 : index
    %19 = vector.load %arg2[%c0_33, %c0_34] : memref<36x128xbf16, #tpu.memory_space<vmem>>, vector<36x128xbf16>
    %cst = arith.constant dense<0.000000e+00> : vector<256x128xf32>
    %20 = tpu.matmul %18, %19, %cst {dimension_numbers = #tpu.dot_dimension_numbers<[1], [0], [0], [1], [0, 0, 1, 1], [], []>} : vector<256x36xbf16>, vector<36x128xbf16>, vector<256x128xf32> -> vector<256x128xf32>
    %c0_35 = arith.constant 0 : index
    %c0_36 = arith.constant 0 : index
    %21 = vector.load %arg3[%c0_35, %c0_36] : memref<1x128xf32, #tpu.memory_space<vmem>>, vector<1x128xf32>
    %22 = vector.broadcast %21 : vector<1x128xf32> to vector<256x128xf32>
    %23 = arith.addf %20, %22 : vector<256x128xf32>
    %cst_37 = arith.constant 0.000000e+00 : f32
    %24 = vector.broadcast %cst_37 : f32 to vector<256x128xf32>
    %25 = arith.maximumf %23, %24 : vector<256x128xf32>
    %26 = vector.shape_cast %25 : vector<256x128xf32> to vector<128x2x128xf32>
    %27 = vector.extract_strided_slice %26 {offsets = [0, 0, 0], sizes = [128, 1, 128], strides = [1, 1, 1]} : vector<128x2x128xf32> to vector<128x1x128xf32>
    %28 = vector.shape_cast %27 : vector<128x1x128xf32> to vector<128x128xf32>
    %29 = vector.extract_strided_slice %26 {offsets = [0, 1, 0], sizes = [128, 1, 128], strides = [1, 1, 1]} : vector<128x2x128xf32> to vector<128x1x128xf32>
    %30 = vector.shape_cast %29 : vector<128x1x128xf32> to vector<128x128xf32>
    %31 = arith.maximumf %28, %30 : vector<128x128xf32>
    %32 = vector.shape_cast %31 : vector<128x128xf32> to vector<8x2x8x128xf32>
    %33 = vector.extract_strided_slice %32 {offsets = [0, 0, 0, 0], sizes = [8, 1, 8, 128], strides = [1, 1, 1, 1]} : vector<8x2x8x128xf32> to vector<8x1x8x128xf32>
    %34 = vector.shape_cast %33 : vector<8x1x8x128xf32> to vector<8x8x128xf32>
    %35 = vector.extract_strided_slice %32 {offsets = [0, 1, 0, 0], sizes = [8, 1, 8, 128], strides = [1, 1, 1, 1]} : vector<8x2x8x128xf32> to vector<8x1x8x128xf32>
    %36 = vector.shape_cast %35 : vector<8x1x8x128xf32> to vector<8x8x128xf32>
    %37 = arith.maximumf %34, %36 : vector<8x8x128xf32>
    %38 = vector.extract_strided_slice %37 {offsets = [0, 0, 0], sizes = [8, 8, 8], strides = [1, 1, 1]} : vector<8x8x128xf32> to vector<8x8x8xf32>
    %c0_38 = arith.constant 0 : index
    %c0_39 = arith.constant 0 : index
    %c0_40 = arith.constant 0 : index
    %39 = vector.load %arg4[%c0_38, %c0_39, %c0_40] : memref<8x8x8xf32, #tpu.memory_space<vmem>>, vector<8x8x8xf32>
    tpu.vector_store %arg4[%c0_38, %c0_39, %c0_40], %38 {strides = array<i32>} : memref<8x8x8xf32, #tpu.memory_space<vmem>>, vector<8x8x8xf32>,
    return
  }
  func.func @transform_0(%arg0: i32) -> (i32, i32, i32, i32) {
    %c0_i32 = arith.constant 0 : i32
    %c0_i32_0 = arith.constant 0 : i32
    %c0_i32_1 = arith.constant 0 : i32
    %c0_i32_2 = arith.constant 0 : i32
    return %arg0, %c0_i32, %c0_i32_0, %c0_i32_1 : i32, i32, i32, i32
  }
  func.func @transform_1(%arg0: i32) -> (i32, i32) {
    %c0_i32 = arith.constant 0 : i32
    %c0_i32_0 = arith.constant 0 : i32
    %c0_i32_1 = arith.constant 0 : i32
    return %c0_i32, %c0_i32_0 : i32, i32
  }
  func.func @transform_2(%arg0: i32) -> (i32, i32) {
    %c0_i32 = arith.constant 0 : i32
    %c0_i32_0 = arith.constant 0 : i32
    %c0_i32_1 = arith.constant 0 : i32
    return %c0_i32, %c0_i32_0 : i32, i32
  }
  func.func @transform_3(%arg0: i32) -> (i32, i32, i32) {
    %c0_i32 = arith.constant 0 : i32
    %c0_i32_0 = arith.constant 0 : i32
    %c0_i32_1 = arith.constant 0 : i32
    return %arg0, %c0_i32, %c0_i32_0 : i32, i32, i32
  }
}

</mosaic_0001>

<bundles_post_ra>
// kernel: tpu_custom_call.1
= control target key start
LH: loop header
LB: loop body
LE: loop exit
PB: predicated region body
PF: predicated region fallthrough
CT: control target
= control target key end

     0   :  { %s5691_s12 = smov 0   ;;  %s7782_s0 = inlined_call_operand.vmem [shape: bf16[2,18,18,4], index: 0, kind: input, shape index: {}]   ;;  %s7783_s1 = inlined_call_operand.vmem [shape: bf16[36,128], index: 1, kind: input, shape index: {}]   ;;  %s7784_s2 = inlined_call_operand.vmem [shape: f32[1,128], index: 2, kind: input, shape index: {}]   ;;  %s7785_s3 = inlined_call_operand.vmem [shape: f32[16,8,8], index: 3, kind: output, shape index: {}]  }
   0x1 LB: > { %s5697_s13 = sadd.s32 4294967295, %s5660_s12   ;;  %p5017_p0 = scmp.ge.s32.totalorder %s5660_s12, 1  ;;  %s5660_s12 = sphi %s5691_s12, %s13_s12  }
   0x2   : > { %p137_p1 = scmp.lt.s32.totalorder %s5660_s12, 3 }
   0x4   : > { %p138_p2 = pnand %p5017_p0, %p137_p1 }
   0x5   : > { %p161_p3 = scmp.lt.s32.totalorder (!%p138_p2), %s5697_s13, 1  ;;  %s5662_s19 = smov (!%p138_p2), 12  }
   0x6   : > { %141 = sbr.rel (%p138_p2) target bundleno = 693 (0x2b5), region = 32  ;;  %s5663_s20 = smov (!%p138_p2), 8  }
   0x7   : > { %s5664_s21 = smov (!%p138_p2), 4   ;;  %s5665_s22 = smov (!%p138_p2), 16  }
   0x8   : > { %s5666_s23 = smov (!%p138_p2), 20   ;;  %s5667_s24 = smov (!%p138_p2), 24  }
   0x9   : > { %s5668_s25 = smov (!%p138_p2), 28   ;;  %s5669_s26 = smov (!%p138_p2), 32  }
   0xa   : > { %s5019_s8 = sshll.u32 (!%p138_p2), %s5697_s13, 3 }
   0xb   : > { %s162_s14 = scalar_select %p161_p3, %s5697_s13, 1  ;;  %vm672_vm0 = vcmask 1042432   ;;  %vm673_vm1 = vcmask 1046532   ;;  %vm221_vm3 = vsmask.f32 3328  ;;  %vm2741_vm6 = vcmask 31744  }
   0xc   : > { %vm5737_vm2 = vmor %vm672_vm0, %vm673_vm1  ;;  %vm222_vm4 = vsmask.f32 7440  ;;  %vm2790_vm7 = vcmask 64512   ;;  %vm2823_vm8 = vcmask 97280   ;;  %vm2856_vm9 = vcmask 130048   ;;  %p7551_p4 = scmp.lt.s32.totalorder %s5019_s8, 15 }
   0xd   : > { %s5556_s15 = smul.u32 216, %s162_s14  ;;  %vm5795_vm5 = vmor %vm221_vm3, %vm222_vm4  ;;  %vm2889_vm10 = vcmask 162816   ;;  %vm2922_vm11 = vcmask 195584   ;;  %vm2955_vm12 = vcmask 228352   ;;  %vm3081_vm13 = vcmask 1041408  }
   0xe   : > { %vm2988_vm14 = vcmask 261120   ;;  %vm3048_vm15 = vcmask 293888   ;;  %vm4878_vm0 = vcmask 1041409   ;;  %vm4880_vm1 = vcmask 1042434   ;;  %s7792_s8 = smov (!%p7551_p4, %s5019_s8), 15 }
   0xf   : > { %s5706_s18 = scalar_lea.vmem %s7782_s0, %s5556_s15  ;;  %vm4884_vm3 = vcmask 1044484   ;;  %vm4886_vm4 = vcmask 1045509   ;;  %s5020_s10 = sshll.u32 %s7792_s8, 3 }
  0x10   : > { %v5053_v0 = vld [vmem:[%s5706_s18 + $0x6c] sm:$0xf]  ;;  %v5710_v1 = vld [vmem:[%s5706_s18 + $0x70] sm:$0xf]  ;;  %v5723_v12 = vld [vmem:[%s5706_s18 + $0x64] sm:$0xf]  ;;  %s7575_s14 = scalar_lea.vmem %s7785_s3, %s5020_s10 }
  0x11   : > { %v5037_v2 = vld [vmem:[%s5706_s18 + $0xc] sm:$0xf]  ;;  %v1038_v3 = vshll.u32 %v5710_v1, 16  ;;  %v1042_v4 = vshrl.u32 %v5710_v1, 16  ;;  %v5253_v5 = vcombine.low %v5053_v0, %v5710_v1  ;;  %v1029_v6 = vshrl.u32 %v5053_v0, 16 }
  0x12   : > { %v5717_v7 = vld [vmem:[%s5706_s18 + $0x10] sm:$0xf]  ;;  %v1032_v8 = vshll.u32 %v5053_v0, 16  ;;  %v837_v15 = vshrl.u32 %v5037_v2, 16  ;;  %v840_v16 = vshll.u32 %v5037_v2, 16  ;;  %v733_v22 = vrot.slane %v5723_v12, 5 }
  0x13   : > { %v846_v9 = vshll.u32 %v5717_v7, 16  ;;  %v850_v10 = vshrl.u32 %v5717_v7, 16  ;;  %v5245_v11 = vcombine.low %v5037_v2, %v5717_v7  ;;  %v5725_v13 = vrot.slane %v1042_v4, 4  ;;  %2309 = vrot.lane.b32.xlu1 %v5253_v5, %s5662_s19  ;;  %v5729_v17 = vld [vmem:[%s5706_s18 + $0x68] sm:$0x1] }
  0x14   : > { %v1031_v14 = vrot.slane %v1029_v6, 4  ;;  %v1034_v18 = vrot.slane %v1032_v8, 5  ;;  %v616_v20 = vld [vmem:[%s5706_s18 + $0x60] sm:$0xe]  ;;  %v736_v23 = vrot.slane %v5729_v17, 5  ;;  %v839_v24 = vrot.slane %v837_v15, 4 }
  0x15   : > { %v5731_v19 = vrot.slane %v850_v10, 4  ;;  %2293 = vrot.lane.b32.xlu0 %v5245_v11, %s5662_s19  ;;  %v842_v25 = vrot.slane %v840_v16, 5  ;;  %v5029_v26 = vrot.slane %v616_v20, 9  ;;  %v5744_v27 = vld [vmem:[%s5706_s18 + $0x4] sm:$0xf]  ;;  %v426_v28 = vshll.u32 %v5723_v12, 16 }
  0x16   : > { %v1035_v29 = vor.u32 %v1034_v18, %v1031_v14  ;;  %v735_v30 = vrot.slane %v733_v22, 4  ;;  %v5748_v31 = vld [vmem:[%s5706_s18 + $0x8] sm:$0x1]  ;;  %v608_v32 = vld [vmem:[%s5706_s18] sm:$0xe]  ;;  %v677_v33 = vrot.slane %v5744_v27, 5 }
  0x17   : > { %v843_v34 = vor.u32 %v842_v25, %v839_v24  ;;  %v734_v35 = vsel %vm5737_vm2, %v5029_v26, %v733_v22  ;;  %v5021_v36 = vrot.slane %v608_v32, 9  ;;  %v680_v37 = vrot.slane %v5748_v31, 5  ;;  %v5756_v38 = vld [vmem:[%s5706_s18 + $0x70] sm:$0xf]  ;;  %v5759_v39 = vld [vmem:[%s5706_s18 + $0x74] sm:$0x1] }
  0x18   : > { %v5761_v40 = vrot.slane %v1035_v29, 4  ;;  %v737_v41 = vsel %vm5737_vm2, %v735_v30, %v736_v23  ;;  %v679_v42 = vrot.slane %v677_v33, 4  ;;  %v617_v43 = vld [vmem:[%s5706_s18 + $0x6c] sm:$0xe]  ;;  %v740_v44 = vrot.slane %v5756_v38, 5 }
  0x19   : > { %v5767_v45 = vrot.slane %v843_v34, 4  ;;  %v5237_v46 = vcombine.low %v734_v35, %v737_v41  ;;  %v678_v47 = vsel %vm5737_vm2, %v5021_v36, %v677_v33  ;;  %v5030_v48 = vrot.slane %v617_v43, 9  ;;  %v176_v49 = vld [vmem:[%s5706_s18 + $0x10] sm:$0xf]  ;;  %v206_v50 = vld [vmem:[%s5706_s18 + $0x14] sm:$0x1] }
  0x1a   : > { %v681_v51 = vsel %vm5737_vm2, %v679_v42, %v680_v37  ;;  %v742_v52 = vrot.slane %v740_v44, 4  ;;  %v743_v53 = vrot.slane %v5759_v39, 5  ;;  %v609_v54 = vld [vmem:[%s5706_s18 + $0xc] sm:$0xe]  ;;  %v684_v55 = vrot.slane %v176_v49, 5 }
  0x1b   : > { %2213 = vrot.lane.b32.xlu1 %v5237_v46, %s5663_s20  ;;  %v5229_v56 = vcombine.low %v678_v47, %v681_v51  ;;  %v741_v57 = vsel %vm5737_vm2, %v5030_v48, %v740_v44  ;;  %v5022_v58 = vrot.slane %v609_v54, 9  ;;  %v687_v59 = vrot.slane %v206_v50, 5  ;;  %v175_v60 = vld [vmem:[%s5706_s18 + $0xc] sm:$0xf]  ;;  %v173_v2 = vld [vmem:[%s5706_s18] sm:$0xf] }
  0x1c   : > { %v744_v61 = vsel %vm5737_vm2, %v742_v52, %v743_v53  ;;  %v686_v62 = vrot.slane %v684_v55, 4  ;;  %v249_v63 = vshrl.u32 %v175_v60, 16  ;;  %v252_v0 = vshll.u32 %v175_v60, 16  ;;  %v191_v23 = vld [vmem:[%s5706_s18 + $0x6c] sm:$0xf] }
  0x1d   : > { %2197 = vrot.lane.b32.xlu0 %v5229_v56, %s5663_s20  ;;  %v5238_v4 = vcombine.low %v741_v57, %v744_v61  ;;  %v685_v5 = vsel %vm5737_vm2, %v5022_v58, %v684_v55  ;;  %v258_v6 = vshll.u32 %v176_v49, 16  ;;  %v262_v8 = vshrl.u32 %v176_v49, 16  ;;  %v189_v52 = vld [vmem:[%s5706_s18 + $0x60] sm:$0xf]  ;;  %v5643_v21 = vld [vmem:[%s5706_s18 + $0x30] sm:$0xf] }
  0x1e   : > { %v688_v10 = vsel %vm5737_vm2, %v686_v62, %v687_v59  ;;  %v251_v11 = vrot.slane %v249_v63, 4  ;;  %v254_v14 = vrot.slane %v252_v0, 5  ;;  %v268_v15 = vshll.u32 %v206_v50, 16 }
  0x1f   : > { %2215 = vrot.lane.b32.xlu1 %v5238_v4, %s5663_s20  ;;  %v5230_v16 = vcombine.low %v685_v5, %v688_v10  ;;  %v260_v18 = vrot.slane %v258_v6, 5  ;;  %v264_v20 = vrot.slane %v262_v8, 4  ;;  %v225_v22 = vshrl.u32 %v173_v2, 16  ;;  %v5055_v4 = vld [vmem:[%s5706_s18 + $0x78] sm:$0xf] }
  0x20   : > { %v255_v24 = vor.u32 %v254_v14, %v251_v11  ;;  %v270_v25 = vrot.slane %v268_v15, 5  ;;  %v228_v26 = vshll.u32 %v173_v2, 16  ;;  %v234_v29 = vshll.u32 %v5744_v27, 16  ;;  %v5818_v10 = vld [vmem:[%s5706_s18 + $0x7c] sm:$0xf] }
  0x21   : > { %2199 = vrot.lane.b32.xlu0 %v5230_v16, %s5663_s20  ;;  %v265_v32 = vor.u32 %v264_v20, %v260_v18  ;;  %v227_v33 = vrot.slane %v225_v22, 4  ;;  %v238_v34 = vshrl.u32 %v5744_v27, 16  ;;  %v244_v35 = vshll.u32 %v5748_v31, 16 }
  0x22   : > { %v256_v36 = vrot.slane %v255_v24, 4  ;;  %v230_v37 = vrot.slane %v228_v26, 5  ;;  %v236_v41 = vrot.slane %v234_v29, 5  ;;  %v441_v42 = vshrl.u32 %v191_v23, 16 }
  0x23   : > { %v266_v43 = vrot.slane %v265_v32, 4  ;;  %v240_v44 = vrot.slane %v238_v34, 4  ;;  %v246_v46 = vrot.slane %v244_v35, 5  ;;  %v444_v47 = vshll.u32 %v191_v23, 16  ;;  %v5825_v23 = vld [vmem:[%s5706_s18 + $0x18] sm:$0xf] }
  0x24   : > { %v261_v48 = vsel %vm5795_vm5, %v256_v36, %v260_v18  ;;  %v231_v49 = vor.u32 %v230_v37, %v227_v33  ;;  %v443_v50 = vrot.slane %v441_v42, 4  ;;  %v450_v51 = vshll.u32 %v5756_v38, 16  ;;  %v5836_v35 = vld [vmem:[%s5706_s18 + $0x74] sm:$0x1] }
  0x25   : > { %v271_v27 = vsel %vm5795_vm5, %v266_v43, %v270_v25  ;;  %v241_v31 = vor.u32 %v240_v44, %v236_v41  ;;  %v446_v53 = vrot.slane %v444_v47, 5  ;;  %v454_v54 = vshrl.u32 %v5756_v38, 16 }
  0x26   : > { %v5214_v55 = vcombine.low %v261_v48, %v271_v27  ;;  %v232_v56 = vrot.slane %v231_v49, 4  ;;  %v452_v57 = vrot.slane %v450_v51, 5  ;;  %v460_v58 = vshll.u32 %v5759_v39, 16  ;;  %v5846_v48 = vld [vmem:[%s5706_s18 + $0x14] sm:$0x1] }
  0x27   : > { %v242_v59 = vrot.slane %v241_v31, 4  ;;  %v447_v60 = vor.u32 %v446_v53, %v443_v50  ;;  %v456_v61 = vrot.slane %v454_v54, 4  ;;  %v417_v62 = vshrl.u32 %v189_v52, 16 }
  0x28   : > { %2119 = vrot.lane.b32.xlu1 %v5214_v55, %s5664_s21  ;;  %v237_v63 = vsel %vm5795_vm5, %v232_v56, %v236_v41  ;;  %v462_v0 = vrot.slane %v460_v58, 5  ;;  %v420_v2 = vshll.u32 %v189_v52, 16  ;;  %v428_v38 = vrot.slane %v426_v28, 5 }
  0x29   : > { %v247_v39 = vsel %vm5795_vm5, %v242_v59, %v246_v46  ;;  %v448_v5 = vrot.slane %v447_v60, 4  ;;  %v457_v6 = vor.u32 %v456_v61, %v452_v57  ;;  %v419_v8 = vrot.slane %v417_v62, 4 }
  0x2a   : > { %v5213_v11 = vcombine.low %v237_v63, %v247_v39  ;;  %v422_v14 = vrot.slane %v420_v2, 5  ;;  %v430_v15 = vshrl.u32 %v5723_v12, 16  ;;  %v436_v16 = vshll.u32 %v5729_v17, 16  ;;  %v5830_v12 = vld [vmem:[%s5706_s18 + $0x1c] sm:$0xf] }
  0x2b   : > { %v453_v28 = vsel %vm5795_vm5, %v448_v5, %v452_v57  ;;  %v458_v18 = vrot.slane %v457_v6, 4  ;;  %v1053_v20 = vshrl.u32 %v5055_v4, 16  ;;  %v1056_v22 = vshll.u32 %v5055_v4, 16  ;;  %v5862_v57 = vld [vmem:[%s5706_s18 + $0x80] sm:$0x1] }
  0x2c   : > { %2117 = vrot.lane.b32.xlu0 %v5213_v11, %s5664_s21  ;;  %v423_v24 = vor.u32 %v422_v14, %v419_v8  ;;  %v432_v25 = vrot.slane %v430_v15, 4  ;;  %v438_v26 = vrot.slane %v436_v16, 5  ;;  %v1066_v29 = vshrl.u32 %v5818_v10, 16  ;;  %v5093_v8 = vld [vmem:[%s5706_s18 + $0x6c] sm:$0xe] }
  0x2d   : > { %v463_v17 = vsel %vm5795_vm5, %v458_v18, %v462_v0  ;;  %v1055_v32 = vrot.slane %v1053_v20, 4  ;;  %v1058_v33 = vrot.slane %v1056_v22, 5  ;;  %v5254_v34 = vcombine.low %v5055_v4, %v5818_v10  ;;  %v5871_v0 = vld [vmem:[%s5706_s18 + $0x20] sm:$0x1] }
  0x2e   : > { %v5222_v36 = vcombine.low %v453_v28, %v463_v17  ;;  %v424_v37 = vrot.slane %v423_v24, 4  ;;  %v433_v41 = vor.u32 %v432_v25, %v428_v38  ;;  %v861_v42 = vshrl.u32 %v5825_v23, 16  ;;  %v5085_v28 = vld [vmem:[%s5706_s18 + $0xc] sm:$0xe]  ;;  %v5094_v17 = vld [vmem:[%s5706_s18 + $0x78] sm:$0xe] }
  0x2f   : > { %v864_v43 = vshll.u32 %v5825_v23, 16  ;;  %v874_v44 = vshrl.u32 %v5830_v12, 16  ;;  %v5246_v46 = vcombine.low %v5825_v23, %v5830_v12  ;;  %v1040_v47 = vrot.slane %v1038_v3, 5 }
  0x30   : > { %2135 = vrot.lane.b32.xlu1 %v5222_v36, %s5664_s21  ;;  %v429_v49 = vsel %vm5795_vm5, %v424_v37, %v428_v38  ;;  %v434_v50 = vrot.slane %v433_v41, 4  ;;  %v863_v51 = vrot.slane %v861_v42, 4  ;;  %v1048_v52 = vshll.u32 %v5836_v35, 16 }
  0x31   : > { %v866_v27 = vrot.slane %v864_v43, 5  ;;  %v1041_v31 = vsel %vm5795_vm5, %v5761_v40, %v1040_v47  ;;  %v1045_v53 = vor.u32 %v5725_v13, %v1040_v47  ;;  %v848_v3 = vrot.slane %v846_v9, 5  ;;  %v5086_v47 = vld [vmem:[%s5706_s18 + $0x18] sm:$0xe] }
  0x32   : > { %v439_v54 = vsel %vm5795_vm5, %v434_v50, %v438_v26  ;;  %v1050_v55 = vrot.slane %v1048_v52, 5  ;;  %v856_v56 = vshll.u32 %v5846_v48, 16  ;;  %v1059_v58 = vor.u32 %v1058_v33, %v1055_v32 }
  0x33   : > { %v5221_v59 = vcombine.low %v429_v49, %v439_v54  ;;  %v1046_v60 = vrot.slane %v1045_v53, 4  ;;  %v849_v40 = vsel %vm5795_vm5, %v5767_v45, %v848_v3  ;;  %v853_v13 = vor.u32 %v5731_v19, %v848_v3  ;;  %v5913_v53 = vld [vmem:[%s5706_s18 + $0x7c] sm:$0xf] }
  0x34   : > { %2311 = vrot.lane.b32.xlu1 %v5254_v34, %s5662_s19  ;;  %v858_v9 = vrot.slane %v856_v56, 5  ;;  %v1060_v61 = vrot.slane %v1059_v58, 4  ;;  %v1062_v62 = vshll.u32 %v5818_v10, 16  ;;  %v1068_v63 = vrot.slane %v1066_v29, 4  ;;  %v5920_v58 = vld [vmem:[%s5706_s18 + $0x18] sm:$0xf] }
  0x35   : > { %2133 = vrot.lane.b32.xlu0 %v5221_v59, %s5664_s21  ;;  %v1051_v2 = vsel %vm5795_vm5, %v1046_v60, %v1050_v55  ;;  %v854_v38 = vrot.slane %v853_v13, 4  ;;  %v1072_v45 = vshll.u32 %v5862_v57, 16  ;;  %v867_v19 = vor.u32 %v866_v27, %v863_v51  ;;  %v5906_v51 = vld [vmem:[%s5706_s18 + $0x78] sm:$0xf] }
  0x36   : > { %v5269_v4 = vcombine.low %v1041_v31, %v1051_v2  ;;  %v1064_v39 = vrot.slane %v1062_v62, 5  ;;  %v870_v5 = vshll.u32 %v5830_v12, 16  ;;  %v876_v6 = vrot.slane %v874_v44, 4 }
  0x37   : > { %v859_v11 = vsel %vm5795_vm5, %v854_v38, %v858_v9  ;;  %v1074_v14 = vrot.slane %v1072_v45, 5  ;;  %v868_v15 = vrot.slane %v867_v19, 4  ;;  %v880_v16 = vshll.u32 %v5871_v0, 16  ;;  %v5926_v9 = vld [vmem:[%s5706_s18 + $0x1c] sm:$0xf] }
  0x38   : > { %2389 = vrot.lane.b32.xlu1 %v5269_v4, %s5665_s22  ;;  %v5261_v18 = vcombine.low %v849_v40, %v859_v11  ;;  %v1065_v20 = vsel %vm5795_vm5, %v1060_v61, %v1064_v39  ;;  %v1069_v22 = vor.u32 %v1068_v63, %v1064_v39  ;;  %v872_v23 = vrot.slane %v870_v5, 5  ;;  %v5941_v19 = vld [vmem:[%s5706_s18 + $0x88] sm:$0xf] }
  0x39   : > { %2295 = vrot.lane.b32.xlu0 %v5246_v46, %s5662_s19  ;;  %v882_v24 = vrot.slane %v880_v16, 5  ;;  %v5109_v25 = vrot.slane %v5093_v8, 9  ;;  %v1342_v26 = vrot.slane %v5710_v1, 5  ;;  %v1345_v29 = vrot.slane %v5836_v35, 5  ;;  %v5948_v8 = vld [vmem:[%s5706_s18 + $0x24] sm:$0xf] }
  0x3a   : > { %v1070_v32 = vrot.slane %v1069_v22, 4  ;;  %v873_v33 = vsel %vm5795_vm5, %v868_v15, %v872_v23  ;;  %v877_v34 = vor.u32 %v876_v6, %v872_v23  ;;  %v5101_v36 = vrot.slane %v5085_v28, 9  ;;  %v5957_v28 = vld [vmem:[%s5706_s18 + $0x28] sm:$0xf] }
  0x3b   : > { %v1343_v37 = vsel %vm5737_vm2, %v5109_v25, %v1342_v26  ;;  %v1344_v41 = vrot.slane %v1342_v26, 4  ;;  %v1286_v42 = vrot.slane %v5717_v7, 5  ;;  %v1289_v43 = vrot.slane %v5846_v48, 5 }
  0x3c   : > { %v1075_v1 = vsel %vm5795_vm5, %v1070_v32, %v1074_v14  ;;  %v878_v35 = vrot.slane %v877_v34, 4  ;;  %v5110_v44 = vrot.slane %v5094_v17, 9  ;;  %v1349_v46 = vrot.slane %v5818_v10, 5 }
  0x3d   : > { %2373 = vrot.lane.b32.xlu0 %v5261_v18, %s5665_s22  ;;  %v5270_v49 = vcombine.low %v1065_v20, %v1075_v1  ;;  %v1346_v50 = vsel %vm5737_vm2, %v1344_v41, %v1345_v29  ;;  %v1287_v7 = vsel %vm5737_vm2, %v5101_v36, %v1286_v42  ;;  %v1288_v48 = vrot.slane %v1286_v42, 4 }
  0x3e   : > { %v883_v52 = vsel %vm5795_vm5, %v878_v35, %v882_v24  ;;  %v5285_v27 = vcombine.low %v1343_v37, %v1346_v50  ;;  %v1350_v10 = vsel %vm5737_vm2, %v5110_v44, %v1349_v46  ;;  %v1351_v31 = vrot.slane %v1349_v46, 4  ;;  %v5962_v24 = vld [vmem:[%s5706_s18 + $0x80] sm:$0x1] }
  0x3f   : > { %2391 = vrot.lane.b32.xlu1 %v5270_v49, %s5665_s22  ;;  %v5262_v3 = vcombine.low %v873_v33, %v883_v52  ;;  %v1290_v54 = vsel %vm5737_vm2, %v1288_v48, %v1289_v43  ;;  %v1352_v55 = vrot.slane %v5862_v57, 5  ;;  %v5102_v56 = vrot.slane %v5086_v47, 9  ;;  %v5973_v37 = vld [vmem:[%s5706_s18 + $0x20] sm:$0x1] }
  0x40   : > { %v5277_v59 = vcombine.low %v1287_v7, %v1290_v54  ;;  %v1293_v60 = vrot.slane %v5830_v12, 5  ;;  %v1296_v40 = vrot.slane %v5871_v0, 5  ;;  %v1638_v13 = vshrl.u32 %v5906_v51, 16  ;;  %v5936_v12 = vld [vmem:[%s5706_s18 + $0x84] sm:$0xf] }
  0x41   : > { %2375 = vrot.lane.b32.xlu0 %v5262_v3, %s5665_s22  ;;  %v1353_v61 = vsel %vm5737_vm2, %v1351_v31, %v1352_v55  ;;  %v1641_v57 = vshll.u32 %v5906_v51, 16  ;;  %v1651_v62 = vshrl.u32 %v5913_v53, 16  ;;  %v5301_v63 = vcombine.low %v5906_v51, %v5913_v53 }
  0x42   : > { %v5286_v0 = vcombine.low %v1350_v10, %v1353_v61  ;;  %v1294_v2 = vsel %vm5737_vm2, %v5102_v56, %v1293_v60  ;;  %v1295_v38 = vrot.slane %v1293_v60, 4  ;;  %v1640_v45 = vrot.slane %v1638_v13, 4 }
  0x43   : > { %2469 = vrot.lane.b32.xlu1 %v5285_v27, %s5666_s23  ;;  %v1643_v4 = vrot.slane %v1641_v57, 5  ;;  %v1446_v39 = vshrl.u32 %v5920_v58, 16  ;;  %v1449_v5 = vshll.u32 %v5920_v58, 16  ;;  %v1459_v6 = vshrl.u32 %v5926_v9, 16  ;;  %v5982_v27 = vld [vmem:[%s5706_s18 + $0x8c] sm:$0x1] }
  0x44   : > { %v1297_v11 = vsel %vm5737_vm2, %v1295_v38, %v1296_v40  ;;  %v5293_v14 = vcombine.low %v5920_v58, %v5926_v9  ;;  %v1662_v15 = vshrl.u32 %v5936_v12, 16  ;;  %v1665_v16 = vshll.u32 %v5936_v12, 16  ;;  %v5992_v57 = vld [vmem:[%s5706_s18 + $0x2c] sm:$0x1] }
  0x45   : > { %2453 = vrot.lane.b32.xlu0 %v5277_v59, %s5666_s23  ;;  %v5278_v18 = vcombine.low %v1294_v2, %v1297_v11  ;;  %v1448_v20 = vrot.slane %v1446_v39, 4  ;;  %v1451_v22 = vrot.slane %v1449_v5, 5  ;;  %v1675_v23 = vshrl.u32 %v5941_v19, 16 }
  0x46   : > { %v1664_v25 = vrot.slane %v1662_v15, 4  ;;  %v1667_v26 = vrot.slane %v1665_v16, 5  ;;  %v5302_v29 = vcombine.low %v5936_v12, %v5941_v19  ;;  %v1470_v17 = vshrl.u32 %v5948_v8, 16  ;;  %v5165_v16 = vld [vmem:[%s5706_s18 + $0x18] sm:$0xe] }
  0x47   : > { %2471 = vrot.lane.b32.xlu1 %v5286_v0, %s5666_s23  ;;  %v1473_v32 = vshll.u32 %v5948_v8, 16  ;;  %v1483_v33 = vshrl.u32 %v5957_v28, 16  ;;  %v5294_v34 = vcombine.low %v5948_v8, %v5957_v28  ;;  %v1644_v36 = vor.u32 %v1643_v4, %v1640_v45  ;;  %v5173_v45 = vld [vmem:[%s5706_s18 + $0x78] sm:$0xe] }
  0x48   : > { %v1472_v41 = vrot.slane %v1470_v17, 4  ;;  %v1647_v42 = vshll.u32 %v5913_v53, 16  ;;  %v1653_v43 = vrot.slane %v1651_v62, 4  ;;  %v1657_v1 = vshll.u32 %v5962_v24, 16 }
  0x49   : > { %2455 = vrot.lane.b32.xlu0 %v5278_v18, %s5666_s23  ;;  %v1475_v35 = vrot.slane %v1473_v32, 5  ;;  %v1645_v44 = vrot.slane %v1644_v36, 4  ;;  %v1452_v46 = vor.u32 %v1451_v22, %v1448_v20  ;;  %v1455_v47 = vshll.u32 %v5926_v9, 16 }
  0x4a   : > { %v1649_v49 = vrot.slane %v1647_v42, 5  ;;  %v1659_v50 = vrot.slane %v1657_v1, 5  ;;  %v1461_v7 = vrot.slane %v1459_v6, 4  ;;  %v1465_v48 = vshll.u32 %v5973_v37, 16  ;;  %v6016_v42 = vld [vmem:[%s5706_s18 + $0x7c] sm:$0xf] }
  0x4b   : > { %2565 = vrot.lane.b32.xlu1 %v5301_v63, %s5667_s24  ;;  %v1453_v51 = vrot.slane %v1452_v46, 4  ;;  %v1457_v52 = vrot.slane %v1455_v47, 5  ;;  %v1668_v10 = vor.u32 %v1667_v26, %v1664_v25  ;;  %v1671_v31 = vshll.u32 %v5941_v19, 16  ;;  %v193_v25 = vld [vmem:[%s5706_s18 + $0x78] sm:$0xf] }
  0x4c   : > { %v1650_v3 = vsel %vm5795_vm5, %v1645_v44, %v1649_v49  ;;  %v1654_v54 = vor.u32 %v1653_v43, %v1649_v49  ;;  %v1467_v55 = vrot.slane %v1465_v48, 5  ;;  %v1677_v56 = vrot.slane %v1675_v23, 4  ;;  %v6027_v46 = vld [vmem:[%s5706_s18 + $0x80] sm:$0x1]  ;;  %v177_v49 = vld [vmem:[%s5706_s18 + $0x18] sm:$0xf] }
  0x4d   : > { %2549 = vrot.lane.b32.xlu0 %v5293_v14, %s5667_s24  ;;  %v1458_v58 = vsel %vm5795_vm5, %v1453_v51, %v1457_v52  ;;  %v1462_v59 = vor.u32 %v1461_v7, %v1457_v52  ;;  %v1669_v60 = vrot.slane %v1668_v10, 4  ;;  %v1673_v40 = vrot.slane %v1671_v31, 5  ;;  %v6035_v51 = vld [vmem:[%s5706_s18 + $0x1c] sm:$0xf] }
  0x4e   : > { %v1655_v13 = vrot.slane %v1654_v54, 4  ;;  %v1681_v61 = vshll.u32 %v5982_v27, 16  ;;  %v1476_v62 = vor.u32 %v1475_v35, %v1472_v41  ;;  %v1479_v63 = vshll.u32 %v5957_v28, 16  ;;  %v6041_v54 = vld [vmem:[%s5706_s18 + $0x20] sm:$0x1] }
  0x4f   : > { %2567 = vrot.lane.b32.xlu1 %v5302_v29, %s5667_s24  ;;  %v1463_v12 = vrot.slane %v1462_v59, 4  ;;  %v1674_v0 = vsel %vm5795_vm5, %v1669_v60, %v1673_v40  ;;  %v1678_v2 = vor.u32 %v1677_v56, %v1673_v40  ;;  %v1485_v38 = vrot.slane %v1483_v33, 4 }
  0x50   : > { %v1660_v4 = vsel %vm5795_vm5, %v1655_v13, %v1659_v50  ;;  %v1683_v39 = vrot.slane %v1681_v61, 5  ;;  %v1477_v5 = vrot.slane %v1476_v62, 4  ;;  %v1481_v6 = vrot.slane %v1479_v63, 5  ;;  %v5174_v62 = vld [vmem:[%s5706_s18 + $0x84] sm:$0xe] }
  0x51   : > { %2551 = vrot.lane.b32.xlu0 %v5294_v34, %s5667_s24  ;;  %v5317_v8 = vcombine.low %v1650_v3, %v1660_v4  ;;  %v1468_v11 = vsel %vm5795_vm5, %v1463_v12, %v1467_v55  ;;  %v1679_v14 = vrot.slane %v1678_v2, 4  ;;  %v1489_v15 = vshll.u32 %v5992_v57, 16 }
  0x52   : > { %v5309_v18 = vcombine.low %v1458_v58, %v1468_v11  ;;  %v1482_v20 = vsel %vm5795_vm5, %v1477_v5, %v1481_v6  ;;  %v1486_v22 = vor.u32 %v1485_v38, %v1481_v6  ;;  %v5189_v23 = vrot.slane %v5173_v45, 9  ;;  %v5166_v5 = vld [vmem:[%s5706_s18 + $0x24] sm:$0xe] }
  0x53   : > { %2645 = vrot.lane.b32.xlu1 %v5317_v8, %s5668_s25  ;;  %v1684_v26 = vsel %vm5795_vm5, %v1679_v14, %v1683_v39  ;;  %v1491_v29 = vrot.slane %v1489_v15, 5  ;;  %v1951_v17 = vrot.slane %v5913_v53, 5  ;;  %v1954_v32 = vrot.slane %v5962_v24, 5 }
  0x54   : > { %v5318_v33 = vcombine.low %v1674_v0, %v1684_v26  ;;  %v1487_v34 = vrot.slane %v1486_v22, 4  ;;  %v5181_v36 = vrot.slane %v5165_v16, 9  ;;  %v1895_v41 = vrot.slane %v5926_v9, 5  ;;  %v195_v22 = vld [vmem:[%s5706_s18 + $0x84] sm:$0xf] }
  0x55   : > { %2629 = vrot.lane.b32.xlu0 %v5309_v18, %s5668_s25  ;;  %v1952_v43 = vsel %vm5737_vm2, %v5189_v23, %v1951_v17  ;;  %v1953_v1 = vrot.slane %v1951_v17, 4  ;;  %v1898_v35 = vrot.slane %v5973_v37, 5  ;;  %v465_v53 = vshrl.u32 %v193_v25, 16 }
  0x56   : > { %v1492_v24 = vsel %vm5795_vm5, %v1487_v34, %v1491_v29  ;;  %v1896_v44 = vsel %vm5737_vm2, %v5181_v36, %v1895_v41  ;;  %v1897_v9 = vrot.slane %v1895_v41, 4  ;;  %v468_v47 = vshll.u32 %v193_v25, 16  ;;  %v6064_v34 = vld [vmem:[%s5706_s18 + $0x88] sm:$0xf] }
  0x57   : > { %2647 = vrot.lane.b32.xlu1 %v5318_v33, %s5668_s25  ;;  %v5310_v50 = vcombine.low %v1482_v20, %v1492_v24  ;;  %v1955_v7 = vsel %vm5737_vm2, %v1953_v1, %v1954_v32  ;;  %v467_v37 = vrot.slane %v465_v53, 4  ;;  %v474_v48 = vshll.u32 %v6016_v42, 16  ;;  %v179_v24 = vld [vmem:[%s5706_s18 + $0x24] sm:$0xf] }
  0x58   : > { %v5333_v52 = vcombine.low %v1952_v43, %v1955_v7  ;;  %v1899_v10 = vsel %vm5737_vm2, %v1897_v9, %v1898_v35  ;;  %v470_v31 = vrot.slane %v468_v47, 5  ;;  %v478_v3 = vshrl.u32 %v6016_v42, 16  ;;  %v6069_v43 = vld [vmem:[%s5706_s18 + $0x8c] sm:$0x1] }
  0x59   : > { %2631 = vrot.lane.b32.xlu0 %v5310_v50, %s5668_s25  ;;  %v5325_v55 = vcombine.low %v1896_v44, %v1899_v10  ;;  %v476_v56 = vrot.slane %v474_v48, 5  ;;  %v484_v58 = vshll.u32 %v6027_v46, 16  ;;  %v273_v59 = vshrl.u32 %v177_v49, 16  ;;  %v6081_v50 = vld [vmem:[%s5706_s18 + $0x28] sm:$0xf] }
  0x5a   : > { %v471_v60 = vor.u32 %v470_v31, %v467_v37  ;;  %v480_v40 = vrot.slane %v478_v3, 4  ;;  %v276_v13 = vshll.u32 %v177_v49, 16  ;;  %v282_v61 = vshll.u32 %v6035_v51, 16  ;;  %v6088_v10 = vld [vmem:[%s5706_s18 + $0x2c] sm:$0x1] }
  0x5b   : > { %2725 = vrot.lane.b32.xlu1 %v5333_v52, %s5669_s26  ;;  %v486_v63 = vrot.slane %v484_v58, 5  ;;  %v275_v12 = vrot.slane %v273_v59, 4  ;;  %v286_v0 = vshrl.u32 %v6035_v51, 16  ;;  %v292_v2 = vshll.u32 %v6041_v54, 16  ;;  %v618_v58 = vld [vmem:[%s5706_s18 + $0x78] sm:$0xe] }
  0x5c   : > { %v472_v38 = vrot.slane %v471_v60, 4  ;;  %v481_v45 = vor.u32 %v480_v40, %v476_v56  ;;  %v278_v4 = vrot.slane %v276_v13, 5  ;;  %v284_v39 = vrot.slane %v282_v61, 5 }
  0x5d   : > { %2709 = vrot.lane.b32.xlu0 %v5325_v55, %s5669_s26  ;;  %v288_v6 = vrot.slane %v286_v0, 4  ;;  %v294_v8 = vrot.slane %v292_v2, 5  ;;  %v5190_v11 = vrot.slane %v5174_v62, 9  ;;  %v1958_v14 = vrot.slane %v5941_v19, 5  ;;  %v610_v0 = vld [vmem:[%s5706_s18 + $0x18] sm:$0xe] }
  0x5e   : > { %v477_v15 = vsel %vm5795_vm5, %v472_v38, %v476_v56  ;;  %v482_v16 = vrot.slane %v481_v45, 4  ;;  %v279_v18 = vor.u32 %v278_v4, %v275_v12  ;;  %v1961_v20 = vrot.slane %v5982_v27, 5 }
  0x5f   : > { %v289_v23 = vor.u32 %v288_v6, %v284_v39  ;;  %v1959_v25 = vsel %vm5737_vm2, %v5190_v11, %v1958_v14  ;;  %v1960_v26 = vrot.slane %v1958_v14, 4  ;;  %v5182_v29 = vrot.slane %v5166_v5, 9 }
  0x60   : > { %v487_v17 = vsel %vm5795_vm5, %v482_v16, %v486_v63  ;;  %v280_v19 = vrot.slane %v279_v18, 4  ;;  %v1902_v32 = vrot.slane %v5957_v28, 5  ;;  %v1905_v33 = vrot.slane %v5992_v57, 5  ;;  %v619_v18 = vld [vmem:[%s5706_s18 + $0x84] sm:$0xe] }
  0x61   : > { %v5223_v27 = vcombine.low %v477_v15, %v487_v17  ;;  %v290_v36 = vrot.slane %v289_v23, 4  ;;  %v1962_v41 = vsel %vm5737_vm2, %v1960_v26, %v1961_v20  ;;  %v489_v1 = vshrl.u32 %v195_v22, 16 }
  0x62   : > { %v285_v35 = vsel %vm5795_vm5, %v280_v19, %v284_v39  ;;  %v5334_v53 = vcombine.low %v1959_v25, %v1962_v41  ;;  %v1903_v28 = vsel %vm5737_vm2, %v5182_v29, %v1902_v32  ;;  %v1904_v57 = vrot.slane %v1902_v32, 4 }
  0x63   : > { %2137 = vrot.lane.b32.xlu1 %v5223_v27, %s5664_s21  ;;  %v295_v44 = vsel %vm5795_vm5, %v290_v36, %v294_v8  ;;  %v491_v9 = vrot.slane %v489_v1, 4  ;;  %v492_v47 = vshll.u32 %v195_v22, 16  ;;  %v498_v49 = vshll.u32 %v6064_v34, 16 }
  0x64   : > { %v5215_v7 = vcombine.low %v285_v35, %v295_v44  ;;  %v1906_v37 = vsel %vm5737_vm2, %v1904_v57, %v1905_v33  ;;  %v502_v48 = vshrl.u32 %v6064_v34, 16  ;;  %v508_v52 = vshll.u32 %v6069_v43, 16 }
  0x65   : > { %v5326_v31 = vcombine.low %v1903_v28, %v1906_v37  ;;  %v494_v3 = vrot.slane %v492_v47, 5  ;;  %v500_v55 = vrot.slane %v498_v49, 5  ;;  %v297_v56 = vshrl.u32 %v179_v24, 16 }
  0x66   : > { %2121 = vrot.lane.b32.xlu0 %v5215_v7, %s5664_s21  ;;  %v504_v59 = vrot.slane %v502_v48, 4  ;;  %v510_v60 = vrot.slane %v508_v52, 5  ;;  %v300_v40 = vshll.u32 %v179_v24, 16  ;;  %v306_v13 = vshll.u32 %v6081_v50, 16  ;;  %v6125_v24 = vld [vmem:[%s5706_s18 + $0x88] sm:$0xf] }
  0x67   : > { %2727 = vrot.lane.b32.xlu1 %v5334_v53, %s5669_s26  ;;  %v495_v61 = vor.u32 %v494_v3, %v491_v9  ;;  %v299_v62 = vrot.slane %v297_v56, 4  ;;  %v310_v63 = vshrl.u32 %v6081_v50, 16  ;;  %v316_v12 = vshll.u32 %v6088_v10, 16  ;;  %v6132_v7 = vld [vmem:[%s5706_s18 + $0x24] sm:$0xf] }
  0x68   : > { %v505_v2 = vor.u32 %v504_v59, %v500_v55  ;;  %v302_v38 = vrot.slane %v300_v40, 5  ;;  %v308_v45 = vrot.slane %v306_v13, 5  ;;  %v5031_v4 = vrot.slane %v618_v58, 9  ;;  %v6143_v3 = vld [vmem:[%s5706_s18 + $0x28] sm:$0xf] }
  0x69   : > { %v496_v39 = vrot.slane %v495_v61, 4  ;;  %v312_v5 = vrot.slane %v310_v63, 4  ;;  %v318_v6 = vrot.slane %v316_v12, 5  ;;  %v747_v8 = vrot.slane %v6016_v42, 5  ;;  %v6153_v40 = vld [vmem:[%s5706_s18 + $0x94] sm:$0xf] }
  0x6a   : > { %2711 = vrot.lane.b32.xlu0 %v5326_v31, %s5669_s26  ;;  %v506_v11 = vrot.slane %v505_v2, 4  ;;  %v303_v14 = vor.u32 %v302_v38, %v299_v62  ;;  %v750_v15 = vrot.slane %v6027_v46, 5  ;;  %v5023_v16 = vrot.slane %v610_v0, 9  ;;  %v611_v46 = vld [vmem:[%s5706_s18 + $0x24] sm:$0xe] }
  0x6b   : > { %v501_v20 = vsel %vm5795_vm5, %v496_v39, %v500_v55  ;;  %v313_v22 = vor.u32 %v312_v5, %v308_v45  ;;  %v748_v23 = vsel %vm5737_vm2, %v5031_v4, %v747_v8  ;;  %v749_v25 = vrot.slane %v747_v8, 4  ;;  %v6159_v12 = vld [vmem:[%s5706_s18 + $0x30] sm:$0xf]  ;;  %v6162_v0 = vld [vmem:[%s5706_s18 + $0x34] sm:$0xf] }
  0x6c   : > { %v511_v42 = vsel %vm5795_vm5, %v506_v11, %v510_v60  ;;  %v304_v26 = vrot.slane %v303_v14, 4  ;;  %v691_v29 = vrot.slane %v6035_v51, 5  ;;  %v694_v17 = vrot.slane %v6041_v54, 5  ;;  %v6117_v51 = vld [vmem:[%s5706_s18 + $0x84] sm:$0xf] }
  0x6d   : > { %v5224_v19 = vcombine.low %v501_v20, %v511_v42  ;;  %v314_v32 = vrot.slane %v313_v22, 4  ;;  %v751_v33 = vsel %vm5737_vm2, %v749_v25, %v750_v15  ;;  %v5032_v27 = vrot.slane %v619_v18, 9  ;;  %v5059_v60 = vld [vmem:[%s5706_s18 + $0x90] sm:$0xf]  ;;  %v6175_v18 = vld [vmem:[%s5706_s18 + $0x8c] sm:$0x1] }
  0x6e   : > { %v309_v36 = vsel %vm5795_vm5, %v304_v26, %v308_v45  ;;  %v5239_v41 = vcombine.low %v748_v23, %v751_v33  ;;  %v692_v1 = vsel %vm5737_vm2, %v5023_v16, %v691_v29  ;;  %v693_v35 = vrot.slane %v691_v29, 4  ;;  %v6180_v42 = vld [vmem:[%s5706_s18 + $0x2c] sm:$0x1] }
  0x6f   : > { %2139 = vrot.lane.b32.xlu1 %v5224_v19, %s5664_s21  ;;  %v319_v54 = vsel %vm5795_vm5, %v314_v32, %v318_v6  ;;  %v754_v53 = vrot.slane %v6064_v34, 5  ;;  %v757_v28 = vrot.slane %v6069_v43, 5  ;;  %v5024_v57 = vrot.slane %v611_v46, 9 }
  0x70   : > { %v5216_v44 = vcombine.low %v309_v36, %v319_v54  ;;  %v695_v9 = vsel %vm5737_vm2, %v693_v35, %v694_v17  ;;  %v698_v47 = vrot.slane %v6081_v50, 5  ;;  %v701_v49 = vrot.slane %v6088_v10, 5 }
  0x71   : > { %v5231_v37 = vcombine.low %v692_v1, %v695_v9  ;;  %v755_v34 = vsel %vm5737_vm2, %v5032_v27, %v754_v53  ;;  %v756_v43 = vrot.slane %v754_v53, 4  ;;  %v1077_v48 = vshrl.u32 %v6117_v51, 16 }
  0x72   : > { %2123 = vrot.lane.b32.xlu0 %v5216_v44, %s5664_s21  ;;  %v699_v52 = vsel %vm5737_vm2, %v5024_v57, %v698_v47  ;;  %v700_v50 = vrot.slane %v698_v47, 4  ;;  %v1080_v10 = vshll.u32 %v6117_v51, 16  ;;  %v1090_v31 = vshrl.u32 %v6125_v24, 16 }
  0x73   : > { %2217 = vrot.lane.b32.xlu1 %v5239_v41, %s5663_s20  ;;  %v758_v55 = vsel %vm5737_vm2, %v756_v43, %v757_v28  ;;  %v1079_v56 = vrot.slane %v1077_v48, 4  ;;  %v5255_v58 = vcombine.low %v6117_v51, %v6125_v24  ;;  %v885_v59 = vshrl.u32 %v6132_v7, 16  ;;  %v6189_v28 = vld [vmem:[%s5706_s18 + $0x98] sm:$0x1] }
  0x74   : > { %v5240_v13 = vcombine.low %v755_v34, %v758_v55  ;;  %v702_v61 = vsel %vm5737_vm2, %v700_v50, %v701_v49  ;;  %v1082_v62 = vrot.slane %v1080_v10, 5  ;;  %v888_v63 = vshll.u32 %v6132_v7, 16  ;;  %v6200_v50 = vld [vmem:[%s5706_s18 + $0x38] sm:$0x1] }
  0x75   : > { %v5232_v2 = vcombine.low %v699_v52, %v702_v61  ;;  %v887_v38 = vrot.slane %v885_v59, 4  ;;  %v898_v45 = vshrl.u32 %v6143_v3, 16  ;;  %v5247_v4 = vcombine.low %v6132_v7, %v6143_v3 }
  0x76   : > { %2201 = vrot.lane.b32.xlu0 %v5231_v37, %s5663_s20  ;;  %v890_v39 = vrot.slane %v888_v63, 5  ;;  %v1101_v5 = vshrl.u32 %v5059_v60, 16  ;;  %v1104_v6 = vshll.u32 %v5059_v60, 16  ;;  %v1114_v8 = vshrl.u32 %v6153_v40, 16 }
  0x77   : > { %2219 = vrot.lane.b32.xlu1 %v5240_v13, %s5663_s20  ;;  %v5256_v11 = vcombine.low %v5059_v60, %v6153_v40  ;;  %v909_v14 = vshrl.u32 %v6159_v12, 16  ;;  %v912_v15 = vshll.u32 %v6159_v12, 16  ;;  %v922_v16 = vshrl.u32 %v6162_v0, 16  ;;  %v5095_v60 = vld [vmem:[%s5706_s18 + $0x84] sm:$0xe] }
  0x78   : > { %v1103_v20 = vrot.slane %v1101_v5, 4  ;;  %v1106_v22 = vrot.slane %v1104_v6, 5  ;;  %v5248_v23 = vcombine.low %v6159_v12, %v6162_v0  ;;  %v1083_v25 = vor.u32 %v1082_v62, %v1079_v56 }
  0x79   : > { %v911_v26 = vrot.slane %v909_v14, 4  ;;  %v914_v29 = vrot.slane %v912_v15, 5  ;;  %v1086_v17 = vshll.u32 %v6125_v24, 16  ;;  %v1092_v46 = vrot.slane %v1090_v31, 4 }
  0x7a   : > { %2203 = vrot.lane.b32.xlu0 %v5232_v2, %s5663_s20  ;;  %v1084_v19 = vrot.slane %v1083_v25, 4  ;;  %v1096_v32 = vshll.u32 %v6175_v18, 16  ;;  %v891_v33 = vor.u32 %v890_v39, %v887_v38  ;;  %v894_v27 = vshll.u32 %v6143_v3, 16 }
  0x7b   : > { %2313 = vrot.lane.b32.xlu1 %v5255_v58, %s5662_s19  ;;  %v1088_v36 = vrot.slane %v1086_v17, 5  ;;  %v900_v41 = vrot.slane %v898_v45, 4  ;;  %v904_v1 = vshll.u32 %v6180_v42, 16  ;;  %v1107_v35 = vor.u32 %v1106_v22, %v1103_v20 }
  0x7c   : > { %v1098_v51 = vrot.slane %v1096_v32, 5  ;;  %v892_v54 = vrot.slane %v891_v33, 4  ;;  %v896_v53 = vrot.slane %v894_v27, 5  ;;  %v1110_v57 = vshll.u32 %v6153_v40, 16  ;;  %v6233_v27 = vld [vmem:[%s5706_s18 + $0x90] sm:$0xf] }
  0x7d   : > { %v1089_v44 = vsel %vm5795_vm5, %v1084_v19, %v1088_v36  ;;  %v1093_v9 = vor.u32 %v1092_v46, %v1088_v36  ;;  %v906_v47 = vrot.slane %v904_v1, 5  ;;  %v1108_v49 = vrot.slane %v1107_v35, 4  ;;  %v6240_v35 = vld [vmem:[%s5706_s18 + $0x94] sm:$0xf] }
  0x7e   : > { %2297 = vrot.lane.b32.xlu0 %v5247_v4, %s5662_s19  ;;  %v897_v7 = vsel %vm5795_vm5, %v892_v54, %v896_v53  ;;  %v901_v37 = vor.u32 %v900_v41, %v896_v53  ;;  %v1112_v34 = vrot.slane %v1110_v57, 5  ;;  %v1116_v43 = vrot.slane %v1114_v8, 4  ;;  %v5087_v4 = vld [vmem:[%s5706_s18 + $0x24] sm:$0xe]  ;;  %v6247_v57 = vld [vmem:[%s5706_s18 + $0x30] sm:$0xf] }
  0x7f   : > { %2315 = vrot.lane.b32.xlu1 %v5256_v11, %s5662_s19  ;;  %v1094_v48 = vrot.slane %v1093_v9, 4  ;;  %v1120_v52 = vshll.u32 %v6189_v28, 16  ;;  %v915_v10 = vor.u32 %v914_v29, %v911_v26  ;;  %v918_v31 = vshll.u32 %v6162_v0, 16  ;;  %v5096_v11 = vld [vmem:[%s5706_s18 + $0x90] sm:$0xe] }
  0x80   : > { %v902_v55 = vrot.slane %v901_v37, 4  ;;  %v1113_v56 = vsel %vm5795_vm5, %v1108_v49, %v1112_v34  ;;  %v1117_v58 = vor.u32 %v1116_v43, %v1112_v34  ;;  %v924_v59 = vrot.slane %v922_v16, 4  ;;  %v5088_v29 = vld [vmem:[%s5706_s18 + $0x30] sm:$0xe]  ;;  %v6254_v49 = vld [vmem:[%s5706_s18 + $0x34] sm:$0xf] }
  0x81   : > { %v1099_v13 = vsel %vm5795_vm5, %v1094_v48, %v1098_v51  ;;  %v1122_v61 = vrot.slane %v1120_v52, 5  ;;  %v916_v62 = vrot.slane %v915_v10, 4  ;;  %v920_v63 = vrot.slane %v918_v31, 5 }
  0x82   : > { %2299 = vrot.lane.b32.xlu0 %v5248_v23, %s5662_s19  ;;  %v5271_v12 = vcombine.low %v1089_v44, %v1099_v13  ;;  %v907_v2 = vsel %vm5795_vm5, %v902_v55, %v906_v47  ;;  %v1118_v38 = vrot.slane %v1117_v58, 4  ;;  %v928_v45 = vshll.u32 %v6200_v50, 16  ;;  %v6271_v55 = vld [vmem:[%s5706_s18 + $0xa0] sm:$0xf]  ;;  %v6277_v13 = vld [vmem:[%s5706_s18 + $0x3c] sm:$0xf] }
  0x83   : > { %v5263_v39 = vcombine.low %v897_v7, %v907_v2  ;;  %v921_v5 = vsel %vm5795_vm5, %v916_v62, %v920_v63  ;;  %v925_v6 = vor.u32 %v924_v59, %v920_v63  ;;  %v5111_v8 = vrot.slane %v5095_v60, 9  ;;  %v6287_v2 = vld [vmem:[%s5706_s18 + $0x40] sm:$0xf] }
  0x84   : > { %2393 = vrot.lane.b32.xlu1 %v5271_v12, %s5665_s22  ;;  %v1123_v14 = vsel %vm5795_vm5, %v1118_v38, %v1122_v61  ;;  %v930_v15 = vrot.slane %v928_v45, 5  ;;  %v1356_v16 = vrot.slane %v6125_v24, 5  ;;  %v1359_v20 = vrot.slane %v6175_v18, 5 }
  0x85   : > { %v5272_v22 = vcombine.low %v1113_v56, %v1123_v14  ;;  %v926_v23 = vrot.slane %v925_v6, 4  ;;  %v5103_v25 = vrot.slane %v5087_v4, 9  ;;  %v1300_v26 = vrot.slane %v6143_v3, 5  ;;  %v6256_v7 = vpop.permute.xlu1 %2309 }
  0x86   : > { %2377 = vrot.lane.b32.xlu0 %v5263_v39, %s5665_s22  ;;  %v1357_v17 = vsel %vm5737_vm2, %v5111_v8, %v1356_v16  ;;  %v1358_v46 = vrot.slane %v1356_v16, 4  ;;  %v1303_v19 = vrot.slane %v6180_v42, 5  ;;  %v5112_v32 = vrot.slane %v5096_v11, 9 }
  0x87   : > { %v931_v24 = vsel %vm5795_vm5, %v926_v23, %v930_v15  ;;  %v1301_v18 = vsel %vm5737_vm2, %v5103_v25, %v1300_v26  ;;  %v1302_v33 = vrot.slane %v1300_v26, 4  ;;  %v1363_v3 = vrot.slane %v6153_v40, 5  ;;  %v6293_v6 = vpop.permute.xlu0 %2293  ;;  %v6306_v26 = vld [vmem:[%s5706_s18 + $0x38] sm:$0x1] }
  0x88   : > { %2395 = vrot.lane.b32.xlu1 %v5272_v22, %s5665_s22  ;;  %v5264_v36 = vcombine.low %v921_v5, %v931_v24  ;;  %v1360_v42 = vsel %vm5737_vm2, %v1358_v46, %v1359_v20  ;;  %v1366_v41 = vrot.slane %v6189_v28, 5  ;;  %v5104_v1 = vrot.slane %v5088_v29, 9  ;;  %v6291_v5 = vld [vmem:[%s5706_s18 + $0x98] sm:$0x1] }
  0x89   : > { %v5287_v51 = vcombine.low %v1357_v17, %v1360_v42  ;;  %v1304_v54 = vsel %vm5737_vm2, %v1302_v33, %v1303_v19  ;;  %v1364_v40 = vsel %vm5737_vm2, %v5112_v32, %v1363_v3  ;;  %v1365_v53 = vrot.slane %v1363_v3, 4 }
  0x8a   : > { %2379 = vrot.lane.b32.xlu0 %v5264_v36, %s5665_s22  ;;  %v5279_v44 = vcombine.low %v1301_v18, %v1304_v54  ;;  %v1307_v28 = vrot.slane %v6162_v0, 5  ;;  %v1310_v9 = vrot.slane %v6200_v50, 5  ;;  %v1686_v47 = vshrl.u32 %v6233_v27, 16  ;;  %v6265_v0 = vld [vmem:[%s5706_s18 + $0x9c] sm:$0xf] }
  0x8b   : > { %v1367_v37 = vsel %vm5737_vm2, %v1365_v53, %v1366_v41  ;;  %v1689_v34 = vshll.u32 %v6233_v27, 16  ;;  %v1699_v43 = vshrl.u32 %v6240_v35, 16  ;;  %v5303_v48 = vcombine.low %v6233_v27, %v6240_v35 }
  0x8c   : > { %2473 = vrot.lane.b32.xlu1 %v5287_v51, %s5666_s23  ;;  %v5288_v52 = vcombine.low %v1364_v40, %v1367_v37  ;;  %v1308_v50 = vsel %vm5737_vm2, %v5104_v1, %v1307_v28  ;;  %v1309_v10 = vrot.slane %v1307_v28, 4  ;;  %v1688_v31 = vrot.slane %v1686_v47, 4  ;;  %v6315_v51 = vld [vmem:[%s5706_s18 + $0xa4] sm:$0x1] }
  0x8d   : > { %v1691_v56 = vrot.slane %v1689_v34, 5  ;;  %v1494_v58 = vshrl.u32 %v6247_v57, 16  ;;  %v1497_v59 = vshll.u32 %v6247_v57, 16  ;;  %v1507_v60 = vshrl.u32 %v6254_v49, 16  ;;  %v6299_v16 = vpop.permute.xlu1 %2213 }
  0x8e   : > { %2457 = vrot.lane.b32.xlu0 %v5279_v44, %s5666_s23  ;;  %v1311_v61 = vsel %vm5737_vm2, %v1309_v10, %v1310_v9  ;;  %v5295_v62 = vcombine.low %v6247_v57, %v6254_v49  ;;  %v1710_v63 = vshrl.u32 %v6265_v0, 16  ;;  %v1713_v12 = vshll.u32 %v6265_v0, 16 }
  0x8f   : > { %v5280_v38 = vcombine.low %v1308_v50, %v1311_v61  ;;  %v1496_v45 = vrot.slane %v1494_v58, 4  ;;  %v1499_v4 = vrot.slane %v1497_v59, 5  ;;  %v1723_v39 = vshrl.u32 %v6271_v55, 16  ;;  %v6318_v53 = vpop.permute.xlu0 %2197  ;;  %v6330_v50 = vld [vmem:[%s5706_s18 + $0x44] sm:$0x1] }
  0x90   : > { %2475 = vrot.lane.b32.xlu1 %v5288_v52, %s5666_s23  ;;  %v1712_v8 = vrot.slane %v1710_v63, 4  ;;  %v1715_v11 = vrot.slane %v1713_v12, 5  ;;  %v5304_v14 = vcombine.low %v6265_v0, %v6271_v55  ;;  %v1518_v15 = vshrl.u32 %v6277_v13, 16 }
  0x91   : > { %v1521_v20 = vshll.u32 %v6277_v13, 16  ;;  %v1531_v22 = vshrl.u32 %v6287_v2, 16  ;;  %v5296_v23 = vcombine.low %v6277_v13, %v6287_v2  ;;  %v1692_v25 = vor.u32 %v1691_v56, %v1688_v31  ;;  %v6323_v47 = vpop.permute.xlu1 %2215  ;;  %v5175_v13 = vld [vmem:[%s5706_s18 + $0x90] sm:$0xe] }
  0x92   : > { %2459 = vrot.lane.b32.xlu0 %v5280_v38, %s5666_s23  ;;  %v1520_v29 = vrot.slane %v1518_v15, 4  ;;  %v1695_v17 = vshll.u32 %v6240_v35, 16  ;;  %v1701_v46 = vrot.slane %v1699_v43, 4  ;;  %v1705_v19 = vshll.u32 %v6291_v5, 16 }
  0x93   : > { %v1523_v32 = vrot.slane %v1521_v20, 5  ;;  %v1693_v24 = vrot.slane %v1692_v25, 4  ;;  %v1500_v18 = vor.u32 %v1499_v4, %v1496_v45  ;;  %v1503_v33 = vshll.u32 %v6254_v49, 16 }
  0x94   : > { %2569 = vrot.lane.b32.xlu1 %v5303_v48, %s5667_s24  ;;  %v1697_v3 = vrot.slane %v1695_v17, 5  ;;  %v1707_v27 = vrot.slane %v1705_v19, 5  ;;  %v1509_v36 = vrot.slane %v1507_v60, 4  ;;  %v1513_v42 = vshll.u32 %v6306_v26, 16 }
  0x95   : > { %v1501_v41 = vrot.slane %v1500_v18, 4  ;;  %v1505_v1 = vrot.slane %v1503_v33, 5  ;;  %v1716_v54 = vor.u32 %v1715_v11, %v1712_v8  ;;  %v1719_v40 = vshll.u32 %v6271_v55, 16  ;;  %v5167_v8 = vld [vmem:[%s5706_s18 + $0x30] sm:$0xe]  ;;  %v6343_v11 = vpop.permute.xlu0 %2199 }
  0x96   : > { %2553 = vrot.lane.b32.xlu0 %v5295_v62, %s5667_s24  ;;  %v1698_v57 = vsel %vm5795_vm5, %v1693_v24, %v1697_v3  ;;  %v1702_v44 = vor.u32 %v1701_v46, %v1697_v3  ;;  %v1515_v28 = vrot.slane %v1513_v42, 5  ;;  %v1725_v9 = vrot.slane %v1723_v39, 4  ;;  %v6358_v3 = vld [vmem:[%s5706_s18 + $0x94] sm:$0xf] }
  0x97   : > { %v1506_v37 = vsel %vm5795_vm5, %v1501_v41, %v1505_v1  ;;  %v1510_v34 = vor.u32 %v1509_v36, %v1505_v1  ;;  %v1717_v43 = vrot.slane %v1716_v54, 4  ;;  %v1721_v48 = vrot.slane %v1719_v40, 5  ;;  %v6368_v54 = vld [vmem:[%s5706_s18 + $0x98] sm:$0x1]  ;;  %v181_v40 = vld [vmem:[%s5706_s18 + $0x30] sm:$0xf] }
  0x98   : > { %2571 = vrot.lane.b32.xlu1 %v5304_v14, %s5667_s24  ;;  %v1703_v0 = vrot.slane %v1702_v44, 4  ;;  %v1729_v52 = vshll.u32 %v6315_v51, 16  ;;  %v1524_v10 = vor.u32 %v1523_v32, %v1520_v29  ;;  %v1527_v31 = vshll.u32 %v6287_v2, 16 }
  0x99   : > { %v1511_v56 = vrot.slane %v1510_v34, 4  ;;  %v1722_v58 = vsel %vm5795_vm5, %v1717_v43, %v1721_v48  ;;  %v1726_v59 = vor.u32 %v1725_v9, %v1721_v48  ;;  %v1533_v60 = vrot.slane %v1531_v22, 4  ;;  %v6376_v9 = vld [vmem:[%s5706_s18 + $0x34] sm:$0xf] }
  0x9a   : > { %2555 = vrot.lane.b32.xlu0 %v5296_v23, %s5667_s24  ;;  %v1708_v61 = vsel %vm5795_vm5, %v1703_v0, %v1707_v27  ;;  %v1731_v62 = vrot.slane %v1729_v52, 5  ;;  %v1525_v63 = vrot.slane %v1524_v10, 4  ;;  %v1529_v12 = vrot.slane %v1527_v31, 5  ;;  %v197_v23 = vld [vmem:[%s5706_s18 + $0x90] sm:$0xf]  ;;  %v6348_v25 = vpop.permute.xlu1 %2119 }
  0x9b   : > { %v5319_v38 = vcombine.low %v1698_v57, %v1708_v61  ;;  %v1516_v45 = vsel %vm5795_vm5, %v1511_v56, %v1515_v28  ;;  %v1727_v4 = vrot.slane %v1726_v59, 4  ;;  %v1537_v39 = vshll.u32 %v6330_v50, 16  ;;  %v6384_v52 = vld [vmem:[%s5706_s18 + $0x38] sm:$0x1] }
  0x9c   : > { %v5311_v14 = vcombine.low %v1506_v37, %v1516_v45  ;;  %v1530_v15 = vsel %vm5795_vm5, %v1525_v63, %v1529_v12  ;;  %v1534_v20 = vor.u32 %v1533_v60, %v1529_v12  ;;  %v5191_v22 = vrot.slane %v5175_v13, 9 }
  0x9d   : > { %2649 = vrot.lane.b32.xlu1 %v5319_v38, %s5668_s25  ;;  %v1732_v29 = vsel %vm5795_vm5, %v1727_v4, %v1731_v62  ;;  %v1539_v17 = vrot.slane %v1537_v39, 5  ;;  %v1965_v46 = vrot.slane %v6240_v35, 5  ;;  %v1968_v19 = vrot.slane %v6291_v5, 5 }
  0x9e   : > { %2633 = vrot.lane.b32.xlu0 %v5311_v14, %s5668_s25  ;;  %v5320_v32 = vcombine.low %v1722_v58, %v1732_v29  ;;  %v1535_v24 = vrot.slane %v1534_v20, 4  ;;  %v5183_v18 = vrot.slane %v5167_v8, 9  ;;  %v1909_v33 = vrot.slane %v6254_v49, 5  ;;  %v6378_v37 = vpop.permute.xlu0 %2117  ;;  %v5626_v29 = vld [vmem:[%s5706_s18 + $0xc] sm:$0xf] }
  0x9f   : > { %v1966_v27 = vsel %vm5737_vm2, %v5191_v22, %v1965_v46  ;;  %v1967_v36 = vrot.slane %v1965_v46, 4  ;;  %v1912_v42 = vrot.slane %v6306_v26, 5  ;;  %v513_v35 = vshrl.u32 %v197_v23, 16 }
  0xa0   : > { %v1540_v5 = vsel %vm5795_vm5, %v1535_v24, %v1539_v17  ;;  %v1910_v41 = vsel %vm5737_vm2, %v5183_v18, %v1909_v33  ;;  %v1911_v1 = vrot.slane %v1909_v33, 4  ;;  %v516_v49 = vshll.u32 %v197_v23, 16  ;;  %v5625_v23 = vld [vmem:[%s5706_s18 + $0x10] sm:$0xf] }
  0xa1   : > { %2651 = vrot.lane.b32.xlu1 %v5320_v32, %s5668_s25  ;;  %v5312_v57 = vcombine.low %v1530_v15, %v1540_v5  ;;  %v1969_v44 = vsel %vm5737_vm2, %v1967_v36, %v1968_v19  ;;  %v515_v26 = vrot.slane %v513_v35, 4  ;;  %v522_v28 = vshll.u32 %v6358_v3, 16  ;;  %v5176_v15 = vld [vmem:[%s5706_s18 + $0x9c] sm:$0xe]  ;;  %v5627_v5 = vld [vmem:[%s5706_s18 + $0x4] sm:$0xf] }
  0xa2   : > { %v5335_v34 = vcombine.low %v1966_v27, %v1969_v44  ;;  %v1913_v43 = vsel %vm5737_vm2, %v1911_v1, %v1912_v42  ;;  %v518_v48 = vrot.slane %v516_v49, 5  ;;  %v526_v0 = vshrl.u32 %v6358_v3, 16  ;;  %v6386_v10 = vpop.permute.xlu1 %2135  ;;  %v5168_v36 = vld [vmem:[%s5706_s18 + $0x3c] sm:$0xe] }
  0xa3   : > { %2635 = vrot.lane.b32.xlu0 %v5312_v57, %s5668_s25  ;;  %v5327_v31 = vcombine.low %v1910_v41, %v1913_v43  ;;  %v524_v56 = vrot.slane %v522_v28, 5  ;;  %v532_v58 = vshll.u32 %v6368_v54, 16  ;;  %v321_v59 = vshrl.u32 %v181_v40, 16  ;;  %v5628_v41 = vld [vmem:[%s5706_s18] sm:$0xf] }
  0xa4   : > { %v519_v60 = vor.u32 %v518_v48, %v515_v26  ;;  %v528_v13 = vrot.slane %v526_v0, 4  ;;  %v324_v61 = vshll.u32 %v181_v40, 16  ;;  %v330_v62 = vshll.u32 %v6376_v9, 16  ;;  %v199_v28 = vld [vmem:[%s5706_s18 + $0x9c] sm:$0xf] }
  0xa5   : > { %2729 = vrot.lane.b32.xlu1 %v5335_v34, %s5669_s26  ;;  %v534_v63 = vrot.slane %v532_v58, 5  ;;  %v323_v12 = vrot.slane %v321_v59, 4  ;;  %v334_v38 = vshrl.u32 %v6376_v9, 16  ;;  %v340_v45 = vshll.u32 %v6384_v52, 16  ;;  %v5629_v58 = vld [vmem:[%s5706_s18 + $0x70] sm:$0xf] }
  0xa6   : > { %v520_v4 = vrot.slane %v519_v60, 4  ;;  %v529_v39 = vor.u32 %v528_v13, %v524_v56  ;;  %v326_v8 = vrot.slane %v324_v61, 5  ;;  %v332_v14 = vrot.slane %v330_v62, 5  ;;  %v6395_v20 = vpop.permute.xlu1 %2311  ;;  %v5630_v59 = vld [vmem:[%s5706_s18 + $0x6c] sm:$0xf] }
  0xa7   : > { %2713 = vrot.lane.b32.xlu0 %v5327_v31, %s5669_s26  ;;  %v336_v22 = vrot.slane %v334_v38, 4  ;;  %v5198_v17 = vcombine.low %v5626_v29, %v5625_v23  ;;  %v6400_v46 = vpop.permute.xlu0 %2133  ;;  %v342_v33 = vrot.slane %v340_v45, 5  ;;  %v5192_v27 = vrot.slane %v5176_v15, 9  ;;  %v6432_v13 = vld [vmem:[%s5706_s18 + $0xa0] sm:$0xf] }
  0xa8   : > { %v525_v19 = vsel %vm5795_vm5, %v520_v4, %v524_v56  ;;  %v530_v32 = vrot.slane %v529_v39, 4  ;;  %v327_v24 = vor.u32 %v326_v8, %v323_v12  ;;  %v5197_v1 = vcombine.low %v5628_v41, %v5627_v5  ;;  %v5631_v45 = vld [vmem:[%s5706_s18 + $0x64] sm:$0xf]  ;;  %v5632_v4 = vld [vmem:[%s5706_s18 + $0x60] sm:$0xf] }
  0xa9   : > { %v337_v18 = vor.u32 %v336_v22, %v332_v14  ;;  %v1972_v49 = vrot.slane %v6271_v55, 5  ;;  %v6412_v44 = vsel %vm2741_vm6, %v5198_v17, %v6348_v25  ;;  %v1975_v26 = vrot.slane %v6315_v51, 5  ;;  %v183_v8 = vld [vmem:[%s5706_s18 + $0x3c] sm:$0xf]  ;;  %v6451_v17 = vld [vmem:[%s5706_s18 + $0x40] sm:$0xf] }
  0xaa   : > { %v535_v42 = vsel %vm5795_vm5, %v530_v32, %v534_v63  ;;  %v328_v35 = vrot.slane %v327_v24, 4  ;;  %v6418_v43 = vpop.permute.xlu1 %2389  ;;  %v5184_v31 = vrot.slane %v5168_v36, 9  ;;  %v1916_v25 = vrot.slane %v6287_v2, 5  ;;  %v6437_v63 = vld [vmem:[%s5706_s18 + $0xa4] sm:$0x1] }
  0xab   : > { %v5225_v40 = vcombine.low %v525_v19, %v535_v42  ;;  %v338_v57 = vrot.slane %v337_v18, 4  ;;  %v6416_v34 = vpop.permute.xlu0 %2295  ;;  %v1973_v48 = vsel %vm5737_vm2, %v5192_v27, %v1972_v49  ;;  %v1974_v0 = vrot.slane %v1972_v49, 4 }
  0xac   : > { %v333_v55 = vsel %vm5795_vm5, %v328_v35, %v332_v14  ;;  %v1919_v56 = vrot.slane %v6330_v50, 5  ;;  %v5206_v60 = vcombine.low %v5630_v59, %v5629_v58  ;;  %v537_v12 = vshrl.u32 %v199_v28, 16 }
  0xad   : > { %2141 = vrot.lane.b32.xlu1 %v5225_v40, %s5664_s21  ;;  %v343_v51 = vsel %vm5795_vm5, %v338_v57, %v342_v33  ;;  %v1976_v62 = vsel %vm5737_vm2, %v1974_v0, %v1975_v26  ;;  %v1917_v2 = vsel %vm5737_vm2, %v5184_v31, %v1916_v25  ;;  %v1918_v50 = vrot.slane %v1916_v25, 4  ;;  %v6461_v33 = vld [vmem:[%s5706_s18 + $0x44] sm:$0x1] }
  0xae   : > { %v5217_v61 = vcombine.low %v333_v55, %v343_v51  ;;  %v5336_v38 = vcombine.low %v1973_v48, %v1976_v62  ;;  %v5205_v39 = vcombine.low %v5632_v4, %v5631_v45  ;;  %v2744_v15 = vsel %vm2741_vm6, %v5197_v1, %v6378_v37 }
  0xaf   : > { %v6444_v14 = vpop.permute.xlu0 %2373  ;;  %v539_v22 = vrot.slane %v537_v12, 4  ;;  %v540_v23 = vshll.u32 %v199_v28, 16  ;;  %v546_v29 = vshll.u32 %v6432_v13, 16  ;;  %v1920_v19 = vsel %vm5737_vm2, %v1918_v50, %v1919_v56 }
  0xb0   : > { %2125 = vrot.lane.b32.xlu0 %v5217_v61, %s5664_s21  ;;  %v2771_v32 = vsel %vm2741_vm6, %v5206_v60, %v6386_v10  ;;  %v550_v24 = vshrl.u32 %v6432_v13, 16  ;;  %v556_v18 = vshll.u32 %v6437_v63, 16  ;;  %v5328_v27 = vcombine.low %v1917_v2, %v1920_v19 }
  0xb1   : > { %2731 = vrot.lane.b32.xlu1 %v5336_v38, %s5669_s26  ;;  %v6463_v37 = vpop.permute.xlu1 %2391  ;;  %v542_v36 = vrot.slane %v540_v23, 5  ;;  %v548_v42 = vrot.slane %v546_v29, 5  ;;  %v345_v35 = vshrl.u32 %v183_v8, 16  ;;  %v2768_v5 = vsel %vm2741_vm6, %v5205_v39, %v6400_v46  ;;  %v620_v46 = vld [vmem:[%s5706_s18 + $0x90] sm:$0xe] }
  0xb2   : > { %v552_v41 = vrot.slane %v550_v24, 4  ;;  %v348_v1 = vshll.u32 %v183_v8, 16  ;;  %v354_v10 = vshll.u32 %v6451_v17, 16  ;;  %v358_v26 = vshrl.u32 %v6451_v17, 16  ;;  %v612_v38 = vld [vmem:[%s5706_s18 + $0x30] sm:$0xe] }
  0xb3   : > { %v6468_v49 = vpop.permute.xlu0 %2375  ;;  %v543_v40 = vor.u32 %v542_v36, %v539_v22  ;;  %v347_v57 = vrot.slane %v345_v35, 4  ;;  %v364_v28 = vshll.u32 %v6461_v33, 16  ;;  %v558_v48 = vrot.slane %v556_v18, 5 }
  0xb4   : > { %2715 = vrot.lane.b32.xlu0 %v5328_v27, %s5669_s26  ;;  %v553_v55 = vor.u32 %v552_v41, %v548_v42  ;;  %v350_v0 = vrot.slane %v348_v1, 5  ;;  %v356_v31 = vrot.slane %v354_v10, 5  ;;  %v2792_v25 = vsel %vm2790_vm7, %v2744_v15, %v6318_v53  ;;  %v613_v1 = vld [vmem:[%s5706_s18 + $0x3c] sm:$0xe] }
  0xb5   : > { %v6474_v51 = vpop.permute.xlu1 %2469  ;;  %v2808_v56 = vsel %vm2790_vm7, %v2768_v5, %v6299_v16  ;;  %v544_v58 = vrot.slane %v543_v40, 4  ;;  %v360_v59 = vrot.slane %v358_v26, 4  ;;  %v366_v62 = vrot.slane %v364_v28, 5 }
  0xb6   : > { %v554_v60 = vrot.slane %v553_v55, 4  ;;  %v351_v61 = vor.u32 %v350_v0, %v347_v57  ;;  %v2810_v12 = vsel %vm2790_vm7, %v2771_v32, %v6323_v47  ;;  %v5033_v53 = vrot.slane %v620_v46, 9  ;;  %v6524_v57 = vld [vmem:[%s5706_s18 + $0x9c] sm:$0xf] }
  0xb7   : > { %v6483_v2 = vpop.permute.xlu0 %2453  ;;  %v549_v50 = vsel %vm5795_vm5, %v544_v58, %v548_v42  ;;  %v361_v45 = vor.u32 %v360_v59, %v356_v31  ;;  %v761_v39 = vrot.slane %v6358_v3, 5  ;;  %v764_v8 = vrot.slane %v6368_v54, 5  ;;  %v621_v42 = vld [vmem:[%s5706_s18 + $0x9c] sm:$0xe]  ;;  %v6542_v58 = vld [vmem:[%s5706_s18 + $0xa0] sm:$0xf] }
  0xb8   : > { %v559_v16 = vsel %vm5795_vm5, %v554_v60, %v558_v48  ;;  %v352_v4 = vrot.slane %v351_v61, 4  ;;  %v5025_v23 = vrot.slane %v612_v38, 9  ;;  %v705_v29 = vrot.slane %v6376_v9, 5  ;;  %v5045_v46 = vld [vmem:[%s5706_s18 + $0x3c] sm:$0xf] }
  0xb9   : > { %v6491_v15 = vpop.permute.xlu1 %2471  ;;  %v5226_v47 = vcombine.low %v549_v50, %v559_v16  ;;  %v362_v22 = vrot.slane %v361_v45, 4  ;;  %v762_v32 = vsel %vm5737_vm2, %v5033_v53, %v761_v39  ;;  %v763_v24 = vrot.slane %v761_v39, 4  ;;  %v6566_v16 = vld [vmem:[%s5706_s18 + $0x40] sm:$0xf] }
  0xba   : > { %v357_v19 = vsel %vm5795_vm5, %v352_v4, %v356_v31  ;;  %v708_v3 = vrot.slane %v6384_v52, 5  ;;  %v2794_v9 = vsel %vm2790_vm7, %v6412_v44, %v6343_v11  ;;  %v706_v27 = vsel %vm5737_vm2, %v5025_v23, %v705_v29 }
  0xbb   : > { %v6499_v18 = vpop.permute.xlu0 %2455  ;;  %2143 = vrot.lane.b32.xlu1 %v5226_v47, %s5664_s21  ;;  %v367_v54 = vsel %vm5795_vm5, %v362_v22, %v366_v62  ;;  %v707_v36 = vrot.slane %v705_v29, 4  ;;  %v2843_v52 = vsel %vm2823_vm8, %v2810_v12, %v6395_v20  ;;  %v2827_v5 = vsel %vm2823_vm8, %v2794_v9, %v6416_v34  ;;  %v5063_v12 = vld [vmem:[%s5706_s18 + $0xa8] sm:$0xf]  ;;  %v6571_v47 = vld [vmem:[%s5706_s18 + $0xac] sm:$0xf] }
  0xbc   : > { %v5218_v35 = vcombine.low %v357_v19, %v367_v54  ;;  %v765_v41 = vsel %vm5737_vm2, %v763_v24, %v764_v8  ;;  %v2841_v44 = vsel %vm2823_vm8, %v2808_v56, %v6256_v7  ;;  %v5034_v34 = vrot.slane %v621_v42, 9  ;;  %v5047_v22 = vld [vmem:[%s5706_s18 + $0x48] sm:$0xf]  ;;  %v6578_v24 = vld [vmem:[%s5706_s18 + $0x4c] sm:$0xf] }
  0xbd   : > { %v6517_v10 = vpop.permute.xlu1 %2565  ;;  %v5241_v40 = vcombine.low %v762_v32, %v765_v41  ;;  %v709_v11 = vsel %vm5737_vm2, %v707_v36, %v708_v3  ;;  %v768_v26 = vrot.slane %v6432_v13, 5  ;;  %v771_v28 = vrot.slane %v6437_v63, 5  ;;  %v6596_v41 = vld [vmem:[%s5706_s18 + $0xa4] sm:$0x1] }
  0xbe   : > { %2127 = vrot.lane.b32.xlu0 %v5218_v35, %s5664_s21  ;;  %v5233_v20 = vcombine.low %v706_v27, %v709_v11  ;;  %v2825_v48 = vsel %vm2823_vm8, %v2792_v25, %v6293_v6  ;;  %v5026_v0 = vrot.slane %v613_v1, 9  ;;  %v712_v7 = vrot.slane %v6451_v17, 5 }
  0xbf   : > { %v6529_v55 = vpop.permute.xlu0 %2549  ;;  %2221 = vrot.lane.b32.xlu1 %v5241_v40, %s5663_s20  ;;  %v715_v31 = vrot.slane %v6461_v33, 5  ;;  %v2874_v56 = vsel %vm2856_vm9, %v2841_v44, %v6418_v43  ;;  %v769_v13 = vsel %vm5737_vm2, %v5034_v34, %v768_v26  ;;  %v770_v63 = vrot.slane %v768_v26, 4 }
  0xc0   : > { %v1125_v59 = vshrl.u32 %v6524_v57, 16  ;;  %v2858_v17 = vsel %vm2856_vm9, %v2825_v48, %v6444_v14  ;;  %v713_v33 = vsel %vm5737_vm2, %v5026_v0, %v712_v7  ;;  %v714_v25 = vrot.slane %v712_v7, 4 }
  0xc1   : > { %v6545_v6 = vpop.permute.xlu1 %2567  ;;  %v1128_v43 = vshll.u32 %v6524_v57, 16  ;;  %v772_v60 = vsel %vm5737_vm2, %v770_v63, %v771_v28  ;;  %v2876_v61 = vsel %vm2856_vm9, %v2843_v52, %v6463_v37  ;;  %v2860_v62 = vsel %vm2856_vm9, %v2827_v5, %v6468_v49 }
  0xc2   : > { %2205 = vrot.lane.b32.xlu0 %v5233_v20, %s5663_s20  ;;  %v933_v14 = vshrl.u32 %v5045_v46, 16  ;;  %v5242_v50 = vcombine.low %v769_v13, %v772_v60  ;;  %v716_v45 = vsel %vm5737_vm2, %v714_v25, %v715_v31  ;;  %v1138_v53 = vshrl.u32 %v6542_v58, 16  ;;  %v6618_v25 = vld [vmem:[%s5706_s18 + $0xb0] sm:$0x1] }
  0xc3   : > { %v6560_v38 = vpop.permute.xlu0 %2551  ;;  %v936_v4 = vshll.u32 %v5045_v46, 16  ;;  %v5234_v39 = vcombine.low %v713_v33, %v716_v45  ;;  %v1127_v8 = vrot.slane %v1125_v59, 4  ;;  %v1130_v37 = vrot.slane %v1128_v43, 5 }
  0xc4   : > { %v5257_v49 = vcombine.low %v6524_v57, %v6542_v58  ;;  %2223 = vrot.lane.b32.xlu1 %v5242_v50, %s5663_s20  ;;  %v935_v29 = vrot.slane %v933_v14, 4  ;;  %v1149_v19 = vshrl.u32 %v5063_v12, 16  ;;  %v1152_v32 = vshll.u32 %v5063_v12, 16 }
  0xc5   : > { %v6574_v23 = vpop.permute.xlu1 %2645  ;;  %v938_v3 = vrot.slane %v936_v4, 5  ;;  %v946_v54 = vshrl.u32 %v6566_v16, 16  ;;  %v5249_v9 = vcombine.low %v5045_v46, %v6566_v16  ;;  %v6585_v27 = vsel %vm2889_vm10, %v2874_v56, %v6474_v51  ;;  %v6600_v51 = vld [vmem:[%s5706_s18 + $0x44] sm:$0x1] }
  0xc6   : > { %2207 = vrot.lane.b32.xlu0 %v5234_v39, %s5663_s20  ;;  %v6591_v42 = vsel %vm2889_vm10, %v2858_v17, %v6483_v2  ;;  %v1151_v35 = vrot.slane %v1149_v19, 4  ;;  %v1162_v52 = vshrl.u32 %v6571_v47, 16  ;;  %v5258_v5 = vcombine.low %v5063_v12, %v6571_v47 }
  0xc7   : > { %v6587_v36 = vpop.permute.xlu0 %2629  ;;  %v1154_v1 = vrot.slane %v1152_v32, 5  ;;  %v957_v40 = vshrl.u32 %v5047_v22, 16  ;;  %v960_v11 = vshll.u32 %v5047_v22, 16  ;;  %v970_v44 = vshrl.u32 %v6578_v24, 16 }
  0xc8   : > { %2317 = vrot.lane.b32.xlu1 %v5257_v49, %s5662_s19  ;;  %v5250_v2 = vcombine.low %v5047_v22, %v6578_v24  ;;  %v6608_v20 = vsel %vm2889_vm10, %v2876_v61, %v6491_v15  ;;  %v1131_v34 = vor.u32 %v1130_v37, %v1127_v8  ;;  %v1134_v26 = vshll.u32 %v6542_v58, 16  ;;  %v6635_v22 = vld [vmem:[%s5706_s18 + $0x50] sm:$0x1] }
  0xc9   : > { %v6602_v57 = vpop.permute.xlu1 %2647  ;;  %v1140_v28 = vrot.slane %v1138_v53, 4  ;;  %v1144_v48 = vshll.u32 %v6596_v41, 16  ;;  %v939_v0 = vor.u32 %v938_v3, %v935_v29  ;;  %v942_v7 = vshll.u32 %v6566_v16, 16 }
  0xca   : > { %2301 = vrot.lane.b32.xlu0 %v5249_v9, %s5662_s19  ;;  %v1132_v31 = vrot.slane %v1131_v34, 4  ;;  %v1136_v46 = vrot.slane %v1134_v26, 5  ;;  %v948_v56 = vrot.slane %v946_v54, 4  ;;  %v952_v13 = vshll.u32 %v6600_v51, 16 }
  0xcb   : > { %v6615_v63 = vpop.permute.xlu0 %2631  ;;  %v959_v15 = vrot.slane %v957_v40, 4  ;;  %v962_v59 = vrot.slane %v960_v11, 5  ;;  %v940_v17 = vrot.slane %v939_v0, 4  ;;  %v944_v33 = vrot.slane %v942_v7, 5  ;;  %v5097_v40 = vld [vmem:[%s5706_s18 + $0x9c] sm:$0xe] }
  0xcc   : > { %2319 = vrot.lane.b32.xlu1 %v5258_v5, %s5662_s19  ;;  %v6623_v43 = vsel %vm2889_vm10, %v2860_v62, %v6499_v18  ;;  %v1137_v60 = vsel %vm5795_vm5, %v1132_v31, %v1136_v46  ;;  %v1141_v61 = vor.u32 %v1140_v28, %v1136_v46  ;;  %v1146_v14 = vrot.slane %v1144_v48, 5  ;;  %v5089_v28 = vld [vmem:[%s5706_s18 + $0x3c] sm:$0xe] }
  0xcd   : > { %v945_v12 = vsel %vm5795_vm5, %v940_v17, %v944_v33  ;;  %v949_v50 = vor.u32 %v948_v56, %v944_v33  ;;  %v954_v45 = vrot.slane %v952_v13, 5  ;;  %v1155_v53 = vor.u32 %v1154_v1, %v1151_v35  ;;  %v6630_v4 = vpop.permute.xlu1 %2725  ;;  %v5098_v33 = vld [vmem:[%s5706_s18 + $0xa8] sm:$0xe] }
  0xce   : > { %2303 = vrot.lane.b32.xlu0 %v5250_v2, %s5662_s19  ;;  %v1142_v39 = vrot.slane %v1141_v61, 4  ;;  %v1158_v18 = vshll.u32 %v6571_v47, 16  ;;  %v1164_v62 = vrot.slane %v1162_v52, 4  ;;  %v1168_v8 = vshll.u32 %v6618_v25, 16 }
  0xcf   : > { %v950_v37 = vrot.slane %v949_v50, 4  ;;  %v1156_v49 = vrot.slane %v1155_v53, 4  ;;  %v963_v29 = vor.u32 %v962_v59, %v959_v15  ;;  %v966_v19 = vshll.u32 %v6578_v24, 16  ;;  %v6640_v9 = vpop.permute.xlu0 %2709  ;;  %v5090_v53 = vld [vmem:[%s5706_s18 + $0x48] sm:$0xe] }
  0xd0   : > { %v1147_v32 = vsel %vm5795_vm5, %v1142_v39, %v1146_v14  ;;  %v1160_v3 = vrot.slane %v1158_v18, 5  ;;  %v972_v54 = vrot.slane %v970_v44, 4  ;;  %v1170_v34 = vrot.slane %v1168_v8, 5 }
  0xd1   : > { %v5273_v35 = vcombine.low %v1137_v60, %v1147_v32  ;;  %v955_v52 = vsel %vm5795_vm5, %v950_v37, %v954_v45  ;;  %v964_v5 = vrot.slane %v963_v29, 4  ;;  %v968_v1 = vrot.slane %v966_v19, 5  ;;  %v5598_v29 = vld [vmem:[%s7783_s1 + $0x10] ss:$0 sps:$4 sm:$0x33]  }
  0xd2   : > { %v5265_v11 = vcombine.low %v945_v12, %v955_v52  ;;  %v1165_v2 = vor.u32 %v1164_v62, %v1160_v3  ;;  %v976_v26 = vshll.u32 %v6635_v22, 16  ;;  %v2940_v44 = vsel %vm2922_vm11, %v6585_v27, %v6517_v10  ;;  %v6689_v19 = vld [vmem:[%s5706_s18 + $0xa8] sm:$0xf]  ;;  %5554 = vmatprep.subr.msk.bf16.mxu0 %vm3081_vm13, %v5598_v29  ;;  %5555 = vmatprep.subr.msk.bf16.mxu1 %vm3081_vm13, %v5598_v29 }
  0xd3   : > { %2397 = vrot.lane.b32.xlu1 %v5273_v35, %s5665_s22  ;;  %v1161_v48 = vsel %vm5795_vm5, %v1156_v49, %v1160_v3  ;;  %v969_v0 = vsel %vm5795_vm5, %v964_v5, %v968_v1  ;;  %v973_v7 = vor.u32 %v972_v54, %v968_v1  ;;  %v5113_v13 = vrot.slane %v5097_v40, 9  ;;  %v6706_v5 = vld [vmem:[%s5706_s18 + $0x48] sm:$0xf] }
  0xd4   : > { %2381 = vrot.lane.b32.xlu0 %v5265_v11, %s5665_s22  ;;  %v1166_v46 = vrot.slane %v1165_v2, 4  ;;  %v978_v56 = vrot.slane %v976_v26, 5  ;;  %v1370_v15 = vrot.slane %v6542_v58, 5  ;;  %v1373_v10 = vrot.slane %v6596_v41, 5  ;;  %v5601_v26 = vld [vmem:[%s7783_s1 + $0x8] sm:$0xff]  }
  0xd5   : > { %v6655_v31 = vpop.permute.xlu1 %2137  ;;  %v974_v59 = vrot.slane %v973_v7, 4  ;;  %v5105_v27 = vrot.slane %v5089_v28, 9  ;;  %v1314_v17 = vrot.slane %v6566_v16, 5  ;;  %v1317_v12 = vrot.slane %v6600_v51, 5  ;;  %v6740_v28 = vld [vmem:[%s5706_s18 + $0xb4] sm:$0xf] }
  0xd6   : > { %v1171_v60 = vsel %vm5795_vm5, %v1166_v46, %v1170_v34  ;;  %v1371_v61 = vsel %vm5737_vm2, %v5113_v13, %v1370_v15  ;;  %v1372_v14 = vrot.slane %v1370_v15, 4  ;;  %v5114_v62 = vrot.slane %v5098_v33, 9  ;;  %v6750_v7 = vld [vmem:[%s5706_s18 + $0x54] sm:$0xf] }
  0xd7   : > { %v5274_v58 = vcombine.low %v1161_v48, %v1171_v60  ;;  %v979_v41 = vsel %vm5795_vm5, %v974_v59, %v978_v56  ;;  %v1315_v16 = vsel %vm5737_vm2, %v5105_v27, %v1314_v17  ;;  %v1316_v45 = vrot.slane %v1314_v17, 4 }
  0xd8   : > { %v6667_v50 = vpop.permute.xlu0 %2121  ;;  %v5266_v39 = vcombine.low %v969_v0, %v979_v41  ;;  %v1374_v18 = vsel %vm5737_vm2, %v1372_v14, %v1373_v10  ;;  %v2924_v51 = vsel %vm2922_vm11, %v6591_v42, %v6529_v55  ;;  %v2942_v8 = vsel %vm2922_vm11, %v6608_v20, %v6545_v6  ;;  %v6757_v10 = vld [vmem:[%s5706_s18 + $0xb8] sm:$0xf] }
  0xd9   : > { %2399 = vrot.lane.b32.xlu1 %v5274_v58, %s5665_s22  ;;  %v5289_v37 = vcombine.low %v1371_v61, %v1374_v18  ;;  %v1318_v49 = vsel %vm5737_vm2, %v1316_v45, %v1317_v12  ;;  %v6691_v32 = vpop.permute.xlu1 %2727  ;;  %v1377_v42 = vrot.slane %v6571_v47, 5  ;;  %v1380_v6 = vrot.slane %v6618_v25, 5  ;;  %v6711_v25 = vld [vmem:[%s5706_s18 + $0xac] sm:$0xf]  ;;  %v6764_v61 = vld [vmem:[%s5706_s18 + $0x58] sm:$0xf] }
  0xda   : > { %2383 = vrot.lane.b32.xlu0 %v5266_v39, %s5665_s22  ;;  %v5281_v55 = vcombine.low %v1315_v16, %v1318_v49  ;;  %v5106_v20 = vrot.slane %v5090_v53, 9  ;;  %v2926_v3 = vsel %vm2922_vm11, %v6623_v43, %v6560_v38  ;;  %v6701_v54 = vsel %vm2955_vm12, %v2940_v44, %v6574_v23  ;;  %v5606_v49 = vld [vmem:[%s7783_s1] sm:$0xff]  }
  0xdb   : > { %v1321_v35 = vrot.slane %v6578_v24, 5  ;;  %v1324_v52 = vrot.slane %v6635_v22, 5  ;;  %v1378_v47 = vsel %vm5737_vm2, %v5114_v62, %v1377_v42  ;;  %v1379_v1 = vrot.slane %v1377_v42, 4  ;;  %v6778_v62 = vld [vmem:[%s5706_s18 + $0xb0] sm:$0x1] }
  0xdc   : > { %v1734_v38 = vshrl.u32 %v6689_v19, 16  ;;  %v6714_v43 = vpop.permute.xlu0 %2711  ;;  %v2957_v23 = vsel %vm2955_vm12, %v2924_v51, %v6587_v36  ;;  %v1737_v40 = vshll.u32 %v6689_v19, 16  ;;  %v6728_v2 = vsel %vm2955_vm12, %v2942_v8, %v6602_v57 }
  0xdd   : > { %2477 = vrot.lane.b32.xlu1 %v5289_v37, %s5666_s23  ;;  %v1322_v24 = vsel %vm5737_vm2, %v5106_v20, %v1321_v35  ;;  %v1323_v22 = vrot.slane %v1321_v35, 4  ;;  %v1381_v11 = vsel %vm5737_vm2, %v1379_v1, %v1380_v6  ;;  %v6732_v36 = vsel %vm2955_vm12, %v2926_v3, %v6615_v63  ;;  %v6746_v63 = vld [vmem:[%s5706_s18 + $0x4c] sm:$0xf] }
  0xde   : > { %2461 = vrot.lane.b32.xlu0 %v5281_v55, %s5666_s23  ;;  %v1542_v34 = vshrl.u32 %v6706_v5, 16  ;;  %v5290_v44 = vcombine.low %v1378_v47, %v1381_v11  ;;  %v1747_v48 = vshrl.u32 %v6711_v25, 16  ;;  %v1545_v0 = vshll.u32 %v6706_v5, 16 }
  0xdf   : > { %v1325_v57 = vsel %vm5737_vm2, %v1323_v22, %v1324_v52  ;;  %v1736_v13 = vrot.slane %v1734_v38, 4  ;;  %v1739_v15 = vrot.slane %v1737_v40, 5  ;;  %v5305_v59 = vcombine.low %v6689_v19, %v6711_v25  ;;  %v6801_v52 = vld [vmem:[%s5706_s18 + $0x50] sm:$0x1] }
  0xe0   : > { %v5282_v56 = vcombine.low %v1322_v24, %v1325_v57  ;;  %v1544_v27 = vrot.slane %v1542_v34, 4  ;;  %v3083_v17 = vsel %vm3081_vm13, %v5598_v29, 0  ;;  %v1758_v33 = vshrl.u32 %v6740_v28, 16 }
  0xe1   : > { %v6752_v46 = vpop.permute.xlu1 %2139  ;;  %2479 = vrot.lane.b32.xlu1 %v5290_v44, %s5666_s23  ;;  %v1761_v60 = vshll.u32 %v6740_v28, 16  ;;  %v1547_v14 = vrot.slane %v1545_v0, 5  ;;  %v1555_v12 = vshrl.u32 %v6746_v63, 16  ;;  %v5297_v58 = vcombine.low %v6706_v5, %v6746_v63  ;;  %5511 = vmatpush3.bf16.msra.mxu0 %v3083_v17 }
  0xe2   : > { %2463 = vrot.lane.b32.xlu0 %v5282_v56, %s5666_s23  ;;  %v1566_v41 = vshrl.u32 %v6750_v7, 16  ;;  %5551 = vmatpush3.bf16.msra.mxu1 %v3083_v17  ;;  %v1760_v45 = vrot.slane %v1758_v33, 4  ;;  %v1771_v53 = vshrl.u32 %v6757_v10, 16  ;;  %v5306_v39 = vcombine.low %v6740_v28, %v6757_v10 }
  0xe3   : > { %5512 = vmatprep.subr.bf16.mxu0 %v5601_v26  ;;  %v1569_v18 = vshll.u32 %v6750_v7, 16  ;;  %5549 = vmatprep.subr.bf16.mxu1 %v5601_v26  ;;  %v1763_v8 = vrot.slane %v1761_v60, 5  ;;  %v1579_v37 = vshrl.u32 %v6764_v61, 16  ;;  %v5298_v19 = vcombine.low %v6750_v7, %v6764_v61 }
  0xe4   : > { %v6771_v16 = vpop.permute.xlu0 %2123  ;;  %v6787_v29 = vrot.slane %v1566_v41, 4  ;;  %v2990_v55 = vsel %vm2988_vm14, %v2957_v23, %v6640_v9  ;;  %v3006_v42 = vsel %vm2988_vm14, %v6701_v54, %v6630_v4  ;;  %v1740_v6 = vor.u32 %v1739_v15, %v1736_v13  ;;  %v5633_v9 = vld [vmem:[%s5706_s18 + $0x78] sm:$0xf]  ;;  %v5634_v4 = vld [vmem:[%s5706_s18 + $0x7c] sm:$0xf] }
  0xe5   : > { %v6780_v51 = vpop.permute.xlu1 %2217  ;;  %2573 = vrot.lane.b32.xlu1 %v5305_v59, %s5667_s24  ;;  %5516 = vmatprep.mubr.msk.bf16.mxu0 %vm3048_vm15, %v2990_v55  ;;  %v1743_v20 = vshll.u32 %v6711_v25, 16  ;;  %v1749_v3 = vrot.slane %v1747_v48, 4  ;;  %v1753_v35 = vshll.u32 %v6778_v62, 16  ;;  %v1571_v47 = vrot.slane %v1569_v18, 5  ;;  %v6817_v48 = vld [vmem:[%s5706_s18 + $0xbc] sm:$0x1] }
  0xe6   : > { %2557 = vrot.lane.b32.xlu0 %v5297_v58, %s5667_s24  ;;  %5532 = vmatprep.mubr.msk.bf16.mxu1 %vm3048_vm15, %v3006_v42  ;;  %v5207_v54 = vcombine.low %v5633_v9, %v5634_v4  ;;  %v1548_v1 = vor.u32 %v1547_v14, %v1544_v27  ;;  %v1551_v38 = vshll.u32 %v6746_v63, 16  ;;  %v1741_v24 = vrot.slane %v1740_v6, 4  ;;  %v6831_v27 = vld [vmem:[%s5706_s18 + $0x5c] sm:$0x1]  ;;  %v5169_v9 = vld [vmem:[%s5706_s18 + $0x48] sm:$0xe] }
  0xe7   : > { %5513 = vmatpush3.bf16.msra.mxu0 %v5601_v26  ;;  %5552 = vmatpush3.bf16.msra.mxu1 %v5601_v26  ;;  %v1745_v22 = vrot.slane %v1743_v20, 5  ;;  %v1755_v40 = vrot.slane %v1753_v35, 5  ;;  %v1557_v11 = vrot.slane %v1555_v12, 4  ;;  %v1561_v44 = vshll.u32 %v6801_v52, 16 }
  0xe8   : > { %v6803_v5 = vpop.permute.xlu0 %2201  ;;  %5514 = vmatprep.subr.bf16.mxu0 %v5606_v49  ;;  %5550 = vmatprep.subr.bf16.mxu1 %v5606_v49  ;;  %v1549_v34 = vrot.slane %v1548_v1, 4  ;;  %v1553_v28 = vrot.slane %v1551_v38, 5  ;;  %v3008_v57 = vsel %vm2988_vm14, %v6728_v2, %v6691_v32  ;;  %v2992_v7 = vsel %vm2988_vm14, %v6732_v36, %v6714_v43 }
  0xe9   : > { %v6809_v23 = vpop.permute.xlu1 %2219  ;;  %2575 = vrot.lane.b32.xlu1 %v5306_v39, %s5667_s24  ;;  %v1746_v26 = vsel %vm5795_vm5, %v1741_v24, %v1745_v22  ;;  %v1750_v0 = vor.u32 %v1749_v3, %v1745_v22  ;;  %v1764_v56 = vor.u32 %v1763_v8, %v1760_v45  ;;  %v1563_v2 = vrot.slane %v1561_v44, 5  ;;  %v5635_v45 = vld [vmem:[%s5706_s18 + $0x18] sm:$0xf]  ;;  %v5636_v39 = vld [vmem:[%s5706_s18 + $0x1c] sm:$0xf] }
  0xea   : > { %2559 = vrot.lane.b32.xlu0 %v5298_v19, %s5667_s24  ;;  %v1554_v15 = vsel %vm5795_vm5, %v1549_v34, %v1553_v28  ;;  %v1558_v32 = vor.u32 %v1557_v11, %v1553_v28  ;;  %v1767_v59 = vshll.u32 %v6757_v10, 16  ;;  %v1773_v36 = vrot.slane %v1771_v53, 4  ;;  %v5177_v19 = vld [vmem:[%s5706_s18 + $0xa8] sm:$0xe] }
  0xeb   : > { %5515 = vmatpush3.bf16.msra.mxu0 %v5606_v49  ;;  %v1751_v33 = vrot.slane %v1750_v0, 4  ;;  %5553 = vmatpush3.bf16.msra.mxu1 %v5606_v49  ;;  %v1765_v43 = vrot.slane %v1764_v56, 4  ;;  %v1777_v60 = vshll.u32 %v6817_v48, 16  ;;  %v1572_v58 = vor.u32 %v1571_v47, %v6787_v29 }
  0xec   : > { %v6825_v13 = vpop.permute.xlu0 %2203  ;;  %v1559_v14 = vrot.slane %v1558_v32, 4  ;;  %v1769_v12 = vrot.slane %v1767_v59, 5  ;;  %v1575_v41 = vshll.u32 %v6764_v61, 16  ;;  %v5199_v18 = vcombine.low %v5635_v45, %v5636_v39  ;;  %v5640_v59 = vld [vmem:[%s5706_s18 + $0x28] sm:$0xf] }
  0xed   : > { %v6833_v17 = vpop.permute.xlu1 %2313  ;;  %v1756_v8 = vsel %vm5795_vm5, %v1751_v33, %v1755_v40  ;;  %v1581_v49 = vrot.slane %v1579_v37, 4  ;;  %v1585_v53 = vshll.u32 %v6831_v27, 16  ;;  %v1779_v20 = vrot.slane %v1777_v60, 5  ;;  %v6887_v60 = vld [vmem:[%s5706_s18 + $0xac] sm:$0xf] }
  0xee   : > { %5517 = vmatmul.mubr.msk.bf16.vlgmr.msra.gmra.mxu0 %vm3048_vm15, %v2992_v7  ;;  %v5321_v29 = vcombine.low %v1746_v26, %v1756_v8  ;;  %v1564_v42 = vsel %vm5795_vm5, %v1559_v14, %v1563_v2  ;;  %v1774_v6 = vor.u32 %v1773_v36, %v1769_v12  ;;  %5533 = vmatmul.mubr.msk.bf16.vlgmr.msra.gmra.mxu1 %vm3048_vm15, %v3008_v57  ;;  %v1573_v47 = vrot.slane %v1572_v58, 4  ;;  %v201_v26 = vld [vmem:[%s5706_s18 + $0xa8] sm:$0xf]  ;;  %v5639_v2 = vld [vmem:[%s5706_s18 + $0x24] sm:$0xf] }
  0xef   : > { %v5313_v35 = vcombine.low %v1554_v15, %v1564_v42  ;;  %v1577_v37 = vrot.slane %v1575_v41, 5  ;;  %v6857_v4 = vsel %vm2741_vm6, %v5207_v54, %v6655_v31  ;;  %v1770_v1 = vsel %vm5795_vm5, %v1765_v43, %v1769_v12  ;;  %v5638_v15 = vld [vmem:[%s5706_s18 + $0x88] sm:$0xf]  ;;  %v6895_v58 = vld [vmem:[%s5706_s18 + $0xb0] sm:$0x1] }
  0xf0   : > { %v6847_v55 = vpop.permute.xlu0 %2297  ;;  %2653 = vrot.lane.b32.xlu1 %v5321_v29, %s5668_s25  ;;  %v1775_v38 = vrot.slane %v1774_v6, 4  ;;  %v5193_v24 = vrot.slane %v5177_v19, 9  ;;  %v1587_v40 = vrot.slane %v1585_v53, 5  ;;  %v1979_v11 = vrot.slane %v6711_v25, 5  ;;  %v185_v39 = vld [vmem:[%s5706_s18 + $0x48] sm:$0xf] }
  0xf1   : > { %v6852_v3 = vpop.permute.xlu1 %2315  ;;  %2637 = vrot.lane.b32.xlu0 %v5313_v35, %s5668_s25  ;;  %v1582_v22 = vor.u32 %v1581_v49, %v1577_v37  ;;  %v1982_v34 = vrot.slane %v6778_v62, 5  ;;  %v6869_v54 = vsel %vm2741_vm6, %v5199_v18, %v6667_v50  ;;  %v1578_v44 = vsel %vm5795_vm5, %v1573_v47, %v1577_v37  ;;  %v5637_v50 = vld [vmem:[%s5706_s18 + $0x84] sm:$0xf]  ;;  %v6905_v6 = vld [vmem:[%s5706_s18 + $0x4c] sm:$0xf] }
  0xf2   : > { %v1780_v28 = vsel %vm5795_vm5, %v1775_v38, %v1779_v20  ;;  %v5185_v57 = vrot.slane %v5169_v9, 9  ;;  %v1980_v62 = vsel %vm5737_vm2, %v5193_v24, %v1979_v11  ;;  %v1981_v7 = vrot.slane %v1979_v11, 4  ;;  %v6918_v9 = vld [vmem:[%s5706_s18 + $0x50] sm:$0x1] }
  0xf3   : > { %v5322_v25 = vcombine.low %v1770_v1, %v1780_v28  ;;  %v1583_v0 = vrot.slane %v1582_v22, 4  ;;  %v5208_v32 = vcombine.low %v5637_v50, %v5638_v15  ;;  %v5200_v33 = vcombine.low %v5639_v2, %v5640_v59  ;;  %v5170_v59 = vld [vmem:[%s5706_s18 + $0x54] sm:$0xe] }
  0xf4   : > { %v6865_v31 = vpop.permute.xlu0 %2299  ;;  %v1923_v43 = vrot.slane %v6746_v63, 5  ;;  %v1926_v36 = vrot.slane %v6801_v52, 5  ;;  %v1983_v12 = vsel %vm5737_vm2, %v1981_v7, %v1982_v34  ;;  %v561_v41 = vshrl.u32 %v201_v26, 16 }
  0xf5   : > { %2655 = vrot.lane.b32.xlu1 %v5322_v25, %s5668_s25  ;;  %v1588_v14 = vsel %vm5795_vm5, %v1583_v0, %v1587_v40  ;;  %v564_v45 = vshll.u32 %v201_v26, 16  ;;  %v5337_v18 = vcombine.low %v1980_v62, %v1983_v12  ;;  %v570_v29 = vshll.u32 %v6887_v60, 16  ;;  %v5178_v62 = vld [vmem:[%s5706_s18 + $0xb4] sm:$0xe] }
  0xf6   : > { %v6878_v56 = vpop.permute.xlu1 %2393  ;;  %v5314_v52 = vcombine.low %v1578_v44, %v1588_v14  ;;  %v1924_v8 = vsel %vm5737_vm2, %v5185_v57, %v1923_v43  ;;  %v1925_v49 = vrot.slane %v1923_v43, 4  ;;  %v563_v53 = vrot.slane %v561_v41, 4 }
  0xf7   : > { %v566_v19 = vrot.slane %v564_v45, 5  ;;  %v574_v42 = vshrl.u32 %v6887_v60, 16  ;;  %v6912_v35 = vsel %vm2741_vm6, %v5208_v32, %v6752_v46  ;;  %v580_v37 = vshll.u32 %v6895_v58, 16 }
  0xf8   : > { %v6898_v63 = vpop.permute.xlu0 %2377  ;;  %2639 = vrot.lane.b32.xlu0 %v5314_v52, %s5668_s25  ;;  %v1927_v47 = vsel %vm5737_vm2, %v1925_v49, %v1926_v36  ;;  %v369_v1 = vshrl.u32 %v185_v39, 16  ;;  %v572_v22 = vrot.slane %v570_v29, 5  ;;  %v372_v28 = vshll.u32 %v185_v39, 16  ;;  %v6954_v52 = vld [vmem:[%s5706_s18 + $0xb4] sm:$0xf] }
  0xf9   : > { %2733 = vrot.lane.b32.xlu1 %v5337_v18, %s5669_s26  ;;  %v5329_v38 = vcombine.low %v1924_v8, %v1927_v47  ;;  %v567_v24 = vor.u32 %v566_v19, %v563_v53  ;;  %v576_v40 = vrot.slane %v574_v42, 4  ;;  %v582_v46 = vrot.slane %v580_v37, 5  ;;  %v6964_v47 = vld [vmem:[%s5706_s18 + $0xb8] sm:$0xf] }
  0xfa   : > { %v6907_v20 = vpop.permute.xlu1 %2395  ;;  %v371_v34 = vrot.slane %v369_v1, 4  ;;  %v378_v44 = vshll.u32 %v6905_v6, 16  ;;  %v382_v25 = vshrl.u32 %v6905_v6, 16  ;;  %v388_v0 = vshll.u32 %v6918_v9, 16 }
  0xfb   : > { %v568_v57 = vrot.slane %v567_v24, 4  ;;  %v577_v26 = vor.u32 %v576_v40, %v572_v22  ;;  %v6931_v50 = vsel %vm2741_vm6, %v5200_v33, %v6771_v16  ;;  %v6937_v15 = vsel %vm2790_vm7, %v6857_v4, %v6780_v51 }
  0xfc   : > { %v6921_v11 = vpop.permute.xlu0 %2379  ;;  %2717 = vrot.lane.b32.xlu0 %v5329_v38, %s5669_s26  ;;  %v374_v32 = vrot.slane %v372_v28, 5  ;;  %v380_v2 = vrot.slane %v378_v44, 5  ;;  %v6943_v43 = vsel %vm2790_vm7, %v6869_v54, %v6803_v5  ;;  %v384_v36 = vrot.slane %v382_v25, 4 }
  0xfd   : > { %v573_v16 = vsel %vm5795_vm5, %v568_v57, %v572_v22  ;;  %v578_v33 = vrot.slane %v577_v26, 4  ;;  %v390_v41 = vrot.slane %v388_v0, 5  ;;  %v5194_v51 = vrot.slane %v5178_v62, 9  ;;  %v6975_v22 = vld [vmem:[%s5706_s18 + $0xbc] sm:$0x1] }
  0xfe   : > { %v6927_v7 = vpop.permute.xlu1 %2473  ;;  %v375_v12 = vor.u32 %v374_v32, %v371_v34  ;;  %v1986_v4 = vrot.slane %v6757_v10, 5  ;;  %v385_v39 = vor.u32 %v384_v36, %v380_v2  ;;  %v1989_v5 = vrot.slane %v6817_v48, 5  ;;  %v6990_v62 = vld [vmem:[%s5706_s18 + $0x58] sm:$0xf] }
  0xff   : > { %v583_v45 = vsel %vm5795_vm5, %v578_v33, %v582_v46  ;;  %v5186_v54 = vrot.slane %v5170_v59, 9  ;;  %v778_v10 = vrot.slane %v6895_v58, 5  ;;  %v1930_v42 = vrot.slane %v6764_v61, 5 }
 0x100   : > { %v6947_v14 = vpop.permute.xlu0 %2457  ;;  %v5227_v8 = vcombine.low %v573_v16, %v583_v45  ;;  %v376_v49 = vrot.slane %v375_v12, 4  ;;  %v1987_v53 = vsel %vm5737_vm2, %v5194_v51, %v1986_v4  ;;  %v1988_v19 = vrot.slane %v1986_v4, 4  ;;  %v6997_v16 = vld [vmem:[%s5706_s18 + $0x5c] sm:$0x1] }
 0x101   : > { %v386_v29 = vrot.slane %v385_v39, 4  ;;  %v1933_v48 = vrot.slane %v6831_v27, 5  ;;  %v722_v38 = vrot.slane %v6918_v9, 5  ;;  %v585_v61 = vshrl.u32 %v6954_v52, 16  ;;  %v6979_v27 = vld [vmem:[%s5706_s18 + $0x54] sm:$0xf] }
 0x102   : > { %v6956_v18 = vpop.permute.xlu1 %2475  ;;  %2145 = vrot.lane.b32.xlu1 %v5227_v8, %s5664_s21  ;;  %v381_v1 = vsel %vm5795_vm5, %v376_v49, %v380_v2  ;;  %v1990_v24 = vsel %vm5737_vm2, %v1988_v19, %v1989_v5  ;;  %v1931_v34 = vsel %vm5737_vm2, %v5186_v54, %v1930_v42  ;;  %v1932_v28 = vrot.slane %v1930_v42, 4  ;;  %v622_v8 = vld [vmem:[%s5706_s18 + $0xa8] sm:$0xe] }
 0x103   : > { %v391_v40 = vsel %vm5795_vm5, %v386_v29, %v390_v41  ;;  %v5338_v46 = vcombine.low %v1987_v53, %v1990_v24  ;;  %v587_v26 = vrot.slane %v585_v61, 4  ;;  %v588_v25 = vshll.u32 %v6954_v52, 16 }
 0x104   : > { %v6966_v37 = vpop.permute.xlu0 %2459  ;;  %v5219_v57 = vcombine.low %v381_v1, %v391_v40  ;;  %v594_v0 = vshll.u32 %v6964_v47, 16  ;;  %v1934_v32 = vsel %vm5737_vm2, %v1932_v28, %v1933_v48  ;;  %v598_v2 = vshrl.u32 %v6964_v47, 16  ;;  %v614_v48 = vld [vmem:[%s5706_s18 + $0x48] sm:$0xe] }
 0x105   : > { %v604_v59 = vshll.u32 %v6975_v22, 16  ;;  %v393_v33 = vshrl.u32 %v6979_v27, 16  ;;  %v5330_v12 = vcombine.low %v1931_v34, %v1934_v32  ;;  %v590_v41 = vrot.slane %v588_v25, 5 }
 0x106   : > { %v6985_v44 = vpop.permute.xlu1 %2569  ;;  %2129 = vrot.lane.b32.xlu0 %v5219_v57, %s5664_s21  ;;  %2735 = vrot.lane.b32.xlu1 %v5338_v46, %s5669_s26  ;;  %v596_v51 = vrot.slane %v594_v0, 5  ;;  %v396_v4 = vshll.u32 %v6979_v27, 16  ;;  %v2814_v45 = vsel %vm2790_vm7, %v6912_v35, %v6809_v23  ;;  %v600_v39 = vrot.slane %v598_v2, 4 }
 0x107   : > { %v395_v5 = vrot.slane %v393_v33, 4  ;;  %v402_v54 = vshll.u32 %v6990_v62, 16  ;;  %v591_v53 = vor.u32 %v590_v41, %v587_v26  ;;  %v406_v29 = vshrl.u32 %v6990_v62, 16 }
 0x108   : > { %v7000_v36 = vpop.permute.xlu0 %2553  ;;  %v398_v19 = vrot.slane %v396_v4, 5  ;;  %v412_v42 = vshll.u32 %v6997_v16, 16  ;;  %v2798_v1 = vsel %vm2790_vm7, %v6931_v50, %v6825_v13  ;;  %v601_v24 = vor.u32 %v600_v39, %v596_v51 }
 0x109   : > { %v606_v23 = vrot.slane %v604_v59, 5  ;;  %v404_v35 = vrot.slane %v402_v54, 5  ;;  %v592_v61 = vrot.slane %v591_v53, 4  ;;  %v408_v46 = vrot.slane %v406_v29, 4  ;;  %v623_v59 = vld [vmem:[%s5706_s18 + $0xb4] sm:$0xe] }
 0x10a   : > { %v7010_v49 = vpop.permute.xlu1 %2571  ;;  %2719 = vrot.lane.b32.xlu0 %v5330_v12, %s5669_s26  ;;  %v399_v40 = vor.u32 %v398_v19, %v395_v5  ;;  %v414_v34 = vrot.slane %v412_v42, 5  ;;  %v602_v57 = vrot.slane %v601_v24, 4  ;;  %v5035_v26 = vrot.slane %v622_v8, 9 }
 0x10b   : > { %v775_v25 = vrot.slane %v6887_v60, 5  ;;  %v5027_v0 = vrot.slane %v614_v48, 9  ;;  %v597_v13 = vsel %vm5795_vm5, %v592_v61, %v596_v51  ;;  %v409_v32 = vor.u32 %v408_v46, %v404_v35  ;;  %v7066_v46 = vld [vmem:[%s5706_s18 + $0x54] sm:$0xf] }
 0x10c   : > { %v7019_v28 = vpop.permute.xlu0 %2555  ;;  %v400_v50 = vrot.slane %v399_v40, 4  ;;  %v719_v2 = vrot.slane %v6905_v6, 5  ;;  %v2845_v33 = vsel %vm2823_vm8, %v6937_v15, %v6833_v17  ;;  %v607_v12 = vsel %vm5795_vm5, %v602_v57, %v606_v23  ;;  %v615_v17 = vld [vmem:[%s5706_s18 + $0x54] sm:$0xe] }
 0x10d   : > { %v776_v60 = vsel %vm5737_vm2, %v5035_v26, %v775_v25  ;;  %v777_v41 = vrot.slane %v775_v25, 4  ;;  %v2829_v51 = vsel %vm2823_vm8, %v6943_v43, %v6847_v55  ;;  %v5228_v39 = vcombine.low %v597_v13, %v607_v12  ;;  %v5065_v23 = vld [vmem:[%s5706_s18 + $0xb4] sm:$0xf]  ;;  %v7088_v13 = vld [vmem:[%s5706_s18 + $0x58] sm:$0xf] }
 0x10e   : > { %v405_v6 = vsel %vm5795_vm5, %v400_v50, %v404_v35  ;;  %v410_v5 = vrot.slane %v409_v32, 4  ;;  %v720_v54 = vsel %vm5737_vm2, %v5027_v0, %v719_v2  ;;  %v721_v8 = vrot.slane %v719_v2, 4  ;;  %v5067_v32 = vld [vmem:[%s5706_s18 + $0xc0] sm:$0xf] }
 0x10f   : > { %v7033_v4 = vpop.permute.xlu1 %2649  ;;  %v779_v15 = vsel %vm5737_vm2, %v777_v41, %v778_v10  ;;  %v5036_v53 = vrot.slane %v623_v59, 9  ;;  %2147 = vrot.lane.b32.xlu1 %v5228_v39, %s5664_s21  ;;  %v782_v19 = vrot.slane %v6964_v47, 5  ;;  %v785_v29 = vrot.slane %v6975_v22, 5 }
 0x110   : > { %v415_v55 = vsel %vm5795_vm5, %v410_v5, %v414_v34  ;;  %v5243_v43 = vcombine.low %v776_v60, %v779_v15  ;;  %v7052_v58 = vpop.permute.xlu0 %2633  ;;  %v723_v42 = vsel %vm5737_vm2, %v721_v8, %v722_v38  ;;  %v5028_v48 = vrot.slane %v615_v17, 9 }
 0x111   : > { %v5220_v10 = vcombine.low %v405_v6, %v415_v55  ;;  %v726_v24 = vrot.slane %v6990_v62, 5  ;;  %v2847_v35 = vsel %vm2823_vm8, %v2814_v45, %v6852_v3  ;;  %v783_v61 = vsel %vm5737_vm2, %v5036_v53, %v782_v19  ;;  %v7074_v45 = vld [vmem:[%s5706_s18 + $0xb8] sm:$0xf]  ;;  %v5051_v6 = vld [vmem:[%s5706_s18 + $0x60] sm:$0xf] }
 0x112   : > { %v784_v22 = vrot.slane %v782_v19, 4  ;;  %v729_v40 = vrot.slane %v6997_v16, 5  ;;  %v2831_v9 = vsel %vm2823_vm8, %v2798_v1, %v6865_v31  ;;  %v5235_v38 = vcombine.low %v720_v54, %v723_v42  ;;  %v7111_v54 = vld [vmem:[%s5706_s18 + $0x64] sm:$0xf]  ;;  %v7124_v19 = vld [vmem:[%s5706_s18 + $0xbc] sm:$0x1] }
 0x113   : > { %2131 = vrot.lane.b32.xlu0 %v5220_v10, %s5664_s21  ;;  %v2878_v34 = vsel %vm2856_vm9, %v2845_v33, %v6878_v56  ;;  %v728_v3 = vrot.slane %v726_v24, 4  ;;  %v7076_v57 = vpop.permute.xlu1 %2651  ;;  %2225 = vrot.lane.b32.xlu1 %v5243_v43, %s5663_s20  ;;  %v727_v26 = vsel %vm5737_vm2, %v5028_v48, %v726_v24  ;;  %v1173_v25 = vshrl.u32 %v5065_v23, 16 }
 0x114   : > { %v786_v16 = vsel %vm5737_vm2, %v784_v22, %v785_v29  ;;  %v1176_v31 = vshll.u32 %v5065_v23, 16  ;;  %v2862_v1 = vsel %vm2856_vm9, %v2829_v51, %v6898_v63  ;;  %v981_v50 = vshrl.u32 %v7066_v46, 16 }
 0x115   : > { %v5244_v56 = vcombine.low %v783_v61, %v786_v16  ;;  %v730_v0 = vsel %vm5737_vm2, %v728_v3, %v729_v40  ;;  %v2880_v2 = vsel %vm2856_vm9, %v2847_v35, %v6907_v20  ;;  %v7096_v59 = vsel %vm2856_vm9, %v2831_v9, %v6921_v11  ;;  %v7100_v12 = vpop.permute.xlu0 %2635  ;;  %v7105_v20 = vld [vmem:[%s5706_s18 + $0xc4] sm:$0xf] }
 0x116   : > { %v1186_v63 = vshrl.u32 %v7074_v45, 16  ;;  %v984_v33 = vshll.u32 %v7066_v46, 16  ;;  %v5236_v60 = vcombine.low %v727_v26, %v730_v0  ;;  %v1175_v41 = vrot.slane %v1173_v25, 4  ;;  %v7144_v0 = vld [vmem:[%s5706_s18 + $0xc8] sm:$0x1] }
 0x117   : > { %2209 = vrot.lane.b32.xlu0 %v5235_v38, %s5663_s20  ;;  %v1178_v51 = vrot.slane %v1176_v31, 5  ;;  %v5259_v39 = vcombine.low %v5065_v23, %v7074_v45  ;;  %2227 = vrot.lane.b32.xlu1 %v5244_v56, %s5663_s20  ;;  %v983_v11 = vrot.slane %v981_v50, 4  ;;  %v994_v5 = vshrl.u32 %v7088_v13, 16  ;;  %v7126_v29 = vpop.permute.xlu1 %2729  ;;  %v7131_v23 = vld [vmem:[%s5706_s18 + $0x5c] sm:$0x1] }
 0x118   : > { %v1197_v17 = vshrl.u32 %v5067_v32, 16  ;;  %v1200_v15 = vshll.u32 %v5067_v32, 16  ;;  %v986_v8 = vrot.slane %v984_v33, 5  ;;  %v5251_v53 = vcombine.low %v7066_v46, %v7088_v13 }
 0x119   : > { %v7117_v55 = vsel %vm2889_vm10, %v2878_v34, %v6927_v7  ;;  %v7121_v43 = vsel %vm2889_vm10, %v2862_v1, %v6947_v14  ;;  %v1210_v10 = vshrl.u32 %v7105_v20, 16  ;;  %v5260_v42 = vcombine.low %v5067_v32, %v7105_v20  ;;  %v7139_v38 = vpop.permute.xlu0 %2713 }
 0x11a   : > { %v1005_v48 = vshrl.u32 %v5051_v6, 16  ;;  %v1008_v24 = vshll.u32 %v5051_v6, 16  ;;  %v1199_v7 = vrot.slane %v1197_v17, 4  ;;  %v1202_v35 = vrot.slane %v1200_v15, 5 }
 0x11b   : > { %2211 = vrot.lane.b32.xlu0 %v5236_v60, %s5663_s20  ;;  %v1018_v61 = vshrl.u32 %v7111_v54, 16  ;;  %v5252_v14 = vcombine.low %v5051_v6, %v7111_v54  ;;  %2321 = vrot.lane.b32.xlu1 %v5259_v39, %s5662_s19  ;;  %v1179_v22 = vor.u32 %v1178_v51, %v1175_v41  ;;  %v1182_v40 = vshll.u32 %v7074_v45, 16 }
 0x11c   : > { %v1188_v46 = vrot.slane %v1186_v63, 4  ;;  %v1192_v9 = vshll.u32 %v7124_v19, 16  ;;  %v987_v34 = vor.u32 %v986_v8, %v983_v11  ;;  %v990_v3 = vshll.u32 %v7088_v13, 16 }
 0x11d   : > { %v996_v16 = vrot.slane %v994_v5, 4  ;;  %v1000_v26 = vshll.u32 %v7131_v23, 16  ;;  %v1007_v25 = vrot.slane %v1005_v48, 4  ;;  %v1010_v31 = vrot.slane %v1008_v24, 5 }
 0x11e   : > { %v1180_v1 = vrot.slane %v1179_v22, 4  ;;  %v1184_v56 = vrot.slane %v1182_v40, 5  ;;  %v7149_v50 = vsel %vm2889_vm10, %v2880_v2, %v6956_v18  ;;  %v1194_v32 = vrot.slane %v1192_v9, 5 }
 0x11f   : > { %2305 = vrot.lane.b32.xlu0 %v5251_v53, %s5662_s19  ;;  %v988_v63 = vrot.slane %v987_v34, 4  ;;  %v992_v33 = vrot.slane %v990_v3, 5  ;;  %v7151_v60 = vpop.permute.xlu1 %2141  ;;  %2323 = vrot.lane.b32.xlu1 %v5260_v42, %s5662_s19  ;;  %v1002_v51 = vrot.slane %v1000_v26, 5  ;;  %v1203_v39 = vor.u32 %v1202_v35, %v1199_v7  ;;  %v7159_v53 = vld [vmem:[%s5706_s18 + $0x68] sm:$0x1] }
 0x120   : > { %v1189_v41 = vor.u32 %v1188_v46, %v1184_v56  ;;  %v1206_v6 = vshll.u32 %v7105_v20, 16  ;;  %v1185_v11 = vsel %vm5795_vm5, %v1180_v1, %v1184_v56  ;;  %v1212_v17 = vrot.slane %v1210_v10, 4  ;;  %v5099_v34 = vld [vmem:[%s5706_s18 + $0xb4] sm:$0xe] }
 0x121   : > { %v997_v5 = vor.u32 %v996_v16, %v992_v33  ;;  %v1216_v18 = vshll.u32 %v7144_v0, 16  ;;  %v1204_v15 = vrot.slane %v1203_v39, 4  ;;  %v1011_v48 = vor.u32 %v1010_v31, %v1007_v25  ;;  %v5091_v25 = vld [vmem:[%s5706_s18 + $0x54] sm:$0xe] }
 0x122   : > { %v1190_v2 = vrot.slane %v1189_v41, 4  ;;  %v1208_v8 = vrot.slane %v1206_v6, 5  ;;  %v7161_v42 = vpop.permute.xlu0 %2125  ;;  %v993_v24 = vsel %vm5795_vm5, %v988_v63, %v992_v33  ;;  %v1014_v10 = vshll.u32 %v7111_v54, 16 }
 0x123   : > { %2307 = vrot.lane.b32.xlu0 %v5252_v14, %s5662_s19  ;;  %v998_v7 = vrot.slane %v997_v5, 4  ;;  %v1020_v35 = vrot.slane %v1018_v61, 4  ;;  %v1218_v46 = vrot.slane %v1216_v18, 5  ;;  %v1012_v9 = vrot.slane %v1011_v48, 4  ;;  %v7174_v31 = vpop.permute.xlu1 %2731 }
 0x124   : > { %v1195_v22 = vsel %vm5795_vm5, %v1190_v2, %v1194_v32  ;;  %v1213_v40 = vor.u32 %v1212_v17, %v1208_v8  ;;  %v1016_v26 = vrot.slane %v1014_v10, 5  ;;  %v1024_v14 = vshll.u32 %v7159_v53, 16 }
 0x125   : > { %v5275_v3 = vcombine.low %v1185_v11, %v1195_v22  ;;  %v1003_v16 = vsel %vm5795_vm5, %v998_v7, %v1002_v51  ;;  %v2897_v61 = vsel %vm2889_vm10, %v7096_v59, %v6966_v37  ;;  %v1209_v56 = vsel %vm5795_vm5, %v1204_v15, %v1208_v8  ;;  %v5100_v11 = vld [vmem:[%s5706_s18 + $0xc0] sm:$0xe] }
 0x126   : > { %v5267_v1 = vcombine.low %v993_v24, %v1003_v16  ;;  %v1214_v32 = vrot.slane %v1213_v40, 4  ;;  %v1017_v63 = vsel %vm5795_vm5, %v1012_v9, %v1016_v26  ;;  %v1021_v33 = vor.u32 %v1020_v35, %v1016_v26  ;;  %v7190_v5 = vpop.permute.xlu0 %2715  ;;  %v5092_v24 = vld [vmem:[%s5706_s18 + $0x60] sm:$0xe] }
 0x127   : > { %2401 = vrot.lane.b32.xlu1 %v5275_v3, %s5665_s22  ;;  %v1026_v41 = vrot.slane %v1024_v14, 5  ;;  %v5115_v51 = vrot.slane %v5099_v34, 9  ;;  %v1384_v37 = vrot.slane %v7074_v45, 5  ;;  %v1387_v59 = vrot.slane %v7124_v19, 5  ;;  %v5145_v34 = vld [vmem:[%s5706_s18 + $0xc0] sm:$0xf] }
 0x128   : > { %2385 = vrot.lane.b32.xlu0 %v5267_v1, %s5665_s22  ;;  %v1219_v39 = vsel %vm5795_vm5, %v1214_v32, %v1218_v46  ;;  %v5107_v6 = vrot.slane %v5091_v25, 9  ;;  %v1022_v18 = vrot.slane %v1021_v33, 4  ;;  %v1328_v2 = vrot.slane %v7088_v13, 5  ;;  %v7223_v14 = vld [vmem:[%s5706_s18 + $0x60] sm:$0xf] }
 0x129   : > { %v5276_v17 = vcombine.low %v1209_v56, %v1219_v39  ;;  %v1331_v15 = vrot.slane %v7131_v23, 5  ;;  %v2944_v8 = vsel %vm2922_vm11, %v7117_v55, %v6985_v44  ;;  %v2928_v45 = vsel %vm2922_vm11, %v7121_v43, %v7000_v36  ;;  %v7242_v33 = vld [vmem:[%s5706_s18 + $0xc4] sm:$0xf]  ;;  %v5147_v39 = vld [vmem:[%s5706_s18 + $0xcc] sm:$0xf] }
 0x12a   : > { %v1385_v19 = vsel %vm5737_vm2, %v5115_v51, %v1384_v37  ;;  %v1386_v48 = vrot.slane %v1384_v37, 4  ;;  %v1027_v13 = vsel %vm5795_vm5, %v1022_v18, %v1026_v41  ;;  %v1329_v23 = vsel %vm5737_vm2, %v5107_v6, %v1328_v2  ;;  %v7257_v6 = vld [vmem:[%s5706_s18 + $0x6c] sm:$0xf] }
 0x12b   : > { %2403 = vrot.lane.b32.xlu1 %v5276_v17, %s5665_s22  ;;  %v1330_v7 = vrot.slane %v1328_v2, 4  ;;  %v5116_v44 = vrot.slane %v5100_v11, 9  ;;  %v5268_v36 = vcombine.low %v1017_v63, %v1027_v13  ;;  %v1391_v10 = vrot.slane %v7105_v20, 5 }
 0x12c   : > { %v1388_v43 = vsel %vm5737_vm2, %v1386_v48, %v1387_v59  ;;  %v1394_v35 = vrot.slane %v7144_v0, 5  ;;  %v5108_v46 = vrot.slane %v5092_v24, 9  ;;  %v1335_v9 = vrot.slane %v7111_v54, 5  ;;  %v7276_v24 = vld [vmem:[%s5706_s18 + $0x70] sm:$0xf] }
 0x12d   : > { %v7208_v55 = vpop.permute.xlu1 %2143  ;;  %v5291_v22 = vcombine.low %v1385_v19, %v1388_v43  ;;  %v1332_v40 = vsel %vm5737_vm2, %v1330_v7, %v1331_v15  ;;  %2387 = vrot.lane.b32.xlu0 %v5268_v36, %s5665_s22  ;;  %v1392_v16 = vsel %vm5737_vm2, %v5116_v44, %v1391_v10  ;;  %v1393_v26 = vrot.slane %v1391_v10, 4  ;;  %v7265_v15 = vld [vmem:[%s5706_s18 + $0x64] sm:$0xf] }
 0x12e   : > { %v5283_v3 = vcombine.low %v1329_v23, %v1332_v40  ;;  %v1338_v20 = vrot.slane %v7159_v53, 5  ;;  %v2946_v54 = vsel %vm2922_vm11, %v7149_v50, %v7010_v49  ;;  %v2930_v25 = vsel %vm2922_vm11, %v2897_v61, %v7019_v28 }
 0x12f   : > { %2481 = vrot.lane.b32.xlu1 %v5291_v22, %s5666_s23  ;;  %v1336_v1 = vsel %vm5737_vm2, %v5108_v46, %v1335_v9  ;;  %v1337_v56 = vrot.slane %v1335_v9, 4  ;;  %v2977_v53 = vsel %vm2955_vm12, %v2944_v8, %v7033_v4  ;;  %v1395_v63 = vsel %vm5737_vm2, %v1393_v26, %v1394_v35 }
 0x130   : > { %v7225_v0 = vpop.permute.xlu0 %2127  ;;  %v1782_v49 = vshrl.u32 %v5145_v34, 16  ;;  %v1785_v50 = vshll.u32 %v5145_v34, 16  ;;  %v2961_v28 = vsel %vm2955_vm12, %v2928_v45, %v7052_v58  ;;  %v5292_v61 = vcombine.low %v1392_v16, %v1395_v63 }
 0x131   : > { %v7235_v32 = vpop.permute.xlu1 %2221  ;;  %v1339_v41 = vsel %vm5737_vm2, %v1337_v56, %v1338_v20  ;;  %v1590_v51 = vshrl.u32 %v7223_v14, 16  ;;  %2465 = vrot.lane.b32.xlu0 %v5283_v3, %s5666_s23  ;;  %v2979_v37 = vsel %vm2955_vm12, %v2946_v54, %v7076_v57  ;;  %v2963_v59 = vsel %vm2955_vm12, %v2930_v25, %v7100_v12  ;;  %v7270_v12 = vld [vmem:[%s5706_s18 + $0xd0] sm:$0xf] }
 0x132   : > { %v5284_v4 = vcombine.low %v1336_v1, %v1339_v41  ;;  %v1593_v58 = vshll.u32 %v7223_v14, 16  ;;  %v1784_v17 = vrot.slane %v1782_v49, 4  ;;  %v1795_v18 = vshrl.u32 %v7242_v33, 16 }
 0x133   : > { %2483 = vrot.lane.b32.xlu1 %v5292_v61, %s5666_s23  ;;  %v5307_v2 = vcombine.low %v5145_v34, %v7242_v33  ;;  %v3010_v57 = vsel %vm2988_vm14, %v2977_v53, %v7126_v29  ;;  %v1787_v8 = vrot.slane %v1785_v50, 5  ;;  %v2994_v45 = vsel %vm2988_vm14, %v2961_v28, %v7139_v38  ;;  %v7282_v29 = vld [vmem:[%s5706_s18 + $0xc8] sm:$0x1] }
 0x134   : > { %v7259_v11 = vpop.permute.xlu0 %2205  ;;  %v1806_v19 = vshrl.u32 %v5147_v39, 16  ;;  %v1809_v48 = vshll.u32 %v5147_v39, 16  ;;  %5536 = vmatprep.mubr.msk.bf16.mxu1 %vm3048_vm15, %v3010_v57  ;;  %v1592_v13 = vrot.slane %v1590_v51, 4  ;;  %v1595_v23 = vrot.slane %v1593_v58, 5  ;;  %5520 = vmatprep.mubr.msk.bf16.mxu0 %vm3048_vm15, %v2994_v45  ;;  %v7314_v58 = vld [vmem:[%s5706_s18 + $0xd4] sm:$0x1] }
 0x135   : > { %v1614_v7 = vshrl.u32 %v7257_v6, 16  ;;  %v1617_v44 = vshll.u32 %v7257_v6, 16  ;;  %2467 = vrot.lane.b32.xlu0 %v5284_v4, %s5666_s23  ;;  %v1603_v38 = vshrl.u32 %v7265_v15, 16  ;;  %v5299_v43 = vcombine.low %v7223_v14, %v7265_v15  ;;  %v7301_v14 = vld [vmem:[%s5706_s18 + $0x68] sm:$0x1] }
 0x136   : > { %v7284_v36 = vpop.permute.xlu1 %2223  ;;  %v1819_v10 = vshrl.u32 %v7270_v12, 16  ;;  %v5308_v35 = vcombine.low %v5147_v39, %v7270_v12  ;;  %v1808_v40 = vrot.slane %v1806_v19, 4  ;;  %v1811_v46 = vrot.slane %v1809_v48, 5 }
 0x137   : > { %2577 = vrot.lane.b32.xlu1 %v5307_v2, %s5667_s24  ;;  %v1627_v9 = vshrl.u32 %v7276_v24, 16  ;;  %v5300_v34 = vcombine.low %v7257_v6, %v7276_v24  ;;  %v1788_v3 = vor.u32 %v1787_v8, %v1784_v17  ;;  %v1791_v16 = vshll.u32 %v7242_v33, 16 }
 0x138   : > { %v7292_v22 = vpop.permute.xlu0 %2207  ;;  %v1797_v26 = vrot.slane %v1795_v18, 4  ;;  %v1801_v20 = vshll.u32 %v7282_v29, 16  ;;  %v1616_v54 = vrot.slane %v1614_v7, 4  ;;  %v1619_v25 = vrot.slane %v1617_v44, 5 }
 0x139   : > { %v1596_v1 = vor.u32 %v1595_v23, %v1592_v13  ;;  %v1599_v56 = vshll.u32 %v7265_v15, 16  ;;  %2561 = vrot.lane.b32.xlu0 %v5299_v43, %s5667_s24  ;;  %v1789_v63 = vrot.slane %v1788_v3, 4  ;;  %v1793_v49 = vrot.slane %v1791_v16, 5 }
 0x13a   : > { %v7304_v53 = vpop.permute.xlu1 %2317  ;;  %v1803_v50 = vrot.slane %v1801_v20, 5  ;;  %v1605_v28 = vrot.slane %v1603_v38, 4  ;;  %v1609_v39 = vshll.u32 %v7301_v14, 16  ;;  %v3012_v4 = vsel %vm2988_vm14, %v2979_v37, %v7174_v31  ;;  %v7325_v31 = vld [vmem:[%s5706_s18 + $0x74] sm:$0x1] }
 0x13b   : > { %2579 = vrot.lane.b32.xlu1 %v5308_v35, %s5667_s24  ;;  %v1597_v41 = vrot.slane %v1596_v1, 4  ;;  %v1601_v51 = vrot.slane %v1599_v56, 5  ;;  %v1794_v6 = vsel %vm5795_vm5, %v1789_v63, %v1793_v49  ;;  %v1798_v17 = vor.u32 %v1797_v26, %v1793_v49  ;;  %5537 = vmatmul.mubr.msk.bf16.gmra.mxu1 %vm3048_vm15, %v3012_v4 }
 0x13c   : > { %v7307_v61 = vpop.permute.xlu0 %2301  ;;  %v2996_v18 = vsel %vm2988_vm14, %v2963_v59, %v7190_v5  ;;  %v1812_v2 = vor.u32 %v1811_v46, %v1808_v40  ;;  %v1611_v45 = vrot.slane %v1609_v39, 5  ;;  %v1815_v19 = vshll.u32 %v7270_v12, 16 }
 0x13d   : > { %v1602_v57 = vsel %vm5795_vm5, %v1597_v41, %v1601_v51  ;;  %v1606_v8 = vor.u32 %v1605_v28, %v1601_v51  ;;  %5521 = vmatmul.mubr.msk.bf16.gmra.mxu0 %vm3048_vm15, %v2996_v18  ;;  %2563 = vrot.lane.b32.xlu0 %v5300_v34, %s5667_s24  ;;  %v1799_v37 = vrot.slane %v1798_v17, 4  ;;  %v1821_v5 = vrot.slane %v1819_v10, 4  ;;  %v5179_v34 = vld [vmem:[%s5706_s18 + $0xc0] sm:$0xe]  ;;  %v5180_v17 = vld [vmem:[%s5706_s18 + $0xcc] sm:$0xe] }
 0x13e   : > { %v1813_v48 = vrot.slane %v1812_v2, 4  ;;  %v1825_v59 = vshll.u32 %v7314_v58, 16  ;;  %v7330_v13 = vpop.permute.xlu1 %2319  ;;  %v1817_v7 = vrot.slane %v1815_v19, 5  ;;  %v1620_v44 = vor.u32 %v1619_v25, %v1616_v54  ;;  %v5171_v25 = vld [vmem:[%s5706_s18 + $0x60] sm:$0xe] }
 0x13f   : > { %v1607_v23 = vrot.slane %v1606_v8, 4  ;;  %v1623_v38 = vshll.u32 %v7276_v24, 16  ;;  %v1804_v35 = vsel %vm5795_vm5, %v1799_v37, %v1803_v50  ;;  %v1629_v40 = vrot.slane %v1627_v9, 4  ;;  %v5172_v19 = vld [vmem:[%s5706_s18 + $0x6c] sm:$0xe] }
 0x140   : > { %v7333_v43 = vpop.permute.xlu0 %2303  ;;  %v1633_v46 = vshll.u32 %v7325_v31, 16  ;;  %v5323_v10 = vcombine.low %v1794_v6, %v1804_v35  ;;  %v1822_v16 = vor.u32 %v1821_v5, %v1817_v7  ;;  %v1827_v26 = vrot.slane %v1825_v59, 5 }
 0x141   : > { %v1612_v3 = vsel %vm5795_vm5, %v1607_v23, %v1611_v45  ;;  %v1621_v1 = vrot.slane %v1620_v44, 4  ;;  %v1625_v54 = vrot.slane %v1623_v38, 5  ;;  %v1818_v56 = vsel %vm5795_vm5, %v1813_v48, %v1817_v7 }
 0x142   : > { %v5315_v20 = vcombine.low %v1602_v57, %v1612_v3  ;;  %2657 = vrot.lane.b32.xlu1 %v5323_v10, %s5668_s25  ;;  %v1823_v9 = vrot.slane %v1822_v16, 4  ;;  %v5195_v63 = vrot.slane %v5179_v34, 9  ;;  %v1635_v50 = vrot.slane %v1633_v46, 5 }
 0x143   : > { %v1630_v49 = vor.u32 %v1629_v40, %v1625_v54  ;;  %v1993_v28 = vrot.slane %v7242_v33, 5  ;;  %v1996_v41 = vrot.slane %v7282_v29, 5  ;;  %v1626_v4 = vsel %vm5795_vm5, %v1621_v1, %v1625_v54 }
 0x144   : > { %2641 = vrot.lane.b32.xlu0 %v5315_v20, %s5668_s25  ;;  %v1828_v39 = vsel %vm5795_vm5, %v1823_v9, %v1827_v26  ;;  %v5187_v6 = vrot.slane %v5171_v25, 9  ;;  %v1937_v29 = vrot.slane %v7265_v15, 5  ;;  %v1940_v45 = vrot.slane %v7301_v14, 5 }
 0x145   : > { %v7348_v51 = vpop.permute.xlu1 %2397  ;;  %v5324_v2 = vcombine.low %v1818_v56, %v1828_v39  ;;  %v1631_v57 = vrot.slane %v1630_v49, 4  ;;  %v1994_v8 = vsel %vm5737_vm2, %v5195_v63, %v1993_v28  ;;  %v1995_v33 = vrot.slane %v1993_v28, 4  ;;  %v5641_v28 = vld [vmem:[%s5706_s18 + $0x90] sm:$0xf] }
 0x146   : > { %v7355_v18 = vpop.permute.xlu0 %2381  ;;  %v5196_v5 = vrot.slane %v5180_v17, 9  ;;  %v2000_v59 = vrot.slane %v7270_v12, 5  ;;  %v1938_v44 = vsel %vm5737_vm2, %v5187_v6, %v1937_v29  ;;  %v1939_v15 = vrot.slane %v1937_v29, 4  ;;  %v5644_v6 = vld [vmem:[%s5706_s18 + $0x34] sm:$0xf] }
 0x147   : > { %2659 = vrot.lane.b32.xlu1 %v5324_v2, %s5668_s25  ;;  %v1636_v37 = vsel %vm5795_vm5, %v1631_v57, %v1635_v50  ;;  %v1997_v48 = vsel %vm5737_vm2, %v1995_v33, %v1996_v41  ;;  %v2003_v35 = vrot.slane %v7314_v58, 5  ;;  %v5188_v30 = vrot.slane %v5172_v19, 9  ;;  %v5642_v41 = vld [vmem:[%s5706_s18 + $0x94] sm:$0xf] }
 0x148   : > { %v5316_v23 = vcombine.low %v1626_v4, %v1636_v37  ;;  %v5339_v7 = vcombine.low %v1994_v8, %v1997_v48  ;;  %v2001_v14 = vsel %vm5737_vm2, %v5196_v5, %v2000_v59  ;;  %v2002_v38 = vrot.slane %v2000_v59, 4 }
 0x149   : > { %v1941_v12 = vsel %vm5737_vm2, %v1939_v15, %v1940_v45  ;;  %v1944_v46 = vrot.slane %v7276_v24, 5  ;;  %v1947_v34 = vrot.slane %v7325_v31, 5  ;;  %v5209_v39 = vcombine.low %v5641_v28, %v5642_v41 }
 0x14a   : > { %2643 = vrot.lane.b32.xlu0 %v5316_v23, %s5668_s25  ;;  %v5331_v3 = vcombine.low %v1938_v44, %v1941_v12  ;;  %v2004_v58 = vsel %vm5737_vm2, %v2002_v38, %v2003_v35  ;;  %v5201_v17 = vcombine.low %v5643_v21, %v5644_v6  ;;  %v5647_v35 = vld [vmem:[%s5706_s18 + $0x3c] sm:$0xf]  ;;  %vm4888_vm5 = vcmask 1046534  }
 0x14b   : > { %v7373_v40 = vpop.permute.xlu1 %2399  ;;  %2737 = vrot.lane.b32.xlu1 %v5339_v7, %s5669_s26  ;;  %v5340_v16 = vcombine.low %v2001_v14, %v2004_v58  ;;  %v1945_v26 = vsel %vm5737_vm2, %v5188_v30, %v1944_v46  ;;  %v1946_v20 = vrot.slane %v1944_v46, 4  ;;  %v2780_v57 = vsel %vm2741_vm6, %v5209_v39, %v7151_v60  ;;  %v5646_v7 = vld [vmem:[%s5706_s18 + $0xa0] sm:$0xf] }
 0x14c   : > { %v7380_v10 = vpop.permute.xlu0 %2383  ;;  %v2816_v8 = vsel %vm2790_vm7, %v2780_v57, %v7235_v32  ;;  %v2756_v45 = vsel %vm2741_vm6, %v5201_v17, %v7161_v42  ;;  %v5648_v30 = vld [vmem:[%s5706_s18 + $0x40] sm:$0xf] }
 0x14d   : > { %v1948_v24 = vsel %vm5737_vm2, %v1946_v20, %v1947_v34  ;;  %v2849_v33 = vsel %vm2823_vm8, %v2816_v8, %v7304_v53  ;;  %v2800_v37 = vsel %vm2790_vm7, %v2756_v45, %v7259_v11  ;;  %v5202_v12 = vcombine.low %v5647_v35, %v5648_v30 }
 0x14e   : > { %2721 = vrot.lane.b32.xlu0 %v5331_v3, %s5669_s26  ;;  %v5332_v54 = vcombine.low %v1945_v26, %v1948_v24  ;;  %v2882_v19 = vsel %vm2856_vm9, %v2849_v33, %v7348_v51  ;;  %v2833_v32 = vsel %vm2823_vm8, %v2800_v37, %v7307_v61  ;;  %v5645_v61 = vld [vmem:[%s5706_s18 + $0x9c] sm:$0xf]  ;;  %v5670_v33 = vmov 1983009808   ;;  %v5649_v37 = vld [vmem:[%s5706_s18 + $0xa8] sm:$0xf] }
 0x14f   : > { %v2478_v1 = vpop.permute.xlu1 %2477  ;;  %2739 = vrot.lane.b32.xlu1 %v5340_v16, %s5669_s26  ;;  %v2866_v5 = vsel %vm2856_vm9, %v2833_v32, %v7355_v18  ;;  %v5210_v44 = vcombine.low %v5645_v61, %v5646_v7  ;;  %v2759_v16 = vsel %vm2741_vm6, %v5202_v12, %v7225_v0  ;;  %v3314_v45 = vlaneseq  ;;  %v7463_v7 = vld [vmem:[%s7784_s2] ss:$0 sm:$0xff] }
 0x150   : > { %v2462_v31 = vpop.permute.xlu0 %2461  ;;  %v2915_v60 = vsel %vm2889_vm10, %v2882_v19, %v2478_v1  ;;  %vm4882_vm2 = vcmask 1043459  }
 0x151   : > { %v2899_v51 = vsel %vm2889_vm10, %v2866_v5, %v2462_v31  ;;  %v2783_v38 = vsel %vm2741_vm6, %v5210_v44, %v7208_v55  ;;  %v2802_v55 = vsel %vm2790_vm7, %v2759_v16, %v7292_v22 }
 0x152   : > { %2723 = vrot.lane.b32.xlu0 %v5332_v54, %s5669_s26  ;;  %v2818_v46 = vsel %vm2790_vm7, %v2783_v38, %v7284_v36  ;;  %v2835_v36 = vsel %vm2823_vm8, %v2802_v55, %v7333_v43 }
 0x153   : > { %v2480_v25 = vpop.permute.xlu1 %2479  ;;  %v2851_v34 = vsel %vm2823_vm8, %v2818_v46, %v7330_v13 }
 0x154   : > { %v2464_v56 = vpop.permute.xlu0 %2463  ;;  %v2884_v58 = vsel %vm2856_vm9, %v2851_v34, %v7373_v40  ;;  %v2868_v40 = vsel %vm2856_vm9, %v2835_v36, %v7380_v10 }
 0x155   : > { %v2917_v26 = vsel %vm2889_vm10, %v2884_v58, %v2480_v25  ;;  %v2901_v0 = vsel %vm2889_vm10, %v2868_v40, %v2464_v56 }
 0x157   : > { %v2574_v9 = vpop.permute.xlu1 %2573 }
 0x158   : > { %v2558_v63 = vpop.permute.xlu0 %2557  ;;  %v2948_v48 = vsel %vm2922_vm11, %v2915_v60, %v2574_v9  ;;  %v5650_v60 = vld [vmem:[%s5706_s18 + $0xac] sm:$0xf] }
 0x159   : > { %v2932_v23 = vsel %vm2922_vm11, %v2899_v51, %v2558_v63  ;;  %v5211_v32 = vcombine.low %v5649_v37, %v5650_v60 }
 0x15b   : > { %v2576_v49 = vpop.permute.xlu1 %2575 }
 0x15c   : > { %v2560_v50 = vpop.permute.xlu0 %2559  ;;  %v2950_v20 = vsel %vm2922_vm11, %v2917_v26, %v2576_v49 }
 0x15d   : > { %v2934_v22 = vsel %vm2922_vm11, %v2901_v0, %v2560_v50 }
 0x162   : > { %v2654_v4 = vpop.permute.xlu1 %2653 }
 0x163   : > { %v2638_v2 = vpop.permute.xlu0 %2637  ;;  %v2981_v42 = vsel %vm2955_vm12, %v2948_v48, %v2654_v4  ;;  %v5651_v48 = vld [vmem:[%s5706_s18 + $0x48] sm:$0xf] }
 0x164   : > { %v2965_v15 = vsel %vm2955_vm12, %v2932_v23, %v2638_v2  ;;  %v5204_v23 = vcombine.low %v6979_v27, %v6990_v62 }
 0x167   : > { %v2656_v29 = vpop.permute.xlu1 %2655 }
 0x168   : > { %v2983_v1 = vsel %vm2955_vm12, %v2950_v20, %v2656_v29  ;;  %v3312_v29 = vunpack.c.l.s4 %v5670_v33 }
 0x16a   : > { %v2640_v53 = vpop.permute.xlu0 %2639  ;;  %v3313_v51 = vunpack.c.0.s8 %v3312_v29 }
 0x16b   : > { %v2734_v59 = vpop.permute.xlu1 %2733  ;;  %v2967_v54 = vsel %vm2955_vm12, %v2934_v22, %v2640_v53  ;;  %v5652_v53 = vld [vmem:[%s5706_s18 + $0x4c] sm:$0xf] }
 0x16c   : > { %v3014_v11 = vsel %vm2988_vm14, %v2981_v42, %v2734_v59  ;;  %v5203_v5 = vcombine.low %v5651_v48, %v5652_v53  ;;  %v5212_v42 = vcombine.low %v6954_v52, %v6964_v47 }
 0x16d   : > { %5540 = vmatprep.mubr.msk.bf16.mxu1 %vm3048_vm15, %v3014_v11  ;;  %v3315_v11 = vshrl.u32 %v3314_v45, 7 }
 0x16e   : > { %v2718_v14 = vpop.permute.xlu0 %2717 }
 0x16f   : > { %v2998_v18 = vsel %vm2988_vm14, %v2965_v15, %v2718_v14  ;;  %v7465_v44 = vsub.s32 0, %v3315_v11 }
 0x170   : > { %5524 = vmatprep.mubr.msk.bf16.mxu0 %vm3048_vm15, %v2998_v18  ;;  %v7470_v18 = vsub.s32 %v3313_v51, %v3315_v11 }
 0x174   : > { %v2146_v3 = vpop.permute.xlu1 %2145 }
 0x175   : > { %v2786_v15 = vsel %vm2741_vm6, %v5211_v32, %v2146_v3 }
 0x178   : > { %v2130_v13 = vpop.permute.xlu0 %2129  ;;  %v2736_v24 = vpop.permute.xlu1 %2735 }
 0x179   : > { %v3016_v31 = vsel %vm2988_vm14, %v2983_v1, %v2736_v24  ;;  %v2762_v14 = vsel %vm2741_vm6, %v5203_v5, %v2130_v13 }
 0x17a   : > { %5541 = vmatmul.mubr.msk.bf16.gmra.mxu1 %vm3048_vm15, %v3016_v31 }
 0x17c   : > { %v2720_v25 = vpop.permute.xlu0 %2719 }
 0x17d   : > { %v3000_v43 = vsel %vm2988_vm14, %v2967_v54, %v2720_v25 }
 0x17e   : > { %5525 = vmatmul.mubr.msk.bf16.gmra.mxu0 %vm3048_vm15, %v3000_v43 }
 0x181   : > { %v2148_v9 = vpop.permute.xlu1 %2147 }
 0x182   : > { %v2789_v52 = vsel %vm2741_vm6, %v5212_v42, %v2148_v9 }
 0x185   : > { %v2132_v63 = vpop.permute.xlu0 %2131  ;;  %v2226_v49 = vpop.permute.xlu1 %2225 }
 0x186   : > { %v2765_v38 = vsel %vm2741_vm6, %v5204_v23, %v2132_v63  ;;  %v2820_v27 = vsel %vm2790_vm7, %v2786_v15, %v2226_v49  ;;  %vm4890_vm6 = vcmask 1047559  }
 0x189   : > { %v2210_v28 = vpop.permute.xlu0 %2209  ;;  %v2228_v10 = vpop.permute.xlu1 %2227 }
 0x18a   : > { %v2804_v62 = vsel %vm2790_vm7, %v2762_v14, %v2210_v28  ;;  %v2822_v35 = vsel %vm2790_vm7, %v2789_v52, %v2228_v10 }
 0x18d   : > { %v2212_v41 = vpop.permute.xlu0 %2211  ;;  %v2322_v56 = vpop.permute.xlu1 %2321 }
 0x18e   : > { %v2806_v12 = vsel %vm2790_vm7, %v2765_v38, %v2212_v41  ;;  %v2853_v46 = vsel %vm2823_vm8, %v2820_v27, %v2322_v56 }
 0x191   : > { %v2306_v39 = vpop.permute.xlu0 %2305  ;;  %v2324_v4 = vpop.permute.xlu1 %2323 }
 0x192   : > { %v2837_v34 = vsel %vm2823_vm8, %v2804_v62, %v2306_v39  ;;  %v2855_v16 = vsel %vm2823_vm8, %v2822_v35, %v2324_v4 }
 0x195   : > { %v2308_v50 = vpop.permute.xlu0 %2307 }
 0x196   : > { %v2839_v26 = vsel %vm2823_vm8, %v2806_v12, %v2308_v50 }
 0x199   : > { %v2402_v21 = vpop.permute.xlu1 %2401 }
 0x19a   : > { %v2386_v6 = vpop.permute.xlu0 %2385  ;;  %v2886_v55 = vsel %vm2856_vm9, %v2853_v46, %v2402_v21 }
 0x19b   : > { %v2870_v13 = vsel %vm2856_vm9, %v2837_v34, %v2386_v6 }
 0x19d   : > { %v2404_v17 = vpop.permute.xlu1 %2403 }
 0x19e   : > { %v2888_v24 = vsel %vm2856_vm9, %v2855_v16, %v2404_v17 }
 0x19f   : > { %v2388_v2 = vpop.permute.xlu0 %2387 }
 0x1a0   : > { %v2872_v54 = vsel %vm2856_vm9, %v2839_v26, %v2388_v2 }
 0x1a1   : > { %v2482_v57 = vpop.permute.xlu1 %2481 }
 0x1a2   : > { %v2919_v25 = vsel %vm2889_vm10, %v2886_v55, %v2482_v57 }
 0x1a3   : > { %v2466_v8 = vpop.permute.xlu0 %2465 }
 0x1a4   : > { %v2903_v43 = vsel %vm2889_vm10, %v2870_v13, %v2466_v8 }
 0x1a5   : > { %v2484_v19 = vpop.permute.xlu1 %2483 }
 0x1a6   : > { %v2921_v63 = vsel %vm2889_vm10, %v2888_v24, %v2484_v19 }
 0x1a7   : > { %v2468_v59 = vpop.permute.xlu0 %2467 }
 0x1a8   : > { %v2905_v41 = vsel %vm2889_vm10, %v2872_v54, %v2468_v59 }
 0x1a9   : > { %v2578_v61 = vpop.permute.xlu1 %2577 }
 0x1aa   : > { %v2952_v50 = vsel %vm2922_vm11, %v2919_v25, %v2578_v61 }
 0x1ab   : > { %v2562_v47 = vpop.permute.xlu0 %2561 }
 0x1ac   : > { %v2936_v21 = vsel %vm2922_vm11, %v2903_v43, %v2562_v47 }
 0x1ad   : > { %v2580_v20 = vpop.permute.xlu1 %2579 }
 0x1ae   : > { %v5518_v30 = vpop.f32.mrf.mxu0  ;;  %v5534_v58 = vpop.f32.mrf.mxu1  ;;  %v2954_v57 = vsel %vm2922_vm11, %v2921_v63, %v2580_v20 }
 0x1af   : > { %v3128_v3 = vadd.f32 %v5518_v30, %v7463_v7  ;;  %v3192_v36 = vadd.f32 %v5534_v58, %v7463_v7  ;;  %v2564_v40 = vpop.permute.xlu0 %2563 }
 0x1b0   : > { %v3119_v1 = vpop.f32.mrf.mxu0  ;;  %v3183_v22 = vpop.f32.mrf.mxu1  ;;  %v2938_v37 = vsel %vm2922_vm11, %v2905_v41, %v2564_v40 }
 0x1b1   : > { %v3248_v31 = vmax.f32 %v3128_v3, 0.0  ;;  %v3120_v0 = vadd.f32 %v7463_v7, %v3119_v1  ;;  %v3264_v9 = vmax.f32 %v3192_v36, 0.0  ;;  %v3184_v4 = vadd.f32 %v7463_v7, %v3183_v22 }
 0x1b2   : > { %v5519_v2 = vpop.f32.mrf.mxu0  ;;  %v5535_v19 = vpop.f32.mrf.mxu1 }
 0x1b3   : > { %v3344_v49 = vcombine.high %v3248_v31, %v3248_v31  ;;  %v3351_v28 = vrot.slane %v3248_v31, %v7470_v18  ;;  %v3246_v10 = vmax.f32 %v3120_v0, 0.0  ;;  %v3616_v56 = vcombine.high %v3264_v9, %v3264_v9 }
 0x1b4   : > { %v3623_v39 = vrot.slane %v3264_v9, %v7470_v18  ;;  %v2658_v8 = vpop.permute.xlu1 %2657  ;;  %v3262_v59 = vmax.f32 %v3184_v4, 0.0  ;;  %v3131_v51 = vadd.f32 %v5519_v2, %v7463_v7  ;;  %v3195_v15 = vadd.f32 %v5535_v19, %v7463_v7 }
 0x1b5   : > { %v3358_v6 = vrot.slane %v3344_v49, %v7470_v18  ;;  %v3359_v17 = vcombine.high %v3351_v28, %v3351_v28  ;;  %v3630_v33 = vrot.slane %v3616_v56, %v7470_v18  ;;  %v3310_v45 = vcombine.high %v3246_v10, %v3246_v10 }
 0x1b6   : > { %v3631_v29 = vcombine.high %v3623_v39, %v3623_v39  ;;  %v2642_v60 = vpop.permute.xlu0 %2641  ;;  %v5369_v48 = vrot.slane %v3351_v28, 9  ;;  %v3317_v53 = vrot.slane %v3246_v10, %v7470_v18  ;;  %v2985_v11 = vsel %vm2955_vm12, %v2952_v50, %v2658_v8 }
 0x1b7   : > { %v3360_v32 = vcombine.high %v3358_v6, %v3358_v6  ;;  %v5370_v5 = vrot.slane %v3359_v17, 9  ;;  %v5371_v42 = vrot.slane %v3358_v6, 9  ;;  %v2969_v23 = vsel %vm2955_vm12, %v2936_v21, %v2642_v60 }
 0x1b8   : > { %v5433_v61 = vrot.slane %v3623_v39, 9  ;;  %v7506_v52 = vcombine.high %v3630_v33, %v3630_v33  ;;  %v5434_v47 = vrot.slane %v3631_v29, 9  ;;  %v3324_v38 = vrot.slane %v3310_v45, %v7470_v18 }
 0x1b9   : > { %v5372_v14 = vrot.slane %v3360_v32, 9  ;;  %v2660_v27 = vpop.permute.xlu1 %2659  ;;  %v4374_v62 = vmax.f32 %v3351_v28, %v5369_v48  ;;  %v5435_v35 = vrot.slane %v3630_v33, 9  ;;  %v3325_v30 = vcombine.high %v3317_v53, %v3317_v53 }
 0x1ba   : > { %v5361_v12 = vrot.slane %v3317_v53, 9  ;;  %v4375_v46 = vmax.f32 %v3359_v17, %v5370_v5  ;;  %v7509_v34 = vmax.f32 %v3358_v6, %v5371_v42  ;;  %v3326_v3 = vcombine.high %v3324_v38, %v3324_v38 }
 0x1bb   : > { %v5363_v58 = vrot.slane %v3324_v38, 9  ;;  %v5362_v16 = vrot.slane %v3325_v30, 9  ;;  %v3582_v55 = vcombine.high %v3262_v59, %v3262_v59  ;;  %v3589_v20 = vrot.slane %v3262_v59, %v7470_v18 }
 0x1bc   : > { %v4366_v26 = vmax.f32 %v3317_v53, %v5361_v12  ;;  %v2644_v36 = vpop.permute.xlu0 %2643  ;;  %v7512_v1 = vmax.f32 %v3360_v32, %v5372_v14  ;;  %v5436_v13 = vrot.slane %v7506_v52, 9  ;;  %v4438_v24 = vmax.f32 %v3623_v39, %v5433_v61 }
 0x1bd   : > { %v4439_v40 = vmax.f32 %v3631_v29, %v5434_v47  ;;  %v2738_v31 = vpop.permute.xlu1 %2737  ;;  %v4440_v0 = vmax.f32 %v3630_v33, %v5435_v35  ;;  %v5364_v22 = vrot.slane %v3326_v3, 9  ;;  %v4367_v54 = vmax.f32 %v3325_v30, %v5362_v16 }
 0x1be   : > { %v3596_v25 = vrot.slane %v3582_v55, %v7470_v18  ;;  %v3018_v43 = vsel %vm2988_vm14, %v2985_v11, %v2738_v31  ;;  %v4368_v9 = vmax.f32 %v3324_v38, %v5363_v58  ;;  %v3597_v63 = vcombine.high %v3589_v20, %v3589_v20 }
 0x1bf   : > { %v3249_v49 = vmax.f32 %v3131_v51, 0.0  ;;  %5544 = vmatprep.mubr.msk.bf16.mxu1 %vm3048_vm15, %v3018_v43  ;;  %v4494_v28 = vmax.f32 %v4366_v26, %v4374_v62  ;;  %v4495_v10 = vmax.f32 %v4367_v54, %v4375_v46  ;;  %v5425_v56 = vrot.slane %v3589_v20, 9  ;;  %v3122_v46 = vpop.f32.mrf.mxu0 }
 0x1c0   : > { %v3598_v41 = vcombine.high %v3596_v25, %v3596_v25  ;;  %v2987_v39 = vsel %vm2955_vm12, %v2954_v57, %v2660_v27  ;;  %v2722_v4 = vpop.permute.xlu0 %2721  ;;  %v5426_v50 = vrot.slane %v3597_v63, 9  ;;  %v5427_v21 = vrot.slane %v3596_v25, 9 }
 0x1c1   : > { %v3265_v6 = vmax.f32 %v3195_v15, 0.0  ;;  %v3002_v17 = vsel %vm2988_vm14, %v2969_v23, %v2722_v4  ;;  %v2740_v2 = vpop.permute.xlu1 %2739  ;;  %v4369_v8 = vmax.f32 %v3326_v3, %v5364_v22  ;;  %v4430_v29 = vmax.f32 %v3589_v20, %v5425_v56 }
 0x1c2   : > { %v5428_v33 = vrot.slane %v3598_v41, 9  ;;  %v2971_v45 = vsel %vm2955_vm12, %v2938_v37, %v2644_v36  ;;  %5528 = vmatprep.mubr.msk.bf16.mxu0 %vm3048_vm15, %v3002_v17  ;;  %v3020_v19 = vsel %vm2988_vm14, %v2987_v39, %v2740_v2  ;;  %v4431_v60 = vmax.f32 %v3597_v63, %v5426_v50  ;;  %v3186_v36 = vpop.f32.mrf.mxu1 }
 0x1c3   : > { %v4432_v32 = vmax.f32 %v3596_v25, %v5427_v21  ;;  %5545 = vmatmul.mubr.msk.bf16.gmra.mxu1 %vm3048_vm15, %v3020_v19  ;;  %v4496_v57 = vmax.f32 %v4368_v9, %v7509_v34  ;;  %v4625_v48 = vrot.slane %v4494_v28, %v7465_v44  ;;  %v4629_v53 = vrot.slane %v4495_v10, %v7465_v44 }
 0x1c4   : > { %v3361_v5 = vcombine.high %v3249_v49, %v3249_v49  ;;  %v2724_v42 = vpop.permute.xlu0 %2723  ;;  %v4433_v59 = vmax.f32 %v3598_v41, %v5428_v33  ;;  %v4526_v51 = vmax.f32 %v4430_v29, %v4438_v24  ;;  %v4527_v11 = vmax.f32 %v4431_v60, %v4439_v40 }
 0x1c5   : > { %v3368_v37 = vrot.slane %v3249_v49, %v7470_v18  ;;  %v3004_v23 = vsel %vm2988_vm14, %v2971_v45, %v2724_v42  ;;  %v4497_v61 = vmax.f32 %v4369_v8, %v7512_v1  ;;  %v4528_v15 = vmax.f32 %v4432_v32, %v4440_v0 }
 0x1c6   : > { %v3375_v14 = vrot.slane %v3361_v5, %v7470_v18  ;;  %5529 = vmatmul.mubr.msk.bf16.gmra.mxu0 %vm3048_vm15, %v3004_v23  ;;  %v4441_v47 = vmax.f32 %v7506_v52, %v5436_v13  ;;  %v4757_v38 = vrot.slane %v4527_v11, %v7465_v44  ;;  %v4633_v62 = vrot.slane %v4496_v57, %v7465_v44 }
 0x1c7   : > { %v3376_v27 = vcombine.high %v3368_v37, %v3368_v37  ;;  %v4879_v35 = vsel %vm4878_vm0, %v4629_v53, %v4625_v48  ;;  %v3633_v12 = vcombine.high %v3265_v6, %v3265_v6  ;;  %v4753_v3 = vrot.slane %v4526_v51, %v7465_v44 }
 0x1c8   : > { %v3377_v30 = vcombine.high %v3375_v14, %v3375_v14  ;;  %v4529_v34 = vmax.f32 %v4433_v59, %v4441_v47  ;;  %v5373_v58 = vrot.slane %v3368_v37, 9  ;;  %v3640_v16 = vrot.slane %v3265_v6, %v7470_v18 }
 0x1c9   : > { %v4637_v52 = vrot.slane %v4497_v61, %v7465_v44  ;;  %v4761_v26 = vrot.slane %v4528_v15, %v7465_v44  ;;  %v5375_v55 = vrot.slane %v3375_v14, 9  ;;  %v3647_v20 = vrot.slane %v3633_v12, %v7470_v18 }
 0x1ca   : > { %v4913_v1 = vsel %vm4878_vm0, %v4757_v38, %v4753_v3  ;;  %v5374_v13 = vrot.slane %v3376_v27, 9  ;;  %v3648_v24 = vcombine.high %v3640_v16, %v3640_v16  ;;  %v3123_v40 = vadd.f32 %v7463_v7, %v3122_v46 }
 0x1cb   : > { %v4881_v31 = vsel %vm4880_vm1, %v4633_v62, %v4879_v35  ;;  %v5376_v0 = vrot.slane %v3377_v30, 9  ;;  %v3649_v22 = vcombine.high %v3647_v20, %v3647_v20  ;;  %v5437_v54 = vrot.slane %v3640_v16, 9 }
 0x1cc   : > { %v4765_v25 = vrot.slane %v4529_v34, %v7465_v44  ;;  %v4378_v43 = vmax.f32 %v3368_v37, %v5373_v58  ;;  %v3247_v9 = vmax.f32 %v3123_v40, 0.0  ;;  %v3187_v63 = vadd.f32 %v7463_v7, %v3186_v36 }
 0x1cd   : > { %v4914_v49 = vsel %vm4880_vm1, %v4761_v26, %v4913_v1  ;;  %v4380_v28 = vmax.f32 %v3375_v14, %v5375_v55  ;;  %v5438_v10 = vrot.slane %v3648_v24, 9  ;;  %v5439_v41 = vrot.slane %v3647_v20, 9 }
 0x1ce   : > { %v4379_v56 = vmax.f32 %v3376_v27, %v5374_v13  ;;  %v3327_v39 = vcombine.high %v3247_v9, %v3247_v9  ;;  %v3334_v4 = vrot.slane %v3247_v9, %v7470_v18  ;;  %v3263_v50 = vmax.f32 %v3187_v63, 0.0 }
 0x1cf   : > { %v4381_v21 = vmax.f32 %v3377_v30, %v5376_v0  ;;  %v5440_v6 = vrot.slane %v3649_v22, 9  ;;  %v4442_v17 = vmax.f32 %v3640_v16, %v5437_v54  ;;  %v4883_v2 = vsel %vm4882_vm2, %v4637_v52, %v4881_v31 }
 0x1d0   : > { %v3341_v8 = vrot.slane %v3327_v39, %v7470_v18  ;;  %v3342_v33 = vcombine.high %v3334_v4, %v3334_v4  ;;  %v5365_v29 = vrot.slane %v3334_v4, 9  ;;  %v3599_v45 = vcombine.high %v3263_v50, %v3263_v50 }
 0x1d1   : > { %v4443_v19 = vmax.f32 %v3648_v24, %v5438_v10  ;;  %v4444_v60 = vmax.f32 %v3647_v20, %v5439_v41  ;;  %v3606_v32 = vrot.slane %v3263_v50, %v7470_v18  ;;  %v4915_v57 = vsel %vm4882_vm2, %v4765_v25, %v4914_v49 }
 0x1d2   : > { %v3343_v48 = vcombine.high %v3341_v8, %v3341_v8  ;;  %v5366_v53 = vrot.slane %v3342_v33, 9  ;;  %v5367_v5 = vrot.slane %v3341_v8, 9  ;;  %v4370_v42 = vmax.f32 %v3334_v4, %v5365_v29 }
 0x1d3   : > { %v4445_v59 = vmax.f32 %v3649_v22, %v5440_v6  ;;  %v3613_v51 = vrot.slane %v3599_v45, %v7470_v18  ;;  %v3614_v11 = vcombine.high %v3606_v32, %v3606_v32  ;;  %v5429_v37 = vrot.slane %v3606_v32, 9 }
 0x1d4   : > { %v5368_v23 = vrot.slane %v3343_v48, 9  ;;  %v4371_v61 = vmax.f32 %v3342_v33, %v5366_v53  ;;  %v4372_v15 = vmax.f32 %v3341_v8, %v5367_v5  ;;  %v4498_v14 = vmax.f32 %v4370_v42, %v4378_v43 }
 0x1d5   : > { %v3615_v47 = vcombine.high %v3613_v51, %v3613_v51  ;;  %v5430_v38 = vrot.slane %v3614_v11, 9  ;;  %v5431_v27 = vrot.slane %v3613_v51, 9  ;;  %v4434_v62 = vmax.f32 %v3606_v32, %v5429_v37 }
 0x1d6   : > { %v4373_v35 = vmax.f32 %v3343_v48, %v5368_v23  ;;  %v4499_v30 = vmax.f32 %v4371_v61, %v4379_v56  ;;  %v4500_v12 = vmax.f32 %v4372_v15, %v4380_v28  ;;  %v4641_v46 = vrot.slane %v4498_v14, %v7465_v44 }
 0x1d7   : > { %v5432_v34 = vrot.slane %v3615_v47, 9  ;;  %v4435_v3 = vmax.f32 %v3614_v11, %v5430_v38  ;;  %v4436_v58 = vmax.f32 %v3613_v51, %v5431_v27  ;;  %v4530_v16 = vmax.f32 %v4434_v62, %v4442_v17 }
 0x1d8   : > { %v4501_v52 = vmax.f32 %v4373_v35, %v4381_v21  ;;  %v4645_v26 = vrot.slane %v4499_v30, %v7465_v44  ;;  %v4649_v55 = vrot.slane %v4500_v12, %v7465_v44  ;;  %v4885_v20 = vsel %vm4884_vm3, %v4641_v46, %v4883_v2 }
 0x1d9   : > { %v4437_v36 = vmax.f32 %v3615_v47, %v5432_v34  ;;  %v4531_v1 = vmax.f32 %v4435_v3, %v4443_v19  ;;  %v4532_v13 = vmax.f32 %v4436_v58, %v4444_v60  ;;  %v4769_v24 = vrot.slane %v4530_v16, %v7465_v44 }
 0x1da   : > { %v4653_v40 = vrot.slane %v4501_v52, %v7465_v44  ;;  %v4887_v31 = vsel %vm4886_vm4, %v4645_v26, %v4885_v20 }
 0x1db   : > { %v4889_v0 = vsel %vm4888_vm5, %v4649_v55, %v4887_v31  ;;  %v4533_v22 = vmax.f32 %v4437_v36, %v4445_v59  ;;  %v4773_v54 = vrot.slane %v4531_v1, %v7465_v44  ;;  %v4777_v25 = vrot.slane %v4532_v13, %v7465_v44 }
 0x1dc   : > { %v4891_v43 = vsel %vm4890_vm6, %v4653_v40, %v4889_v0  ;;  %v4916_v9 = vsel %vm4884_vm3, %v4769_v24, %v4915_v57 }
 0x1dd   : > { %4949 = vst.msk [vmem:[%s7575_s14] sm:$0xff] %vm2790_vm7, %v4891_v43  ;;  %v4781_v63 = vrot.slane %v4533_v22, %v7465_v44  ;;  %v4917_v49 = vsel %vm4886_vm4, %v4773_v54, %v4916_v9 }
 0x1de   : > { %v4918_v28 = vsel %vm4888_vm5, %v4777_v25, %v4917_v49 }
 0x1df   : > { %v4919_v10 = vsel %vm4890_vm6, %v4781_v63, %v4918_v28 }
 0x1e0   : > { %4953 = vst.msk [vmem:[%s7575_s14 + $0x20] sm:$0xff] %vm2790_vm7, %v4919_v10 }
 0x1fb   : > { %v5538_v41 = vpop.f32.mrf.mxu1 }
 0x1fc   : > { %v3208_v39 = vadd.f32 %v5538_v41, %v7463_v7 }
 0x1fd   : > { %v5522_v56 = vpop.f32.mrf.mxu0  ;;  %v3199_v50 = vpop.f32.mrf.mxu1 }
 0x1fe   : > { %v3144_v4 = vadd.f32 %v5522_v56, %v7463_v7  ;;  %v3268_v21 = vmax.f32 %v3208_v39, 0.0  ;;  %v3200_v17 = vadd.f32 %v7463_v7, %v3199_v50 }
 0x1ff   : > { %v3135_v6 = vpop.f32.mrf.mxu0  ;;  %v5539_v57 = vpop.f32.mrf.mxu1 }
 0x200   : > { %v3252_v2 = vmax.f32 %v3144_v4, 0.0  ;;  %v3136_v8 = vadd.f32 %v7463_v7, %v3135_v6  ;;  %v3684_v33 = vcombine.high %v3268_v21, %v3268_v21  ;;  %v3691_v29 = vrot.slane %v3268_v21, %v7470_v18 }
 0x201   : > { %v3266_v32 = vmax.f32 %v3200_v17, 0.0  ;;  %v5523_v42 = vpop.f32.mrf.mxu0  ;;  %v3211_v37 = vadd.f32 %v5539_v57, %v7463_v7 }
 0x202   : > { %v3412_v45 = vcombine.high %v3252_v2, %v3252_v2  ;;  %v3419_v19 = vrot.slane %v3252_v2, %v7470_v18  ;;  %v3250_v60 = vmax.f32 %v3136_v8, 0.0  ;;  %v3698_v48 = vrot.slane %v3684_v33, %v7470_v18 }
 0x203   : > { %v3699_v53 = vcombine.high %v3691_v29, %v3691_v29  ;;  %v3650_v11 = vcombine.high %v3266_v32, %v3266_v32  ;;  %v5449_v61 = vrot.slane %v3691_v29, 9  ;;  %v3147_v14 = vadd.f32 %v5523_v42, %v7463_v7 }
 0x204   : > { %v3378_v5 = vcombine.high %v3250_v60, %v3250_v60  ;;  %v3426_v59 = vrot.slane %v3412_v45, %v7470_v18  ;;  %v3427_v51 = vcombine.high %v3419_v19, %v3419_v19  ;;  %v5385_v23 = vrot.slane %v3419_v19, 9 }
 0x205   : > { %v3385_v15 = vrot.slane %v3250_v60, %v7470_v18  ;;  %v3700_v47 = vcombine.high %v3698_v48, %v3698_v48  ;;  %v5450_v38 = vrot.slane %v3699_v53, 9  ;;  %v5451_v27 = vrot.slane %v3698_v48, 9 }
 0x206   : > { %v3392_v62 = vrot.slane %v3378_v5, %v7470_v18  ;;  %v3428_v35 = vcombine.high %v3426_v59, %v3426_v59  ;;  %v5386_v30 = vrot.slane %v3427_v51, 9  ;;  %v3657_v46 = vrot.slane %v3266_v32, %v7470_v18 }
 0x207   : > { %v3393_v12 = vcombine.high %v3385_v15, %v3385_v15  ;;  %v5377_v3 = vrot.slane %v3385_v15, 9  ;;  %v3664_v16 = vrot.slane %v3650_v11, %v7470_v18  ;;  %v4454_v52 = vmax.f32 %v3691_v29, %v5449_v61 }
 0x208   : > { %v3394_v34 = vcombine.high %v3392_v62, %v3392_v62  ;;  %v5379_v58 = vrot.slane %v3392_v62, 9  ;;  %v3665_v55 = vcombine.high %v3657_v46, %v3657_v46  ;;  %v5441_v20 = vrot.slane %v3657_v46, 9 }
 0x209   : > { %v5378_v26 = vrot.slane %v3393_v12, 9  ;;  %v5387_v36 = vrot.slane %v3426_v59, 9  ;;  %v4390_v1 = vmax.f32 %v3419_v19, %v5385_v23  ;;  %v3666_v13 = vcombine.high %v3664_v16, %v3664_v16 }
 0x20a   : > { %v5443_v24 = vrot.slane %v3664_v16, 9  ;;  %v5388_v40 = vrot.slane %v3428_v35, 9  ;;  %v5380_v31 = vrot.slane %v3394_v34, 9  ;;  %v5442_v22 = vrot.slane %v3665_v55, 9 }
 0x20b   : > { %v4383_v0 = vmax.f32 %v3393_v12, %v5378_v26  ;;  %v4391_v54 = vmax.f32 %v3427_v51, %v5386_v30  ;;  %v4382_v25 = vmax.f32 %v3385_v15, %v5377_v3  ;;  %v4384_v43 = vmax.f32 %v3392_v62, %v5379_v58  ;;  %v3138_v15 = vpop.f32.mrf.mxu0 }
 0x20c   : > { %v4446_v9 = vmax.f32 %v3657_v46, %v5441_v20  ;;  %v4455_v63 = vmax.f32 %v3699_v53, %v5450_v38  ;;  %v5444_v49 = vrot.slane %v3666_v13, 9  ;;  %v4447_v28 = vmax.f32 %v3665_v55, %v5442_v22  ;;  %v3202_v46 = vpop.f32.mrf.mxu1 }
 0x20d   : > { %v4448_v10 = vmax.f32 %v3664_v16, %v5443_v24  ;;  %v4392_v41 = vmax.f32 %v3426_v59, %v5387_v36  ;;  %v5452_v56 = vrot.slane %v3700_v47, 9  ;;  %v4456_v39 = vmax.f32 %v3698_v48, %v5451_v27 }
 0x20e   : > { %v4503_v4 = vmax.f32 %v4383_v0, %v4391_v54  ;;  %v4393_v50 = vmax.f32 %v3428_v35, %v5388_v40  ;;  %v4385_v21 = vmax.f32 %v3394_v34, %v5380_v31  ;;  %v4535_v6 = vmax.f32 %v4447_v28, %v4455_v63 }
 0x20f   : > { %v3253_v17 = vmax.f32 %v3147_v14, 0.0  ;;  %v4502_v2 = vmax.f32 %v4382_v25, %v4390_v1  ;;  %v4504_v8 = vmax.f32 %v4384_v43, %v4392_v41  ;;  %v4534_v33 = vmax.f32 %v4446_v9, %v4454_v52 }
 0x210   : > { %v3269_v29 = vmax.f32 %v3211_v37, 0.0  ;;  %v4449_v45 = vmax.f32 %v3666_v13, %v5444_v49  ;;  %v4536_v19 = vmax.f32 %v4448_v10, %v4456_v39  ;;  %v4457_v57 = vmax.f32 %v3700_v47, %v5452_v56 }
 0x211   : > { %v3429_v60 = vcombine.high %v3253_v17, %v3253_v17  ;;  %v3436_v32 = vrot.slane %v3253_v17, %v7470_v18  ;;  %v4661_v53 = vrot.slane %v4503_v4, %v7465_v44  ;;  %v4505_v42 = vmax.f32 %v4385_v21, %v4393_v50 }
 0x212   : > { %v3701_v5 = vcombine.high %v3269_v29, %v3269_v29  ;;  %v3708_v48 = vrot.slane %v3269_v29, %v7470_v18  ;;  %v4789_v59 = vrot.slane %v4535_v6, %v7465_v44  ;;  %v4657_v23 = vrot.slane %v4502_v2, %v7465_v44 }
 0x213   : > { %v3443_v51 = vrot.slane %v3429_v60, %v7470_v18  ;;  %v3444_v11 = vcombine.high %v3436_v32, %v3436_v32  ;;  %v4665_v14 = vrot.slane %v4504_v8, %v7465_v44  ;;  %v4537_v47 = vmax.f32 %v4449_v45, %v4457_v57 }
 0x214   : > { %v3715_v37 = vrot.slane %v3701_v5, %v7470_v18  ;;  %v3716_v61 = vcombine.high %v3708_v48, %v3708_v48  ;;  %v4785_v38 = vrot.slane %v4534_v33, %v7465_v44  ;;  %v4793_v27 = vrot.slane %v4536_v19, %v7465_v44 }
 0x215   : > { %v4892_v62 = vsel %vm4878_vm0, %v4661_v53, %v4657_v23  ;;  %v3445_v35 = vcombine.high %v3443_v51, %v3443_v51  ;;  %v5389_v30 = vrot.slane %v3436_v32, 9  ;;  %v5453_v12 = vrot.slane %v3708_v48, 9 }
 0x216   : > { %v4669_v34 = vrot.slane %v4505_v42, %v7465_v44  ;;  %v4920_v3 = vsel %vm4878_vm0, %v4789_v59, %v4785_v38  ;;  %v5390_v58 = vrot.slane %v3444_v11, 9  ;;  %v3139_v16 = vadd.f32 %v7463_v7, %v3138_v15 }
 0x217   : > { %v5391_v52 = vrot.slane %v3443_v51, 9  ;;  %v3717_v26 = vcombine.high %v3715_v37, %v3715_v37  ;;  %v5454_v55 = vrot.slane %v3716_v61, 9  ;;  %v5455_v20 = vrot.slane %v3715_v37, 9 }
 0x218   : > { %v4893_v36 = vsel %vm4880_vm1, %v4665_v14, %v4892_v62  ;;  %v4797_v1 = vrot.slane %v4537_v47, %v7465_v44  ;;  %v3251_v13 = vmax.f32 %v3139_v16, 0.0  ;;  %v3203_v24 = vadd.f32 %v7463_v7, %v3202_v46 }
 0x219   : > { %v4921_v40 = vsel %vm4880_vm1, %v4793_v27, %v4920_v3  ;;  %v5392_v31 = vrot.slane %v3445_v35, 9  ;;  %v4394_v0 = vmax.f32 %v3436_v32, %v5389_v30  ;;  %v4458_v22 = vmax.f32 %v3708_v48, %v5453_v12 }
 0x21a   : > { %v4395_v54 = vmax.f32 %v3444_v11, %v5390_v58  ;;  %v3395_v25 = vcombine.high %v3251_v13, %v3251_v13  ;;  %v3402_v43 = vrot.slane %v3251_v13, %v7470_v18  ;;  %v3267_v9 = vmax.f32 %v3203_v24, 0.0 }
 0x21b   : > { %v4396_v63 = vmax.f32 %v3443_v51, %v5391_v52  ;;  %v5456_v49 = vrot.slane %v3717_v26, 9  ;;  %v4459_v28 = vmax.f32 %v3716_v61, %v5454_v55  ;;  %v4460_v10 = vmax.f32 %v3715_v37, %v5455_v20 }
 0x21c   : > { %v3409_v41 = vrot.slane %v3395_v25, %v7470_v18  ;;  %v3410_v56 = vcombine.high %v3402_v43, %v3402_v43  ;;  %v5381_v39 = vrot.slane %v3402_v43, 9  ;;  %v3667_v4 = vcombine.high %v3267_v9, %v3267_v9 }
 0x21d   : > { %v4397_v50 = vmax.f32 %v3445_v35, %v5392_v31  ;;  %v4894_v21 = vsel %vm4882_vm2, %v4669_v34, %v4893_v36  ;;  %v3674_v6 = vrot.slane %v3267_v9, %v7470_v18  ;;  %v4922_v17 = vsel %vm4882_vm2, %v4797_v1, %v4921_v40 }
 0x21e   : > { %v3411_v2 = vcombine.high %v3409_v41, %v3409_v41  ;;  %v5382_v8 = vrot.slane %v3410_v56, 9  ;;  %v5383_v33 = vrot.slane %v3409_v41, 9  ;;  %v4386_v29 = vmax.f32 %v3402_v43, %v5381_v39 }
 0x21f   : > { %v4461_v45 = vmax.f32 %v3717_v26, %v5456_v49  ;;  %v3681_v19 = vrot.slane %v3667_v4, %v7470_v18  ;;  %v3682_v60 = vcombine.high %v3674_v6, %v3674_v6  ;;  %v5445_v32 = vrot.slane %v3674_v6, 9 }
 0x220   : > { %v5384_v57 = vrot.slane %v3411_v2, 9  ;;  %v4387_v53 = vmax.f32 %v3410_v56, %v5382_v8  ;;  %v4388_v5 = vmax.f32 %v3409_v41, %v5383_v33  ;;  %v4506_v48 = vmax.f32 %v4386_v29, %v4394_v0 }
 0x221   : > { %v3683_v42 = vcombine.high %v3681_v19, %v3681_v19  ;;  %v5446_v59 = vrot.slane %v3682_v60, 9  ;;  %v5447_v51 = vrot.slane %v3681_v19, 9  ;;  %v4450_v11 = vmax.f32 %v3674_v6, %v5445_v32 }
 0x222   : > { %v4389_v23 = vmax.f32 %v3411_v2, %v5384_v57  ;;  %v4507_v37 = vmax.f32 %v4387_v53, %v4395_v54  ;;  %v4508_v61 = vmax.f32 %v4388_v5, %v4396_v63  ;;  %v4673_v15 = vrot.slane %v4506_v48, %v7465_v44 }
 0x223   : > { %v5448_v14 = vrot.slane %v3683_v42, 9  ;;  %v4451_v47 = vmax.f32 %v3682_v60, %v5446_v59  ;;  %v4452_v38 = vmax.f32 %v3681_v19, %v5447_v51  ;;  %v4538_v27 = vmax.f32 %v4450_v11, %v4458_v22 }
 0x224   : > { %v4509_v62 = vmax.f32 %v4389_v23, %v4397_v50  ;;  %v4677_v35 = vrot.slane %v4507_v37, %v7465_v44  ;;  %v4681_v30 = vrot.slane %v4508_v61, %v7465_v44  ;;  %v4895_v12 = vsel %vm4884_vm3, %v4673_v15, %v4894_v21 }
 0x225   : > { %v4453_v46 = vmax.f32 %v3683_v42, %v5448_v14  ;;  %v4539_v34 = vmax.f32 %v4451_v47, %v4459_v28  ;;  %v4540_v3 = vmax.f32 %v4452_v38, %v4460_v10  ;;  %v4801_v58 = vrot.slane %v4538_v27, %v7465_v44 }
 0x226   : > { %v4685_v16 = vrot.slane %v4509_v62, %v7465_v44  ;;  %v4896_v52 = vsel %vm4886_vm4, %v4677_v35, %v4895_v12 }
 0x227   : > { %v4897_v26 = vsel %vm4888_vm5, %v4681_v30, %v4896_v52  ;;  %v4541_v55 = vmax.f32 %v4453_v46, %v4461_v45  ;;  %v4805_v20 = vrot.slane %v4539_v34, %v7465_v44  ;;  %v4809_v36 = vrot.slane %v4540_v3, %v7465_v44 }
 0x228   : > { %v4898_v1 = vsel %vm4890_vm6, %v4685_v16, %v4897_v26  ;;  %v4923_v13 = vsel %vm4884_vm3, %v4801_v58, %v4922_v17 }
 0x229   : > { %4950 = vst.msk [vmem:[%s7575_s14 + $0x8] sm:$0xff] %vm2790_vm7, %v4898_v1  ;;  %v4813_v24 = vrot.slane %v4541_v55, %v7465_v44  ;;  %v4924_v40 = vsel %vm4886_vm4, %v4805_v20, %v4923_v13 }
 0x22a   : > { %v4925_v31 = vsel %vm4888_vm5, %v4809_v36, %v4924_v40 }
 0x22b   : > { %v4926_v0 = vsel %vm4890_vm6, %v4813_v24, %v4925_v31 }
 0x22c   : > { %4954 = vst.msk [vmem:[%s7575_s14 + $0x28] sm:$0xff] %vm2790_vm7, %v4926_v0 }
 0x23a   : > { %v5542_v22 = vpop.f32.mrf.mxu1 }
 0x23b   : > { %v3224_v54 = vadd.f32 %v5542_v22, %v7463_v7 }
 0x23c   : > { %v3215_v25 = vpop.f32.mrf.mxu1 }
 0x23d   : > { %v3272_v43 = vmax.f32 %v3224_v54, 0.0  ;;  %v3216_v9 = vadd.f32 %v7463_v7, %v3215_v25 }
 0x23e   : > { %v5526_v63 = vpop.f32.mrf.mxu0  ;;  %v5543_v49 = vpop.f32.mrf.mxu1 }
 0x23f   : > { %v3160_v28 = vadd.f32 %v5526_v63, %v7463_v7  ;;  %v3752_v10 = vcombine.high %v3272_v43, %v3272_v43  ;;  %v3759_v41 = vrot.slane %v3272_v43, %v7470_v18  ;;  %v3270_v56 = vmax.f32 %v3216_v9, 0.0 }
 0x240   : > { %v3151_v39 = vpop.f32.mrf.mxu0  ;;  %v3227_v4 = vadd.f32 %v5543_v49, %v7463_v7 }
 0x241   : > { %v3256_v50 = vmax.f32 %v3160_v28, 0.0  ;;  %v3766_v21 = vrot.slane %v3752_v10, %v7470_v18  ;;  %v3767_v6 = vcombine.high %v3759_v41, %v3759_v41  ;;  %v5465_v17 = vrot.slane %v3759_v41, 9 }
 0x242   : > { %v3152_v2 = vadd.f32 %v7463_v7, %v3151_v39  ;;  %v3718_v8 = vcombine.high %v3270_v56, %v3270_v56  ;;  %v3725_v33 = vrot.slane %v3270_v56, %v7470_v18  ;;  %v7661_v5 = vmax.f32 %v3227_v4, 0.0  ;;  %v5527_v43 = vpop.f32.mrf.mxu0 }
 0x243   : > { %v3480_v29 = vcombine.high %v3256_v50, %v3256_v50  ;;  %v3487_v45 = vrot.slane %v3256_v50, %v7470_v18  ;;  %v3768_v19 = vcombine.high %v3766_v21, %v3766_v21  ;;  %v5466_v60 = vrot.slane %v3767_v6, 9 }
 0x244   : > { %v5467_v32 = vrot.slane %v3766_v21, 9  ;;  %v7659_v57 = vmax.f32 %v3759_v41, %v5465_v17  ;;  %v3254_v53 = vmax.f32 %v3152_v2, 0.0  ;;  %v3732_v51 = vrot.slane %v3718_v8, %v7470_v18 }
 0x245   : > { %v3494_v48 = vrot.slane %v3480_v29, %v7470_v18  ;;  %v3495_v42 = vcombine.high %v3487_v45, %v3487_v45  ;;  %v5401_v59 = vrot.slane %v3487_v45, 9  ;;  %v5468_v11 = vrot.slane %v3768_v19, 9 }
 0x246   : > { %v4471_v23 = vmax.f32 %v3767_v6, %v5466_v60  ;;  %v3446_v37 = vcombine.high %v3254_v53, %v3254_v53  ;;  %v3453_v61 = vrot.slane %v3254_v53, %v7470_v18  ;;  %v4472_v38 = vmax.f32 %v3766_v21, %v5467_v32  ;;  %v3154_v60 = vpop.f32.mrf.mxu0  ;;  %v3218_v32 = vpop.f32.mrf.mxu1 }
 0x247   : > { %v3496_v15 = vcombine.high %v3494_v48, %v3494_v48  ;;  %v5402_v14 = vrot.slane %v3495_v42, 9  ;;  %v5403_v47 = vrot.slane %v3494_v48, 9  ;;  %v4406_v27 = vmax.f32 %v3487_v45, %v5401_v59 }
 0x248   : > { %v3460_v62 = vrot.slane %v3446_v37, %v7470_v18  ;;  %v3461_v35 = vcombine.high %v3453_v61, %v3453_v61  ;;  %v5393_v30 = vrot.slane %v3453_v61, 9  ;;  %v3733_v3 = vcombine.high %v3725_v33, %v3725_v33 }
 0x249   : > { %v5404_v12 = vrot.slane %v3496_v15, 9  ;;  %v4407_v46 = vmax.f32 %v3495_v42, %v5402_v14  ;;  %v4408_v34 = vmax.f32 %v3494_v48, %v5403_v47  ;;  %v3734_v20 = vcombine.high %v3732_v51, %v3732_v51 }
 0x24a   : > { %v3462_v58 = vcombine.high %v3460_v62, %v3460_v62  ;;  %v5394_v16 = vrot.slane %v3461_v35, 9  ;;  %v5395_v52 = vrot.slane %v3460_v62, 9  ;;  %v4398_v26 = vmax.f32 %v3453_v61, %v5393_v30 }
 0x24b   : > { %v4409_v55 = vmax.f32 %v3496_v15, %v5404_v12  ;;  %v5457_v36 = vrot.slane %v3725_v33, 9  ;;  %v5458_v1 = vrot.slane %v3733_v3, 9  ;;  %v5459_v0 = vrot.slane %v3732_v51, 9 }
 0x24c   : > { %v5396_v13 = vrot.slane %v3462_v58, 9  ;;  %v4399_v24 = vmax.f32 %v3461_v35, %v5394_v16  ;;  %v4400_v40 = vmax.f32 %v3460_v62, %v5395_v52  ;;  %v4510_v31 = vmax.f32 %v4398_v26, %v4406_v27 }
 0x24d   : > { %v5460_v22 = vrot.slane %v3734_v20, 9  ;;  %v4462_v54 = vmax.f32 %v3725_v33, %v5457_v36  ;;  %v4463_v25 = vmax.f32 %v3733_v3, %v5458_v1  ;;  %v4464_v10 = vmax.f32 %v3732_v51, %v5459_v0 }
 0x24e   : > { %v4401_v9 = vmax.f32 %v3462_v58, %v5396_v13  ;;  %v4511_v63 = vmax.f32 %v4399_v24, %v4407_v46  ;;  %v4512_v49 = vmax.f32 %v4400_v40, %v4408_v34  ;;  %v4689_v28 = vrot.slane %v4510_v31, %v7465_v44 }
 0x24f   : > { %v4465_v41 = vmax.f32 %v3734_v20, %v5460_v22  ;;  %v4542_v56 = vmax.f32 %v4462_v54, %v7659_v57  ;;  %v4543_v39 = vmax.f32 %v4463_v25, %v4471_v23  ;;  %v3163_v6 = vadd.f32 %v5527_v43, %v7463_v7 }
 0x250   : > { %v4513_v4 = vmax.f32 %v4401_v9, %v4409_v55  ;;  %v4693_v50 = vrot.slane %v4511_v63, %v7465_v44  ;;  %v4697_v21 = vrot.slane %v4512_v49, %v7465_v44  ;;  %v4473_v17 = vmax.f32 %v3768_v19, %v5468_v11 }
 0x251   : > { %v4544_v2 = vmax.f32 %v4464_v10, %v4472_v38  ;;  %v4821_v8 = vrot.slane %v4543_v39, %v7465_v44  ;;  %v3257_v29 = vmax.f32 %v3163_v6, 0.0  ;;  %v3769_v45 = vcombine.high %v7661_v5, %v7661_v5 }
 0x252   : > { %v4899_v33 = vsel %vm4878_vm0, %v4693_v50, %v4689_v28  ;;  %v4701_v57 = vrot.slane %v4513_v4, %v7465_v44  ;;  %v4545_v48 = vmax.f32 %v4465_v41, %v4473_v17  ;;  %v4817_v42 = vrot.slane %v4542_v56, %v7465_v44 }
 0x253   : > { %v4900_v53 = vsel %vm4880_vm1, %v4697_v21, %v4899_v33  ;;  %v3497_v59 = vcombine.high %v3257_v29, %v3257_v29  ;;  %v3504_v19 = vrot.slane %v3257_v29, %v7470_v18  ;;  %v3776_v51 = vrot.slane %v7661_v5, %v7470_v18 }
 0x254   : > { %v3783_v11 = vrot.slane %v3769_v45, %v7470_v18  ;;  %v4825_v23 = vrot.slane %v4544_v2, %v7465_v44  ;;  %v4927_v37 = vsel %vm4878_vm0, %v4821_v8, %v4817_v42  ;;  %v3155_v61 = vadd.f32 %v7463_v7, %v3154_v60 }
 0x255   : > { %v3219_v15 = vadd.f32 %v7463_v7, %v3218_v32  ;;  %v3511_v14 = vrot.slane %v3497_v59, %v7470_v18  ;;  %v3512_v47 = vcombine.high %v3504_v19, %v3504_v19  ;;  %v5405_v38 = vrot.slane %v3504_v19, 9 }
 0x256   : > { %v3784_v27 = vcombine.high %v3776_v51, %v3776_v51  ;;  %v3785_v62 = vcombine.high %v3783_v11, %v3783_v11  ;;  %v5469_v35 = vrot.slane %v3776_v51, 9  ;;  %v5471_v30 = vrot.slane %v3783_v11, 9 }
 0x257   : > { %v3255_v12 = vmax.f32 %v3155_v61, 0.0  ;;  %v3513_v5 = vcombine.high %v3511_v14, %v3511_v14  ;;  %v5406_v46 = vrot.slane %v3512_v47, 9  ;;  %v5407_v34 = vrot.slane %v3511_v14, 9 }
 0x258   : > { %v4829_v3 = vrot.slane %v4545_v48, %v7465_v44  ;;  %v4928_v58 = vsel %vm4880_vm1, %v4825_v23, %v4927_v37  ;;  %v5470_v16 = vrot.slane %v3784_v27, 9  ;;  %v4901_v52 = vsel %vm4882_vm2, %v4701_v57, %v4900_v53 }
 0x259   : > { %v5408_v7 = vrot.slane %v3513_v5, 9  ;;  %v4410_v26 = vmax.f32 %v3504_v19, %v5405_v38  ;;  %v5472_v55 = vrot.slane %v3785_v62, 9  ;;  %v3463_v20 = vcombine.high %v3255_v12, %v3255_v12 }
 0x25a   : > { %v4474_v36 = vmax.f32 %v3776_v51, %v5469_v35  ;;  %v4476_v1 = vmax.f32 %v3783_v11, %v5471_v30  ;;  %v3470_v13 = vrot.slane %v3255_v12, %v7470_v18  ;;  %v3271_v24 = vmax.f32 %v3219_v15, 0.0 }
 0x25b   : > { %v4411_v40 = vmax.f32 %v3512_v47, %v5406_v46  ;;  %v4412_v31 = vmax.f32 %v3511_v14, %v5407_v34  ;;  %v4475_v0 = vmax.f32 %v3784_v27, %v5470_v16  ;;  %v3477_v22 = vrot.slane %v3463_v20, %v7470_v18 }
 0x25c   : > { %v3478_v54 = vcombine.high %v3470_v13, %v3470_v13  ;;  %v5397_v25 = vrot.slane %v3470_v13, 9  ;;  %v3735_v43 = vcombine.high %v3271_v24, %v3271_v24  ;;  %v3742_v9 = vrot.slane %v3271_v24, %v7470_v18 }
 0x25d   : > { %v4413_v63 = vmax.f32 %v3513_v5, %v5408_v7  ;;  %v4477_v49 = vmax.f32 %v3785_v62, %v5472_v55  ;;  %v3479_v28 = vcombine.high %v3477_v22, %v3477_v22  ;;  %v5399_v10 = vrot.slane %v3477_v22, 9 }
 0x25e   : > { %v5398_v41 = vrot.slane %v3478_v54, 9  ;;  %v4402_v56 = vmax.f32 %v3470_v13, %v5397_v25  ;;  %v3749_v39 = vrot.slane %v3735_v43, %v7470_v18  ;;  %v3750_v4 = vcombine.high %v3742_v9, %v3742_v9 }
 0x25f   : > { %v5400_v50 = vrot.slane %v3479_v28, 9  ;;  %v4404_v21 = vmax.f32 %v3477_v22, %v5399_v10  ;;  %v5461_v6 = vrot.slane %v3742_v9, 9  ;;  %v4929_v17 = vsel %vm4882_vm2, %v4829_v3, %v4928_v58 }
 0x260   : > { %v4403_v2 = vmax.f32 %v3478_v54, %v5398_v41  ;;  %v4514_v8 = vmax.f32 %v4402_v56, %v4410_v26  ;;  %v3751_v33 = vcombine.high %v3749_v39, %v3749_v39  ;;  %v5462_v29 = vrot.slane %v3750_v4, 9  ;;  %v7719_v26 = vld [vmem:[%s7784_s2] ss:$0 sm:$0xff] }
 0x261   : > { %v4405_v45 = vmax.f32 %v3479_v28, %v5400_v50  ;;  %v4516_v60 = vmax.f32 %v4404_v21, %v4412_v31  ;;  %v5463_v32 = vrot.slane %v3749_v39, 9  ;;  %v4466_v57 = vmax.f32 %v3742_v9, %v5461_v6 }
 0x262   : > { %v4515_v53 = vmax.f32 %v4403_v2, %v4411_v40  ;;  %v4705_v48 = vrot.slane %v4514_v8, %v7465_v44  ;;  %v5464_v42 = vrot.slane %v3751_v33, 9  ;;  %v4467_v59 = vmax.f32 %v3750_v4, %v5462_v29 }
 0x263   : > { %v4517_v19 = vmax.f32 %v4405_v45, %v4413_v63  ;;  %v4713_v51 = vrot.slane %v4516_v60, %v7465_v44  ;;  %v4468_v11 = vmax.f32 %v3749_v39, %v5463_v32  ;;  %v4546_v23 = vmax.f32 %v4466_v57, %v4474_v36 }
 0x264   : > { %v4709_v37 = vrot.slane %v4515_v53, %v7465_v44  ;;  %v4902_v61 = vsel %vm4884_vm3, %v4705_v48, %v4901_v52  ;;  %v4469_v15 = vmax.f32 %v3751_v33, %v5464_v42  ;;  %v4547_v14 = vmax.f32 %v4467_v59, %v4475_v0 }
 0x265   : > { %v4717_v47 = vrot.slane %v4517_v19, %v7465_v44  ;;  %v4548_v38 = vmax.f32 %v4468_v11, %v4476_v1  ;;  %v4833_v27 = vrot.slane %v4546_v23, %v7465_v44 }
 0x266   : > { %v4903_v62 = vsel %vm4886_vm4, %v4709_v37, %v4902_v61  ;;  %v4549_v35 = vmax.f32 %v4469_v15, %v4477_v49  ;;  %v4837_v30 = vrot.slane %v4547_v14, %v7465_v44 }
 0x267   : > { %v4904_v12 = vsel %vm4888_vm5, %v4713_v51, %v4903_v62  ;;  %v4841_v5 = vrot.slane %v4548_v38, %v7465_v44  ;;  %v4930_v46 = vsel %vm4884_vm3, %v4833_v27, %v4929_v17 }
 0x268   : > { %v4905_v34 = vsel %vm4890_vm6, %v4717_v47, %v4904_v12  ;;  %v4845_v3 = vrot.slane %v4549_v35, %v7465_v44  ;;  %v4931_v58 = vsel %vm4886_vm4, %v4837_v30, %v4930_v46 }
 0x269   : > { %4951 = vst.msk [vmem:[%s7575_s14 + $0x10] sm:$0xff] %vm2790_vm7, %v4905_v34  ;;  %v4932_v16 = vsel %vm4888_vm5, %v4841_v5, %v4931_v58 }
 0x26a   : > { %v4933_v52 = vsel %vm4890_vm6, %v4845_v3, %v4932_v16 }
 0x26b   : > { %4955 = vst.msk [vmem:[%s7575_s14 + $0x30] sm:$0xff] %vm2790_vm7, %v4933_v52 }
 0x283   : > { %v5546_v7 = vpop.f32.mrf.mxu1 }
 0x284   : > { %v3240_v55 = vadd.f32 %v7719_v26, %v5546_v7 }
 0x285   : > { %v3231_v20 = vpop.f32.mrf.mxu1 }
 0x286   : > { %v5530_v36 = vpop.f32.mrf.mxu0  ;;  %v3276_v1 = vmax.f32 %v3240_v55, 0.0  ;;  %v3232_v13 = vadd.f32 %v7719_v26, %v3231_v20 }
 0x287   : > { %v3176_v24 = vadd.f32 %v7719_v26, %v5530_v36  ;;  %v5547_v54 = vpop.f32.mrf.mxu1 }
 0x288   : > { %v3820_v40 = vcombine.high %v3276_v1, %v3276_v1  ;;  %v3827_v31 = vrot.slane %v3276_v1, %v7470_v18  ;;  %v3167_v0 = vpop.f32.mrf.mxu0  ;;  %v3274_v22 = vmax.f32 %v3232_v13, 0.0  ;;  %v3243_v56 = vadd.f32 %v7719_v26, %v5547_v54 }
 0x289   : > { %v3260_v25 = vmax.f32 %v3176_v24, 0.0  ;;  %v3168_v43 = vadd.f32 %v7719_v26, %v3167_v0 }
 0x28a   : > { %v3834_v9 = vrot.slane %v3820_v40, %v7470_v18  ;;  %v3835_v63 = vcombine.high %v3827_v31, %v3827_v31  ;;  %v5481_v49 = vrot.slane %v3827_v31, 9  ;;  %v3786_v21 = vcombine.high %v3274_v22, %v3274_v22  ;;  %v5531_v7 = vpop.f32.mrf.mxu0 }
 0x28b   : > { %v3548_v28 = vcombine.high %v3260_v25, %v3260_v25  ;;  %v3555_v10 = vrot.slane %v3260_v25, %v7470_v18  ;;  %v3258_v41 = vmax.f32 %v3168_v43, 0.0  ;;  %v3793_v60 = vrot.slane %v3274_v22, %v7470_v18 }
 0x28c   : > { %v3836_v39 = vcombine.high %v3834_v9, %v3834_v9  ;;  %v5482_v4 = vrot.slane %v3835_v63, 9  ;;  %v5483_v50 = vrot.slane %v3834_v9, 9  ;;  %v4486_v29 = vmax.f32 %v3827_v31, %v5481_v49 }
 0x28d   : > { %v3562_v6 = vrot.slane %v3548_v28, %v7470_v18  ;;  %v3563_v17 = vcombine.high %v3555_v10, %v3555_v10  ;;  %v5417_v2 = vrot.slane %v3555_v10, 9  ;;  %v3514_v8 = vcombine.high %v3258_v41, %v3258_v41 }
 0x28e   : > { %v5484_v33 = vrot.slane %v3836_v39, 9  ;;  %v3521_v45 = vrot.slane %v3258_v41, %v7470_v18  ;;  %v4487_v48 = vmax.f32 %v3835_v63, %v5482_v4  ;;  %v4488_v42 = vmax.f32 %v3834_v9, %v5483_v50  ;;  %v3170_v4 = vpop.f32.mrf.mxu0 }
 0x28f   : > { %v3564_v32 = vcombine.high %v3562_v6, %v3562_v6  ;;  %v5418_v57 = vrot.slane %v3563_v17, 9  ;;  %v5419_v53 = vrot.slane %v3562_v6, 9  ;;  %v3528_v59 = vrot.slane %v3514_v8, %v7470_v18 }
 0x290   : > { %v3529_v19 = vcombine.high %v3521_v45, %v3521_v45  ;;  %v5409_v51 = vrot.slane %v3521_v45, 9  ;;  %v4422_v23 = vmax.f32 %v3555_v10, %v5417_v2  ;;  %v3800_v61 = vrot.slane %v3786_v21, %v7470_v18 }
 0x291   : > { %v5420_v11 = vrot.slane %v3564_v32, 9  ;;  %v4423_v37 = vmax.f32 %v3563_v17, %v5418_v57  ;;  %v3530_v15 = vcombine.high %v3528_v59, %v3528_v59  ;;  %v5411_v47 = vrot.slane %v3528_v59, 9 }
 0x292   : > { %v5410_v14 = vrot.slane %v3529_v19, 9  ;;  %v4414_v38 = vmax.f32 %v3521_v45, %v5409_v51  ;;  %v4424_v27 = vmax.f32 %v3562_v6, %v5419_v53  ;;  %v3801_v62 = vcombine.high %v3793_v60, %v3793_v60 }
 0x293   : > { %v3802_v35 = vcombine.high %v3800_v61, %v3800_v61  ;;  %v5473_v30 = vrot.slane %v3793_v60, 9  ;;  %v5412_v12 = vrot.slane %v3530_v15, 9  ;;  %v4416_v46 = vmax.f32 %v3528_v59, %v5411_v47 }
 0x294   : > { %v4415_v5 = vmax.f32 %v3529_v19, %v5410_v14  ;;  %v4518_v34 = vmax.f32 %v4414_v38, %v4422_v23  ;;  %v5474_v3 = vrot.slane %v3801_v62, 9  ;;  %v5475_v58 = vrot.slane %v3800_v61, 9 }
 0x295   : > { %v5476_v16 = vrot.slane %v3802_v35, 9  ;;  %v4478_v52 = vmax.f32 %v3793_v60, %v5473_v30  ;;  %v4425_v55 = vmax.f32 %v3564_v32, %v5420_v11  ;;  %v4417_v20 = vmax.f32 %v3530_v15, %v5412_v12  ;;  %v3234_v60 = vpop.f32.mrf.mxu1 }
 0x296   : > { %v4519_v36 = vmax.f32 %v4415_v5, %v4423_v37  ;;  %v4520_v1 = vmax.f32 %v4416_v46, %v4424_v27  ;;  %v4479_v13 = vmax.f32 %v3801_v62, %v5474_v3  ;;  %v4480_v24 = vmax.f32 %v3800_v61, %v5475_v58 }
 0x297   : > { %v4481_v40 = vmax.f32 %v3802_v35, %v5476_v16  ;;  %v4550_v31 = vmax.f32 %v4478_v52, %v4486_v29  ;;  %v4489_v0 = vmax.f32 %v3836_v39, %v5484_v33  ;;  %v4721_v22 = vrot.slane %v4518_v34, %v7465_v44 }
 0x298   : > { %v4725_v54 = vrot.slane %v4519_v36, %v7465_v44  ;;  %v3179_v25 = vadd.f32 %v7719_v26, %v5531_v7  ;;  %v4521_v43 = vmax.f32 %v4417_v20, %v4425_v55  ;;  %v4729_v9 = vrot.slane %v4520_v1, %v7465_v44 }
 0x299   : > { %v4551_v63 = vmax.f32 %v4479_v13, %v4487_v48  ;;  %v4552_v49 = vmax.f32 %v4480_v24, %v4488_v42  ;;  %v3277_v41 = vmax.f32 %v3243_v56, 0.0  ;;  %v4553_v50 = vmax.f32 %v4481_v40, %v4489_v0 }
 0x29a   : > { %v4906_v28 = vsel %vm4878_vm0, %v4725_v54, %v4721_v22  ;;  %v3261_v10 = vmax.f32 %v3179_v25, 0.0  ;;  %v4849_v21 = vrot.slane %v4550_v31, %v7465_v44  ;;  %v4733_v33 = vrot.slane %v4521_v43, %v7465_v44 }
 0x29b   : > { %v4853_v39 = vrot.slane %v4551_v63, %v7465_v44  ;;  %v3837_v2 = vcombine.high %v3277_v41, %v3277_v41  ;;  %v3844_v8 = vrot.slane %v3277_v41, %v7470_v18  ;;  %v4907_v29 = vsel %vm4880_vm1, %v4729_v9, %v4906_v28 }
 0x29c   : > { %v3565_v6 = vcombine.high %v3261_v10, %v3261_v10  ;;  %v3572_v17 = vrot.slane %v3261_v10, %v7470_v18  ;;  %v4857_v45 = vrot.slane %v4552_v49, %v7465_v44  ;;  %v3171_v56 = vadd.f32 %v7719_v26, %v3170_v4 }
 0x29d   : > { %v4934_v32 = vsel %vm4878_vm0, %v4853_v39, %v4849_v21  ;;  %v3851_v42 = vrot.slane %v3837_v2, %v7470_v18  ;;  %v3852_v59 = vcombine.high %v3844_v8, %v3844_v8  ;;  %v5485_v19 = vrot.slane %v3844_v8, 9 }
 0x29e   : > { %v3579_v57 = vrot.slane %v3565_v6, %v7470_v18  ;;  %v3580_v53 = vcombine.high %v3572_v17, %v3572_v17  ;;  %v5421_v48 = vrot.slane %v3572_v17, 9  ;;  %v3259_v51 = vmax.f32 %v3171_v56, 0.0 }
 0x29f   : > { %v3235_v61 = vadd.f32 %v7719_v26, %v3234_v60  ;;  %v4861_v15 = vrot.slane %v4553_v50, %v7465_v44  ;;  %v3853_v14 = vcombine.high %v3851_v42, %v3851_v42  ;;  %v5486_v47 = vrot.slane %v3852_v59, 9 }
 0x2a0   : > { %v3581_v11 = vcombine.high %v3579_v57, %v3579_v57  ;;  %v5422_v23 = vrot.slane %v3580_v53, 9  ;;  %v5423_v37 = vrot.slane %v3579_v57, 9  ;;  %v4935_v38 = vsel %vm4880_vm1, %v4857_v45, %v4934_v32 }
 0x2a1   : > { %v4426_v27 = vmax.f32 %v3572_v17, %v5421_v48  ;;  %v3531_v62 = vcombine.high %v3259_v51, %v3259_v51  ;;  %v4908_v35 = vsel %vm4882_vm2, %v4733_v33, %v4907_v29  ;;  %v5487_v12 = vrot.slane %v3851_v42, 9 }
 0x2a2   : > { %v5424_v30 = vrot.slane %v3581_v11, 9  ;;  %v4490_v5 = vmax.f32 %v3844_v8, %v5485_v19  ;;  %v3538_v46 = vrot.slane %v3259_v51, %v7470_v18  ;;  %v4427_v34 = vmax.f32 %v3580_v53, %v5422_v23 }
 0x2a3   : > { %v4428_v3 = vmax.f32 %v3579_v57, %v5423_v37  ;;  %v3545_v58 = vrot.slane %v3531_v62, %v7470_v18  ;;  %v3275_v26 = vmax.f32 %v3235_v61, 0.0  ;;  %v5488_v16 = vrot.slane %v3853_v14, 9 }
 0x2a4   : > { %v4491_v52 = vmax.f32 %v3852_v59, %v5486_v47  ;;  %v3546_v7 = vcombine.high %v3538_v46, %v3538_v46  ;;  %v5413_v55 = vrot.slane %v3538_v46, 9  ;;  %v4429_v24 = vmax.f32 %v3581_v11, %v5424_v30 }
 0x2a5   : > { %v3547_v20 = vcombine.high %v3545_v58, %v3545_v58  ;;  %v5415_v36 = vrot.slane %v3545_v58, 9  ;;  %v3803_v1 = vcombine.high %v3275_v26, %v3275_v26  ;;  %v3810_v13 = vrot.slane %v3275_v26, %v7470_v18 }
 0x2a6   : > { %v4492_v40 = vmax.f32 %v3851_v42, %v5487_v12  ;;  %v5414_v31 = vrot.slane %v3546_v7, 9  ;;  %v4418_v0 = vmax.f32 %v3538_v46, %v5413_v55  ;;  %v4936_v28 = vsel %vm4882_vm2, %v4861_v15, %v4935_v38 }
 0x2a7   : > { %v5416_v22 = vrot.slane %v3547_v20, 9  ;;  %v4420_v54 = vmax.f32 %v3545_v58, %v5415_v36  ;;  %v3817_v25 = vrot.slane %v3803_v1, %v7470_v18  ;;  %v3818_v43 = vcombine.high %v3810_v13, %v3810_v13 }
 0x2a8   : > { %v4419_v9 = vmax.f32 %v3546_v7, %v5414_v31  ;;  %v4522_v63 = vmax.f32 %v4418_v0, %v4426_v27  ;;  %v5477_v49 = vrot.slane %v3810_v13, 9  ;;  %v4493_v32 = vmax.f32 %v3853_v14, %v5488_v16 }
 0x2a9   : > { %v4421_v10 = vmax.f32 %v3547_v20, %v5416_v22  ;;  %v4524_v41 = vmax.f32 %v4420_v54, %v4428_v3  ;;  %v3819_v4 = vcombine.high %v3817_v25, %v3817_v25  ;;  %v5478_v50 = vrot.slane %v3818_v43, 9 }
 0x2aa   : > { %v4523_v21 = vmax.f32 %v4419_v9, %v4427_v34  ;;  %v4737_v39 = vrot.slane %v4522_v63, %v7465_v44  ;;  %v5479_v6 = vrot.slane %v3817_v25, 9  ;;  %v4482_v17 = vmax.f32 %v3810_v13, %v5477_v49 }
 0x2ab   : > { %v4525_v2 = vmax.f32 %v4421_v10, %v4429_v24  ;;  %v4745_v8 = vrot.slane %v4524_v41, %v7465_v44  ;;  %v5480_v33 = vrot.slane %v3819_v4, 9  ;;  %v4483_v18 = vmax.f32 %v3818_v43, %v5478_v50 }
 0x2ac   : > { %v4741_v29 = vrot.slane %v4523_v21, %v7465_v44  ;;  %v4909_v45 = vsel %vm4884_vm3, %v4737_v39, %v4908_v35  ;;  %v4484_v56 = vmax.f32 %v3817_v25, %v5479_v6  ;;  %v4554_v60 = vmax.f32 %v4482_v17, %v4490_v5 }
 0x2ad   : > { %v4749_v57 = vrot.slane %v4525_v2, %v7465_v44  ;;  %v4485_v53 = vmax.f32 %v3819_v4, %v5480_v33  ;;  %v4555_v48 = vmax.f32 %v4483_v18, %v4491_v52 }
 0x2ae   : > { %v4910_v42 = vsel %vm4886_vm4, %v4741_v29, %v4909_v45  ;;  %v4556_v59 = vmax.f32 %v4484_v56, %v4492_v40  ;;  %v4865_v19 = vrot.slane %v4554_v60, %v7465_v44 }
 0x2af   : > { %v4911_v51 = vsel %vm4888_vm5, %v4745_v8, %v4910_v42  ;;  %v4557_v11 = vmax.f32 %v4485_v53, %v4493_v32  ;;  %v4869_v23 = vrot.slane %v4555_v48, %v7465_v44 }
 0x2b0   : > { %v4912_v37 = vsel %vm4890_vm6, %v4749_v57, %v4911_v51  ;;  %v4873_v61 = vrot.slane %v4556_v59, %v7465_v44  ;;  %v4937_v15 = vsel %vm4884_vm3, %v4865_v19, %v4936_v28 }
 0x2b1   : > { %4952 = vst.msk [vmem:[%s7575_s14 + $0x18] sm:$0xff] %vm2790_vm7, %v4912_v37  ;;  %v4877_v14 = vrot.slane %v4557_v11, %v7465_v44  ;;  %v4938_v47 = vsel %vm4886_vm4, %v4869_v23, %v4937_v15 }
 0x2b2   : > { %v4939_v38 = vsel %vm4888_vm5, %v4873_v61, %v4938_v47 }
 0x2b3   : > { %v4940_v27 = vsel %vm4890_vm6, %v4877_v14, %v4939_v38 }
 0x2b4   : > { %4956 = vst.msk [vmem:[%s7575_s14 + $0x38] sm:$0xff] %vm2790_vm7, %v4940_v27 }
 0x2b5 PF: > { %s13_s12 = sadd.s32 1, %s5660_s12  }
 0x2b6   : > { %p10_p5 = scmp.ge.s32.totalorder %s13_s12, 4  }
 0x2b8   :  { %12 = sbr.rel (!%p10_p5) target bundleno = 1 (0x1), region = 64 }

</bundles_post_ra>
